<compile_context>
chip_gen: v6e
topology: v6e:2x2x1
jax: 0.10.0
libtpu: 0.0.40
codegen_flags: <defaults>
</compile_context>

<pallas_src>
import functools

import numpy as np
import jax
import jax.numpy as jnp
from jax import lax
from jax.experimental import pallas as pl
from jax.experimental.pallas import tpu as pltpu


# >=128 on v5e, >=256 on v6e/v7x; sweep up to 512 while VMEM allows.
EDGE_TILE = 256


def _masked_norm_elu(x, c):
    """Row-wise InstanceNorm over the first `c` lanes + ELU, on a lane-dense slab.

    nn.InstanceNorm1d applied to an unbatched 2-D tensor == per-row normalization
    over the feature axis (eps=1e-5, no affine), then ELU(alpha=1).  `x` is
    [rows, EW] with lanes >= c exactly zero; those lanes stay zero on output, so
    downstream matmuls against zero-row-padded weights remain exact.
    """
    rows, ew = x.shape
    lane = lax.broadcasted_iota(jnp.int32, (rows, ew), 1)
    mask = lane < c
    mu = jnp.sum(x, axis=-1, keepdims=True) * (1.0 / c)
    diff = jnp.where(mask, x - mu, 0.0)
    var = jnp.sum(diff * diff, axis=-1, keepdims=True) * (1.0 / c)
    y = diff * lax.rsqrt(var + 1e-5)
    return jnp.where(y > 0, y, jnp.exp(y) - 1.0)


# ----------------------------------------------------------------------------
# Per-layer EGATConv kernel (projections + gather + attention + edge-softmax +
# aggregation + head-mean + InstanceNorm + ELU + (folded) output linear).
# ----------------------------------------------------------------------------
def egat_layer_kernel(
    nfeat_ref,     # [Np, Din]    f32  node features (resident across the grid)
    efeat_ref,     # [tE, EW]     bf16 lane-dense edge-feature block
    src_oh_ref,    # [tE, Np]     bf16 one-hot gather rows (src)
    dst_oh_ref,    # [tE, Np]     bf16 one-hot gather rows (dst)
    dst_oht_ref,   # [Np, tE]     bf16 pre-transposed scatter columns (dst)
    w_cat_ref,     # [Din, 3HC]   f32  [w_ni | w_node | w_nj] (+folded initial linear)
    b_cat_ref,     # [1, 3HC]     f32  every constant bias folded in host-side
    w_fij_ref,     # [EW, HC]     bf16 zero-row-padded fc_fij
    a_bd_ref,      # [HC, H]      bf16 block-diagonal attention vectors
    rep_ref,       # [H, HC]      f32  head -> H*C replication matrix
    mean_pad_ref,  # [HC, EW]     bf16 head-mean matrix, zero-padded to EW lanes
    w_out_ref,     # [EW, Dout]   f32  identity (hidden) / final_linear, zero-row padded
    b_out_ref,     # [1, Dout]    f32
    node_out_ref,  # [Np, Dout]   f32  out: written once at the last edge block
    edge_out_ref,  # [tE, EW]     bf16 out: lane-dense next-layer edge stream
    src_sc,        # [Np, 2HC]    bf16 scratch: cached [f_ni | h_node] projections
    dst_sc,        # [Np, HC]     bf16 scratch: cached f_nj projection (+biases)
    gm_sc,         # [1, H]       f32  scratch: running per-head max
    acc_sc,        # [Np, 2HC]    f32  scratch: [weighted messages | softmax denom]
    *, num_heads, num_channels,
):
    H, C = num_heads, num_channels
    HC = H * C
    eb = pl.program_id(0)
    last = pl.num_programs(0) - 1
    bf16 = jnp.bfloat16

    @pl.when(eb == 0)
    def _init():
        # fused node projections, cached once in bf16 (MXU operand form)
        proj = (jnp.dot(nfeat_ref[...], w_cat_ref[...],
                        preferred_element_type=jnp.float32) + b_cat_ref[...])
        src_sc[...] = proj[:, :2 * HC].astype(bf16)
        dst_sc[...] = proj[:, 2 * HC:].astype(bf16)
        gm_sc[...] = jnp.full(gm_sc.shape, -1e30, jnp.float32)
        acc_sc[...] = jnp.zeros_like(acc_sc)

    src_oh = src_oh_ref[...]
    dst_oh = dst_oh_ref[...]

    # one-hot gathers (bf16 MXU operands, f32 accumulation)
    g_src = jnp.dot(src_oh, src_sc[...], preferred_element_type=jnp.float32)    # [tE, 2HC]
    f_ni = g_src[:, :HC]
    h_src = g_src[:, HC:]
    f_nj = jnp.dot(dst_oh, dst_sc[...], preferred_element_type=jnp.float32)     # [tE, HC]
    f_fij = jnp.dot(efeat_ref[...], w_fij_ref[...],
                    preferred_element_type=jnp.float32)                          # [tE, HC]

    f_out = f_ni + f_nj + f_fij
    f_out = jnp.where(f_out > 0, f_out, 0.01 * f_out)        # leaky_relu(0.01)
    f_out_b = f_out.astype(bf16)

    # lane-dense edge output: head-mean -> InstanceNorm -> ELU (zeros in lanes >= C)
    e_mean = jnp.dot(f_out_b, mean_pad_ref[...], preferred_element_type=jnp.float32)
    edge_out_ref[...] = _masked_norm_elu(e_mean, C).astype(edge_out_ref.dtype)

    # per-head attention logits; padded edges (all-zero one-hot rows) are masked out
    logits = jnp.dot(f_out_b, a_bd_ref[...], preferred_element_type=jnp.float32)  # [tE, H]
    valid = jnp.sum(dst_oh.astype(jnp.float32), axis=-1, keepdims=True) > 0.0
    logits = jnp.where(valid, logits, -1e30)

    # Online softmax over edge blocks with a global per-head running max.  With the
    # fused accumulator the rescale is one [Np,2HC] VPU multiply per block, which is
    # negligible vs. the [tE,Np] MXU matmuls; it keeps single-pass overflow safety.
    # TODO(synk): a per-destination segment max (exact edge_softmax numerics) would
    # need a scatter-max; the global max + clamped denominator guards overflow only.
    blk_max = jnp.max(logits, axis=0, keepdims=True)          # [1, H]
    gm_old = gm_sc[...]
    gm_new = jnp.maximum(gm_old, blk_max)
    scale = jnp.exp(gm_old - gm_new)                          # [1, H]
    gm_sc[...] = gm_new
    p = jnp.exp(logits - gm_new)                              # [tE, H]

    # Fused scatter: ONE [Np,tE]@[tE,2HC] matmul accumulates both the weighted
    # messages (cols < HC) and the per-head softmax denominators (cols >= HC).
    p_rep = jnp.dot(p, rep_ref[...], preferred_element_type=jnp.float32)        # [tE, HC]
    scat = jnp.concatenate([p_rep * h_src, p_rep], axis=1).astype(bf16)         # [tE, 2HC]
    inc = jnp.dot(dst_oht_ref[...], scat, preferred_element_type=jnp.float32)   # [Np, 2HC]
    sw = jnp.dot(scale, rep_ref[...], preferred_element_type=jnp.float32)       # [1, HC]
    acc_sc[...] = acc_sc[...] * jnp.concatenate([sw, sw], axis=1) + inc

    @pl.when(eb == last)
    def _finalize():
        acc = acc_sc[...]
        den = jnp.maximum(acc[:, HC:], 1e-30)                 # guard 0 in-degree
        node_ph = acc[:, :HC] / den                           # exact softmax division
        node_mean = jnp.dot(node_ph.astype(bf16), mean_pad_ref[...],
                            preferred_element_type=jnp.float32)                 # [Np, EW]
        y = _masked_norm_elu(node_mean, C)
        node_out_ref[...] = (jnp.dot(y, w_out_ref[...],
                                     preferred_element_type=jnp.float32)
                             + b_out_ref[...])


# ----------------------------------------------------------------------------
# pallas_call wrapper (one call per EGATConv layer)
# ----------------------------------------------------------------------------
def pallas_egat_layer(nfeat, efeat, src_oh, dst_oh, dst_oht, prm,
                      n_heads, num_channels, edge_tile=EDGE_TILE):
    Np, din_n = nfeat.shape
    Ep, ew = efeat.shape
    H, C = n_heads, num_channels
    HC = H * C
    dout = prm["w_out"].shape[1]
    assert Ep % edge_tile == 0 and Np % 8 == 0 and ew == HC
    n_blocks = Ep // edge_tile

    kern = functools.partial(egat_layer_kernel, num_heads=H, num_channels=C)

    whole = lambda i: (0, 0)
    erow = lambda i: (i, 0)
    ecol = lambda i: (0, i)

    in_specs = [
        pl.BlockSpec((Np, din_n), whole),            # nfeat (resident)
        pl.BlockSpec((edge_tile, ew), erow),         # efeat block (lane-dense)
        pl.BlockSpec((edge_tile, Np), erow),         # src one-hot block
        pl.BlockSpec((edge_tile, Np), erow),         # dst one-hot block
        pl.BlockSpec((Np, edge_tile), ecol),         # dst one-hot, pre-transposed
        pl.BlockSpec(prm["w_cat"].shape, whole),
        pl.BlockSpec(prm["b_cat"].shape, whole),
        pl.BlockSpec(prm["w_fij"].shape, whole),
        pl.BlockSpec(prm["a_bd"].shape, whole),
        pl.BlockSpec(prm["rep"].shape, whole),
        pl.BlockSpec(prm["mean_pad"].shape, whole),
        pl.BlockSpec(prm["w_out"].shape, whole),
        pl.BlockSpec(prm["b_out"].shape, whole),
    ]
    out_specs = (
        pl.BlockSpec((Np, dout), whole),             # node output (written at last block)
        pl.BlockSpec((edge_tile, ew), erow),         # lane-dense edge output per block
    )
    out_shape = (
        jax.ShapeDtypeStruct((Np, dout), jnp.float32),
        jax.ShapeDtypeStruct((Ep, ew), jnp.bfloat16),
    )
    scratch = [
        pltpu.VMEM((Np, 2 * HC), jnp.bfloat16),      # cached [f_ni | h_node]
        pltpu.VMEM((Np, HC), jnp.bfloat16),          # cached f_nj (+biases)
        pltpu.VMEM((1, H), jnp.float32),             # running per-head max
        pltpu.VMEM((Np, 2 * HC), jnp.float32),       # fused [msg | denom] accumulator
    ]

    # advisory cost estimate so XLA schedules the per-layer custom calls sensibly
    flops = int(
        2 * Np * din_n * 3 * HC
        + 2 * Ep * Np * 3 * HC                       # one-hot gathers
        + 2 * Np * Ep * 2 * HC                       # fused scatter
        + 2 * Ep * ew * HC                           # f_fij
        + 2 * Ep * HC * (H + ew)                     # logits + edge head-mean
        + 2 * Ep * H * HC                            # p -> p_rep widening
        + 2 * Np * HC * ew + 2 * Np * ew * dout)     # finalize
    transcendentals = int(Ep * (H + ew) + Np * ew)
    bytes_accessed = int(
        nfeat.size * 4 + efeat.size * 2
        + src_oh.size * 2 + dst_oh.size * 2 + dst_oht.size * 2
        + Np * dout * 4 + Ep * ew * 2
        + sum(prm[k].size * prm[k].dtype.itemsize
              for k in ("w_cat", "b_cat", "w_fij", "a_bd", "rep",
                        "mean_pad", "w_out", "b_out")))

    # TODO(synk): on v7x, split the edge-block axis across the two TensorCores with
    # per-core partial accumulators + a tiny combine kernel for another ~2x.
    return pl.pallas_call(
        kern,
        grid=(n_blocks,),
        in_specs=in_specs,
        out_specs=out_specs,
        out_shape=out_shape,
        scratch_shapes=scratch,
        compiler_params=pltpu.CompilerParams(
            dimension_semantics=("arbitrary",),      # node state carried across E blocks
            vmem_limit_bytes=48 * 1024 * 1024),      # fits v7x's 64 MiB with headroom
        cost_estimate=pl.CostEstimate(flops=flops,
                                      transcendentals=transcendentals,
                                      bytes_accessed=bytes_accessed),
    )(nfeat, efeat, src_oh, dst_oh, dst_oht, prm["w_cat"], prm["b_cat"],
      prm["w_fij"], prm["a_bd"], prm["rep"], prm["mean_pad"],
      prm["w_out"], prm["b_out"])


# ----------------------------------------------------------------------------
# Parameters (deterministic synthetic init) and host-side weight preparation
# ----------------------------------------------------------------------------
def init_params(key, l0_in, num_edge_features, l0_out, num_layers, n_heads, num_channels):
    def lin(k, din, dout):
        kw, kb = jax.random.split(k)
        w = jax.random.normal(kw, (din, dout), jnp.float32) / np.sqrt(din)
        b = 0.01 * jax.random.normal(kb, (1, dout), jnp.float32)
        return w, b

    keys = jax.random.split(key, 3 + num_layers)
    p = {}
    p["w0"], p["b0"] = lin(keys[0], l0_in, num_channels)                 # initial_linear
    p["w0e"], p["b0e"] = lin(keys[1], num_edge_features, num_channels)   # initial_linear_edge
    p["wf"], p["bf"] = lin(keys[2], num_channels, l0_out)                # final_linear
    p["layers"] = []
    hc = n_heads * num_channels
    for i in range(num_layers):
        lk = jax.random.split(keys[3 + i], 6)
        layer = {
            "w_ni":   jax.random.normal(lk[0], (num_channels, hc), jnp.float32) / np.sqrt(num_channels),
            "w_nj":   jax.random.normal(lk[1], (num_channels, hc), jnp.float32) / np.sqrt(num_channels),
            "w_fij":  jax.random.normal(lk[2], (num_channels, hc), jnp.float32) / np.sqrt(num_channels),
            "w_node": jax.random.normal(lk[3], (num_channels, hc), jnp.float32) / np.sqrt(num_channels),
            "b_node": jnp.zeros((1, hc), jnp.float32),
            "attn":   jax.random.normal(lk[4], (n_heads, num_channels), jnp.float32) / np.sqrt(num_channels),
            "bias_e": 0.01 * jax.random.normal(lk[5], (1, hc), jnp.float32),
        }
        p["layers"].append(layer)
    return p


def prepare_params(params, n_heads, num_channels):
    """Host-side weight folding / lane-dense layout prep for the Pallas layer kernel."""
    H, C = n_heads, num_channels
    HC = H * C
    EW = HC                                     # lane-dense edge-stream width
    f32, bf16 = jnp.float32, jnp.bfloat16
    eye_h = jnp.eye(H, dtype=f32)
    rep = jnp.repeat(eye_h, C, axis=1)                               # [H, HC]
    mean_m = jnp.tile(jnp.eye(C, dtype=f32), (H, 1)) / float(H)      # [HC, C]
    mean_pad = jnp.pad(mean_m, ((0, 0), (0, EW - C))).astype(bf16)   # [HC, EW]
    zeros_hc = jnp.zeros((1, HC), f32)

    layers = params["layers"]
    n_layers = len(layers)
    prepared = []
    for i, lp in enumerate(layers):
        if i == 0:
            # fold initial_linear / initial_linear_edge into layer-0 projections
            w_ni = params["w0"] @ lp["w_ni"];    b_ni = params["b0"] @ lp["w_ni"]
            w_nj = params["w0"] @ lp["w_nj"];    b_nj = params["b0"] @ lp["w_nj"]
            w_nd = params["w0"] @ lp["w_node"];  b_nd = lp["b_node"] + params["b0"] @ lp["w_node"]
            w_fij = params["w0e"] @ lp["w_fij"]; b_fij = params["b0e"] @ lp["w_fij"]
        else:
            w_ni, b_ni = lp["w_ni"], zeros_hc
            w_nj, b_nj = lp["w_nj"], zeros_hc
            w_nd, b_nd = lp["w_node"], lp["b_node"]
            w_fij, b_fij = lp["w_fij"], zeros_hc
        # every per-edge constant offset (EGATConv bias + folded initial biases)
        # lands in the dst-gathered column, so the kernel does no extra adds.
        b_nj_total = b_nj + lp["bias_e"] + b_fij
        w_cat = jnp.concatenate([w_ni, w_nd, w_nj], axis=1)          # [Din, 3HC]
        b_cat = jnp.concatenate([b_ni, b_nd, b_nj_total], axis=1)    # [1, 3HC]
        assert w_fij.shape[0] <= EW
        w_fij_pad = jnp.pad(w_fij, ((0, EW - w_fij.shape[0]), (0, 0))).astype(bf16)
        a_bd = jnp.einsum("hc,hk->hck", lp["attn"], eye_h).reshape(HC, H).astype(bf16)
        if i == n_layers - 1:
            w_out, b_out = params["wf"], params["bf"]                # fold final_linear
        else:
            w_out = jnp.eye(C, dtype=f32)
            b_out = jnp.zeros((1, C), f32)
        w_out_pad = jnp.pad(w_out, ((0, EW - C), (0, 0)))            # [EW, Dout]
        prepared.append(dict(w_cat=w_cat, b_cat=b_cat, w_fij=w_fij_pad, a_bd=a_bd,
                             rep=rep, mean_pad=mean_pad, w_out=w_out_pad, b_out=b_out))
    return prepared


# ----------------------------------------------------------------------------
# Forward + host-side graph glue
# ----------------------------------------------------------------------------
def ligand_gat_forward(prepared_layers, node_attr, edge_attr, src, dst,
                       n_heads, num_channels, drop_out=False, drop_key=None,
                       edge_tile=EDGE_TILE):
    n = node_attr.shape[0]
    e, de = edge_attr.shape
    HC = n_heads * num_channels
    EW = HC
    assert de <= EW

    if drop_out:
        # TODO(synk): torch Dropout uses torch's RNG stream; deterministic JAX dropout here.
        k1, k2 = jax.random.split(drop_key)
        keep = 0.9
        node_attr = node_attr * jax.random.bernoulli(k1, keep, node_attr.shape) / keep
        edge_attr = edge_attr * jax.random.bernoulli(k2, keep, edge_attr.shape) / keep

    # pad node rows to a sublane multiple; padded nodes have no edges.
    n_pad = ((n + 7) // 8) * 8
    nfeat = jnp.pad(node_attr, ((0, n_pad - n), (0, 0)))

    # pad edges to a multiple of the edge tile; padded edges have all-zero one-hot
    # rows/columns, so they scatter nothing and receive nothing.
    e_pad = ((e + edge_tile - 1) // edge_tile) * edge_tile
    pad_e = e_pad - e

    # bf16 one-hot gather matrices + one pre-transposed scatter matrix (built once,
    # reused by every layer).  For ligand-sized graphs (N ~ tens of atoms) the dense
    # one-hot matmul is MXU-friendly and cheaper than per-row DMA.
    # TODO(synk): for large-N graphs replace with a scalar-prefetched index-driven
    # gather/scatter (PrefetchScalarGridSpec + SMEM edge indices).
    src_i = jnp.asarray(src, jnp.int32)
    dst_i = jnp.asarray(dst, jnp.int32)
    src_oh = jax.nn.one_hot(src_i, n_pad, dtype=jnp.bfloat16)        # [E, Np]
    dst_oh = jax.nn.one_hot(dst_i, n_pad, dtype=jnp.bfloat16)        # [E, Np]
    if pad_e:
        zrow = jnp.zeros((pad_e, n_pad), jnp.bfloat16)
        src_oh = jnp.concatenate([src_oh, zrow], axis=0)
        dst_oh = jnp.concatenate([dst_oh, zrow], axis=0)
    dst_oht = dst_oh.T                                               # [Np, Ep]

    # lane-dense layer-0 edge stream: pad raw edge features out to EW lanes.
    efeat = jnp.pad(edge_attr.astype(jnp.bfloat16), ((0, pad_e), (0, EW - de)))

    for prm in prepared_layers:
        nfeat, efeat = pallas_egat_layer(nfeat, efeat, src_oh, dst_oh, dst_oht, prm,
                                         n_heads, num_channels, edge_tile)
    return nfeat[:n]    # last layer already applied the folded final linear


def remove_isolated_nodes(node_attr, src, dst):
    # host-side glue mirroring: Glig.remove_nodes(isolated)
    n = node_attr.shape[0]
    in_deg = np.bincount(dst, minlength=n)
    out_deg = np.bincount(src, minlength=n)
    keep = ~((in_deg == 0) & (out_deg == 0))
    new_idx = np.cumsum(keep) - 1
    node_attr = node_attr[np.asarray(keep)]
    src = new_idx[src]
    dst = new_idx[dst]
    return node_attr, src.astype(np.int32), dst.astype(np.int32)


# ----------------------------------------------------------------------------
if __name__ == "__main__":
    # module config
    l0_in_features, num_edge_features, l0_out_features = 16, 8, 8
    num_layers, n_heads, num_channels = 2, 4, 32     # H*C = 128 (lane-dense)

    # small synthetic molecular-like graph: ring + two chord rings, both directions
    N = 60
    ar = np.arange(N)
    srcs, dsts = [], []
    for step in (1, 2, 5):
        srcs += [ar, (ar + step) % N]
        dsts += [(ar + step) % N, ar]
    src = np.concatenate(srcs).astype(np.int32)
    dst = np.concatenate(dsts).astype(np.int32)
    E = src.shape[0]    # 360 edges -> padded to 512 -> two 256-edge blocks

    key = jax.random.PRNGKey(0)
    k_node, k_edge, k_param = jax.random.split(key, 3)
    node_attr = jax.random.normal(k_node, (N, l0_in_features), jnp.float32)
    edge_attr = jax.random.normal(k_edge, (E, num_edge_features), jnp.float32)

    # isolated-node removal (no-op for this graph, kept for fidelity)
    node_np, src, dst = remove_isolated_nodes(np.asarray(node_attr), src, dst)
    node_attr = jnp.asarray(node_np)

    params = init_params(k_param, l0_in_features, num_edge_features,
                         l0_out_features, num_layers, n_heads, num_channels)
    prepared = prepare_params(params, n_heads, num_channels)

    out = ligand_gat_forward(prepared, node_attr, edge_attr, src, dst,
                             n_heads, num_channels, drop_out=False)
    out = jax.block_until_ready(out)
    assert out.shape == (node_attr.shape[0], l0_out_features)
    assert bool(jnp.all(jnp.isfinite(out)))
    print("KERNEL_OK")
</pallas_src>

<mosaic_0001>
module attributes {stable_mosaic.version = 11 : i64} {
  func.func @egat_layer_kernel(%arg0: i32, %arg1: memref<64x16xf32, #tpu.memory_space<vmem>>, %arg2: memref<256x128xbf16, #tpu.memory_space<vmem>>, %arg3: memref<256x64xbf16, #tpu.memory_space<vmem>>, %arg4: memref<256x64xbf16, #tpu.memory_space<vmem>>, %arg5: memref<64x256xbf16, #tpu.memory_space<vmem>>, %arg6: memref<16x384xf32, #tpu.memory_space<vmem>>, %arg7: memref<1x384xf32, #tpu.memory_space<vmem>>, %arg8: memref<128x128xbf16, #tpu.memory_space<vmem>>, %arg9: memref<128x4xbf16, #tpu.memory_space<vmem>>, %arg10: memref<4x128xf32, #tpu.memory_space<vmem>>, %arg11: memref<128x128xbf16, #tpu.memory_space<vmem>>, %arg12: memref<128x32xf32, #tpu.memory_space<vmem>>, %arg13: memref<1x32xf32, #tpu.memory_space<vmem>>, %arg14: memref<64x32xf32, #tpu.memory_space<vmem>>, %arg15: memref<256x128xbf16, #tpu.memory_space<vmem>>, %arg16: memref<64x256xbf16, #tpu.memory_space<vmem>>, %arg17: memref<64x128xbf16, #tpu.memory_space<vmem>>, %arg18: memref<1x4xf32, #tpu.memory_space<vmem>>, %arg19: memref<64x256xf32, #tpu.memory_space<vmem>>) attributes {dimension_semantics = [#tpu.dimension_semantics<arbitrary>], iteration_bounds = array<i64: 2>, scalar_prefetch = 0 : i64, scratch_operands = 4 : i64, tpu.core_type = #tpu.core_type<tc>, window_params = [{pipeline_mode = #tpu.pipeline_mode<synchronous>, transform_indices = @transform_0, window_bounds = array<i64: 64, 16>}, {transform_indices = @transform_1, window_bounds = array<i64: 256, 128>}, {transform_indices = @transform_2, window_bounds = array<i64: 256, 64>}, {transform_indices = @transform_3, window_bounds = array<i64: 256, 64>}, {transform_indices = @transform_4, window_bounds = array<i64: 64, 256>}, {pipeline_mode = #tpu.pipeline_mode<synchronous>, transform_indices = @transform_5, window_bounds = array<i64: 16, 384>}, {pipeline_mode = #tpu.pipeline_mode<synchronous>, transform_indices = @transform_6, window_bounds = array<i64: 1, 384>}, {pipeline_mode = #tpu.pipeline_mode<synchronous>, transform_indices = @transform_7, window_bounds = array<i64: 128, 128>}, {pipeline_mode = #tpu.pipeline_mode<synchronous>, transform_indices = @transform_8, window_bounds = array<i64: 128, 4>}, {pipeline_mode = #tpu.pipeline_mode<synchronous>, transform_indices = @transform_9, window_bounds = array<i64: 4, 128>}, {pipeline_mode = #tpu.pipeline_mode<synchronous>, transform_indices = @transform_10, window_bounds = array<i64: 128, 128>}, {pipeline_mode = #tpu.pipeline_mode<synchronous>, transform_indices = @transform_11, window_bounds = array<i64: 128, 32>}, {pipeline_mode = #tpu.pipeline_mode<synchronous>, transform_indices = @transform_12, window_bounds = array<i64: 1, 32>}, {pipeline_mode = #tpu.pipeline_mode<synchronous>, transform_indices = @transform_13, window_bounds = array<i64: 64, 32>}, {transform_indices = @transform_14, window_bounds = array<i64: 256, 128>}]} {
    %c0_i32 = arith.constant 0 : i32
    %0 = arith.cmpi eq, %arg0, %c0_i32 : i32
    %1 = arith.extui %0 : i1 to i32
    %c0_i32_0 = arith.constant 0 : i32
    %2 = arith.cmpi ne, %1, %c0_i32_0 : i32
    scf.if %2 {
      %c0_54 = arith.constant 0 : index
      %c0_55 = arith.constant 0 : index
      %92 = vector.load %arg1[%c0_54, %c0_55] : memref<64x16xf32, #tpu.memory_space<vmem>>, vector<64x16xf32>
      %c0_56 = arith.constant 0 : index
      %c0_57 = arith.constant 0 : index
      %93 = vector.load %arg6[%c0_56, %c0_57] : memref<16x384xf32, #tpu.memory_space<vmem>>, vector<16x384xf32>
      %cst_58 = arith.constant dense<0.000000e+00> : vector<64x384xf32>
      %94 = tpu.matmul %92, %93, %cst_58 {dimension_numbers = #tpu.dot_dimension_numbers<[1], [0], [0], [1], [0, 0, 1, 1], [], []>} : vector<64x16xf32>, vector<16x384xf32>, vector<64x384xf32> -> vector<64x384xf32>
      %c0_59 = arith.constant 0 : index
      %c0_60 = arith.constant 0 : index
      %95 = vector.load %arg7[%c0_59, %c0_60] : memref<1x384xf32, #tpu.memory_space<vmem>>, vector<1x384xf32>
      %96 = vector.broadcast %95 : vector<1x384xf32> to vector<64x384xf32>
      %97 = arith.addf %94, %96 : vector<64x384xf32>
      %98 = vector.extract_strided_slice %97 {offsets = [0, 0], sizes = [64, 256], strides = [1, 1]} : vector<64x384xf32> to vector<64x256xf32>
      %99 = arith.truncf %98 : vector<64x256xf32> to vector<64x256xbf16>
      %c0_61 = arith.constant 0 : index
      %c0_62 = arith.constant 0 : index
      %100 = vector.load %arg16[%c0_61, %c0_62] : memref<64x256xbf16, #tpu.memory_space<vmem>>, vector<64x256xbf16>
      tpu.vector_store %arg16[%c0_61, %c0_62], %99 {strides = array<i32>} : memref<64x256xbf16, #tpu.memory_space<vmem>>, vector<64x256xbf16>,
      %101 = vector.extract_strided_slice %97 {offsets = [0, 256], sizes = [64, 128], strides = [1, 1]} : vector<64x384xf32> to vector<64x128xf32>
      %102 = arith.truncf %101 : vector<64x128xf32> to vector<64x128xbf16>
      %c0_63 = arith.constant 0 : index
      %c0_64 = arith.constant 0 : index
      %103 = vector.load %arg17[%c0_63, %c0_64] : memref<64x128xbf16, #tpu.memory_space<vmem>>, vector<64x128xbf16>
      tpu.vector_store %arg17[%c0_63, %c0_64], %102 {strides = array<i32>} : memref<64x128xbf16, #tpu.memory_space<vmem>>, vector<64x128xbf16>,
      %cst_65 = arith.constant -1.000000e+30 : f32
      %104 = vector.broadcast %cst_65 : f32 to vector<1x4xf32>
      %c0_66 = arith.constant 0 : index
      %c0_67 = arith.constant 0 : index
      %105 = vector.load %arg18[%c0_66, %c0_67] : memref<1x4xf32, #tpu.memory_space<vmem>>, vector<1x4xf32>
      tpu.vector_store %arg18[%c0_66, %c0_67], %104 {strides = array<i32>} : memref<1x4xf32, #tpu.memory_space<vmem>>, vector<1x4xf32>,
      %cst_68 = arith.constant 0.000000e+00 : f32
      %106 = vector.broadcast %cst_68 : f32 to vector<64x256xf32>
      %c0_69 = arith.constant 0 : index
      %c0_70 = arith.constant 0 : index
      %107 = vector.load %arg19[%c0_69, %c0_70] : memref<64x256xf32, #tpu.memory_space<vmem>>, vector<64x256xf32>
      tpu.vector_store %arg19[%c0_69, %c0_70], %106 {strides = array<i32>} : memref<64x256xf32, #tpu.memory_space<vmem>>, vector<64x256xf32>,
    } else {
    }
    %c0 = arith.constant 0 : index
    %c0_1 = arith.constant 0 : index
    %3 = vector.load %arg3[%c0, %c0_1] : memref<256x64xbf16, #tpu.memory_space<vmem>>, vector<256x64xbf16>
    %c0_2 = arith.constant 0 : index
    %c0_3 = arith.constant 0 : index
    %4 = vector.load %arg4[%c0_2, %c0_3] : memref<256x64xbf16, #tpu.memory_space<vmem>>, vector<256x64xbf16>
    %c0_4 = arith.constant 0 : index
    %c0_5 = arith.constant 0 : index
    %5 = vector.load %arg16[%c0_4, %c0_5] : memref<64x256xbf16, #tpu.memory_space<vmem>>, vector<64x256xbf16>
    %cst = arith.constant dense<0.000000e+00> : vector<256x256xf32>
    %6 = tpu.matmul %3, %5, %cst {dimension_numbers = #tpu.dot_dimension_numbers<[1], [0], [0], [1], [0, 0, 1, 1], [], []>} : vector<256x64xbf16>, vector<64x256xbf16>, vector<256x256xf32> -> vector<256x256xf32>
    %7 = vector.extract_strided_slice %6 {offsets = [0, 0], sizes = [256, 128], strides = [1, 1]} : vector<256x256xf32> to vector<256x128xf32>
    %8 = vector.extract_strided_slice %6 {offsets = [0, 128], sizes = [256, 128], strides = [1, 1]} : vector<256x256xf32> to vector<256x128xf32>
    %c0_6 = arith.constant 0 : index
    %c0_7 = arith.constant 0 : index
    %9 = vector.load %arg17[%c0_6, %c0_7] : memref<64x128xbf16, #tpu.memory_space<vmem>>, vector<64x128xbf16>
    %cst_8 = arith.constant dense<0.000000e+00> : vector<256x128xf32>
    %10 = tpu.matmul %4, %9, %cst_8 {dimension_numbers = #tpu.dot_dimension_numbers<[1], [0], [0], [1], [0, 0, 1, 1], [], []>} : vector<256x64xbf16>, vector<64x128xbf16>, vector<256x128xf32> -> vector<256x128xf32>
    %c0_9 = arith.constant 0 : index
    %c0_10 = arith.constant 0 : index
    %11 = vector.load %arg2[%c0_9, %c0_10] : memref<256x128xbf16, #tpu.memory_space<vmem>>, vector<256x128xbf16>
    %c0_11 = arith.constant 0 : index
    %c0_12 = arith.constant 0 : index
    %12 = vector.load %arg8[%c0_11, %c0_12] : memref<128x128xbf16, #tpu.memory_space<vmem>>, vector<128x128xbf16>
    %cst_13 = arith.constant dense<0.000000e+00> : vector<256x128xf32>
    %13 = tpu.matmul %11, %12, %cst_13 {dimension_numbers = #tpu.dot_dimension_numbers<[1], [0], [0], [1], [0, 0, 1, 1], [], []>} : vector<256x128xbf16>, vector<128x128xbf16>, vector<256x128xf32> -> vector<256x128xf32>
    %14 = arith.addf %7, %10 : vector<256x128xf32>
    %15 = arith.addf %14, %13 : vector<256x128xf32>
    %cst_14 = arith.constant 0.000000e+00 : f32
    %16 = vector.broadcast %cst_14 : f32 to vector<256x128xf32>
    %17 = arith.cmpf ogt, %15, %16 : vector<256x128xf32>
    %cst_15 = arith.constant 0.00999999977 : f32
    %18 = vector.broadcast %cst_15 : f32 to vector<256x128xf32>
    %19 = arith.mulf %18, %15 : vector<256x128xf32>
    %20 = arith.select %17, %15, %19 : vector<256x128xi1>, vector<256x128xf32>
    %21 = arith.truncf %20 : vector<256x128xf32> to vector<256x128xbf16>
    %c0_16 = arith.constant 0 : index
    %c0_17 = arith.constant 0 : index
    %22 = vector.load %arg11[%c0_16, %c0_17] : memref<128x128xbf16, #tpu.memory_space<vmem>>, vector<128x128xbf16>
    %cst_18 = arith.constant dense<0.000000e+00> : vector<256x128xf32>
    %23 = tpu.matmul %21, %22, %cst_18 {dimension_numbers = #tpu.dot_dimension_numbers<[1], [0], [0], [1], [0, 0, 1, 1], [], []>} : vector<256x128xbf16>, vector<128x128xbf16>, vector<256x128xf32> -> vector<256x128xf32>
    %24 = tpu.iota {dimensions = array<i32: 1>} : vector<256x128xi32>
    %c32_i32 = arith.constant 32 : i32
    %25 = vector.broadcast %c32_i32 : i32 to vector<256x128xi32>
    %26 = arith.cmpi slt, %24, %25 : vector<256x128xi32>
    %cst_19 = arith.constant dense<0.000000e+00> : vector<256xf32>
    %27 = vector.multi_reduction <add>, %23, %cst_19 [1] : vector<256x128xf32> to vector<256xf32>
    %28 = vector.shape_cast %27 : vector<256xf32> to vector<256x1xf32>
    %cst_20 = arith.constant 3.125000e-02 : f32
    %29 = vector.broadcast %cst_20 : f32 to vector<256x1xf32>
    %30 = arith.mulf %28, %29 : vector<256x1xf32>
    %31 = vector.broadcast %30 : vector<256x1xf32> to vector<256x128xf32>
    %32 = arith.subf %23, %31 : vector<256x128xf32>
    %cst_21 = arith.constant 0.000000e+00 : f32
    %33 = vector.broadcast %cst_21 : f32 to vector<256x128xf32>
    %34 = arith.select %26, %32, %33 : vector<256x128xi1>, vector<256x128xf32>
    %35 = arith.mulf %34, %34 : vector<256x128xf32>
    %cst_22 = arith.constant dense<0.000000e+00> : vector<256xf32>
    %36 = vector.multi_reduction <add>, %35, %cst_22 [1] : vector<256x128xf32> to vector<256xf32>
    %37 = vector.shape_cast %36 : vector<256xf32> to vector<256x1xf32>
    %cst_23 = arith.constant 3.125000e-02 : f32
    %38 = vector.broadcast %cst_23 : f32 to vector<256x1xf32>
    %39 = arith.mulf %37, %38 : vector<256x1xf32>
    %cst_24 = arith.constant 9.99999974E-6 : f32
    %40 = vector.broadcast %cst_24 : f32 to vector<256x1xf32>
    %41 = arith.addf %39, %40 : vector<256x1xf32>
    %42 = math.rsqrt %41 : vector<256x1xf32>
    %43 = vector.broadcast %42 : vector<256x1xf32> to vector<256x128xf32>
    %44 = arith.mulf %34, %43 : vector<256x128xf32>
    %cst_25 = arith.constant 0.000000e+00 : f32
    %45 = vector.broadcast %cst_25 : f32 to vector<256x128xf32>
    %46 = arith.cmpf ogt, %44, %45 : vector<256x128xf32>
    %47 = math.exp %44 : vector<256x128xf32>
    %cst_26 = arith.constant 1.000000e+00 : f32
    %48 = vector.broadcast %cst_26 : f32 to vector<256x128xf32>
    %49 = arith.subf %47, %48 : vector<256x128xf32>
    %50 = arith.select %46, %44, %49 : vector<256x128xi1>, vector<256x128xf32>
    %51 = arith.truncf %50 : vector<256x128xf32> to vector<256x128xbf16>
    %c0_27 = arith.constant 0 : index
    %c0_28 = arith.constant 0 : index
    %52 = vector.load %arg15[%c0_27, %c0_28] : memref<256x128xbf16, #tpu.memory_space<vmem>>, vector<256x128xbf16>
    tpu.vector_store %arg15[%c0_27, %c0_28], %51 {strides = array<i32>} : memref<256x128xbf16, #tpu.memory_space<vmem>>, vector<256x128xbf16>,
    %c0_29 = arith.constant 0 : index
    %c0_30 = arith.constant 0 : index
    %53 = vector.load %arg9[%c0_29, %c0_30] : memref<128x4xbf16, #tpu.memory_space<vmem>>, vector<128x4xbf16>
    %cst_31 = arith.constant dense<0.000000e+00> : vector<256x4xf32>
    %54 = tpu.matmul %21, %53, %cst_31 {dimension_numbers = #tpu.dot_dimension_numbers<[1], [0], [0], [1], [0, 0, 1, 1], [], []>} : vector<256x128xbf16>, vector<128x4xbf16>, vector<256x4xf32> -> vector<256x4xf32>
    %55 = arith.extf %4 : vector<256x64xbf16> to vector<256x64xf32>
    %cst_32 = arith.constant dense<0.000000e+00> : vector<256xf32>
    %56 = vector.multi_reduction <add>, %55, %cst_32 [1] : vector<256x64xf32> to vector<256xf32>
    %57 = vector.shape_cast %56 : vector<256xf32> to vector<256x1xf32>
    %cst_33 = arith.constant 0.000000e+00 : f32
    %58 = vector.broadcast %cst_33 : f32 to vector<256x1xf32>
    %59 = arith.cmpf ogt, %57, %58 : vector<256x1xf32>
    %cst_34 = arith.constant -1.000000e+30 : f32
    %60 = vector.shape_cast %59 : vector<256x1xi1> to vector<256x1xi1>
    %61 = vector.broadcast %60 : vector<256x1xi1> to vector<256x4xi1>
    %62 = vector.broadcast %cst_34 : f32 to vector<256x4xf32>
    %63 = arith.select %61, %54, %62 : vector<256x4xi1>, vector<256x4xf32>
    %cst_35 = arith.constant dense<0xFF800000> : vector<4xf32>
    %64 = vector.multi_reduction <maximumf>, %63, %cst_35 [0] : vector<256x4xf32> to vector<4xf32>
    %65 = vector.shape_cast %64 : vector<4xf32> to vector<1x4xf32>
    %c0_36 = arith.constant 0 : index
    %c0_37 = arith.constant 0 : index
    %66 = vector.load %arg18[%c0_36, %c0_37] : memref<1x4xf32, #tpu.memory_space<vmem>>, vector<1x4xf32>
    %67 = arith.maximumf %66, %65 : vector<1x4xf32>
    %68 = arith.subf %66, %67 : vector<1x4xf32>
    %69 = math.exp %68 : vector<1x4xf32>
    %c0_38 = arith.constant 0 : index
    %c0_39 = arith.constant 0 : index
    %70 = vector.load %arg18[%c0_38, %c0_39] : memref<1x4xf32, #tpu.memory_space<vmem>>, vector<1x4xf32>
    tpu.vector_store %arg18[%c0_38, %c0_39], %67 {strides = array<i32>} : memref<1x4xf32, #tpu.memory_space<vmem>>, vector<1x4xf32>,
    %71 = vector.broadcast %67 : vector<1x4xf32> to vector<256x4xf32>
    %72 = arith.subf %63, %71 : vector<256x4xf32>
    %73 = math.exp %72 : vector<256x4xf32>
    %c0_40 = arith.constant 0 : index
    %c0_41 = arith.constant 0 : index
    %74 = vector.load %arg10[%c0_40, %c0_41] : memref<4x128xf32, #tpu.memory_space<vmem>>, vector<4x128xf32>
    %cst_42 = arith.constant dense<0.000000e+00> : vector<256x128xf32>
    %75 = tpu.matmul %73, %74, %cst_42 {dimension_numbers = #tpu.dot_dimension_numbers<[1], [0], [0], [1], [0, 0, 1, 1], [], []>} : vector<256x4xf32>, vector<4x128xf32>, vector<256x128xf32> -> vector<256x128xf32>
    %76 = arith.mulf %75, %8 : vector<256x128xf32>
    %77 = tpu.concatenate %76, %75 in 1 : vector<256x128xf32>, vector<256x128xf32> -> vector<256x256xf32>
    %78 = arith.truncf %77 : vector<256x256xf32> to vector<256x256xbf16>
    %c0_43 = arith.constant 0 : index
    %c0_44 = arith.constant 0 : index
    %79 = vector.load %arg5[%c0_43, %c0_44] : memref<64x256xbf16, #tpu.memory_space<vmem>>, vector<64x256xbf16>
    %cst_45 = arith.constant dense<0.000000e+00> : vector<64x256xf32>
    %80 = tpu.matmul %79, %78, %cst_45 {dimension_numbers = #tpu.dot_dimension_numbers<[1], [0], [0], [1], [0, 0, 1, 1], [], []>} : vector<64x256xbf16>, vector<256x256xbf16>, vector<64x256xf32> -> vector<64x256xf32>
    %c0_46 = arith.constant 0 : index
    %c0_47 = arith.constant 0 : index
    %81 = vector.load %arg10[%c0_46, %c0_47] : memref<4x128xf32, #tpu.memory_space<vmem>>, vector<4x128xf32>
    %cst_48 = arith.constant dense<0.000000e+00> : vector<1x128xf32>
    %82 = tpu.matmul %69, %81, %cst_48 {dimension_numbers = #tpu.dot_dimension_numbers<[1], [0], [0], [1], [0, 0, 1, 1], [], []>} : vector<1x4xf32>, vector<4x128xf32>, vector<1x128xf32> -> vector<1x128xf32>
    %c0_49 = arith.constant 0 : index
    %c0_50 = arith.constant 0 : index
    %83 = vector.load %arg19[%c0_49, %c0_50] : memref<64x256xf32, #tpu.memory_space<vmem>>, vector<64x256xf32>
    %84 = tpu.concatenate %82, %82 in 1 : vector<1x128xf32>, vector<1x128xf32> -> vector<1x256xf32>
    %85 = vector.broadcast %84 : vector<1x256xf32> to vector<64x256xf32>
    %86 = arith.mulf %83, %85 : vector<64x256xf32>
    %87 = arith.addf %86, %80 : vector<64x256xf32>
    %c0_51 = arith.constant 0 : index
    %c0_52 = arith.constant 0 : index
    %88 = vector.load %arg19[%c0_51, %c0_52] : memref<64x256xf32, #tpu.memory_space<vmem>>, vector<64x256xf32>
    tpu.vector_store %arg19[%c0_51, %c0_52], %87 {strides = array<i32>} : memref<64x256xf32, #tpu.memory_space<vmem>>, vector<64x256xf32>,
    %c1_i32 = arith.constant 1 : i32
    %89 = arith.cmpi eq, %arg0, %c1_i32 : i32
    %90 = arith.extui %89 : i1 to i32
    %c0_i32_53 = arith.constant 0 : i32
    %91 = arith.cmpi ne, %90, %c0_i32_53 : i32
    scf.if %91 {
      %c0_54 = arith.constant 0 : index
      %c0_55 = arith.constant 0 : index
      %92 = vector.load %arg19[%c0_54, %c0_55] : memref<64x256xf32, #tpu.memory_space<vmem>>, vector<64x256xf32>
      %93 = vector.extract_strided_slice %92 {offsets = [0, 128], sizes = [64, 128], strides = [1, 1]} : vector<64x256xf32> to vector<64x128xf32>
      %cst_56 = arith.constant 1.000000e-30 : f32
      %94 = vector.broadcast %cst_56 : f32 to vector<64x128xf32>
      %95 = arith.maximumf %93, %94 : vector<64x128xf32>
      %96 = vector.extract_strided_slice %92 {offsets = [0, 0], sizes = [64, 128], strides = [1, 1]} : vector<64x256xf32> to vector<64x128xf32>
      %97 = arith.divf %96, %95 : vector<64x128xf32>
      %98 = arith.truncf %97 : vector<64x128xf32> to vector<64x128xbf16>
      %c0_57 = arith.constant 0 : index
      %c0_58 = arith.constant 0 : index
      %99 = vector.load %arg11[%c0_57, %c0_58] : memref<128x128xbf16, #tpu.memory_space<vmem>>, vector<128x128xbf16>
      %cst_59 = arith.constant dense<0.000000e+00> : vector<64x128xf32>
      %100 = tpu.matmul %98, %99, %cst_59 {dimension_numbers = #tpu.dot_dimension_numbers<[1], [0], [0], [1], [0, 0, 1, 1], [], []>} : vector<64x128xbf16>, vector<128x128xbf16>, vector<64x128xf32> -> vector<64x128xf32>
      %101 = tpu.iota {dimensions = array<i32: 1>} : vector<64x128xi32>
      %c32_i32_60 = arith.constant 32 : i32
      %102 = vector.broadcast %c32_i32_60 : i32 to vector<64x128xi32>
      %103 = arith.cmpi slt, %101, %102 : vector<64x128xi32>
      %cst_61 = arith.constant dense<0.000000e+00> : vector<64xf32>
      %104 = vector.multi_reduction <add>, %100, %cst_61 [1] : vector<64x128xf32> to vector<64xf32>
      %105 = vector.shape_cast %104 : vector<64xf32> to vector<64x1xf32>
      %cst_62 = arith.constant 3.125000e-02 : f32
      %106 = vector.broadcast %cst_62 : f32 to vector<64x1xf32>
      %107 = arith.mulf %105, %106 : vector<64x1xf32>
      %108 = vector.broadcast %107 : vector<64x1xf32> to vector<64x128xf32>
      %109 = arith.subf %100, %108 : vector<64x128xf32>
      %cst_63 = arith.constant 0.000000e+00 : f32
      %110 = vector.broadcast %cst_63 : f32 to vector<64x128xf32>
      %111 = arith.select %103, %109, %110 : vector<64x128xi1>, vector<64x128xf32>
      %112 = arith.mulf %111, %111 : vector<64x128xf32>
      %cst_64 = arith.constant dense<0.000000e+00> : vector<64xf32>
      %113 = vector.multi_reduction <add>, %112, %cst_64 [1] : vector<64x128xf32> to vector<64xf32>
      %114 = vector.shape_cast %113 : vector<64xf32> to vector<64x1xf32>
      %cst_65 = arith.constant 3.125000e-02 : f32
      %115 = vector.broadcast %cst_65 : f32 to vector<64x1xf32>
      %116 = arith.mulf %114, %115 : vector<64x1xf32>
      %cst_66 = arith.constant 9.99999974E-6 : f32
      %117 = vector.broadcast %cst_66 : f32 to vector<64x1xf32>
      %118 = arith.addf %116, %117 : vector<64x1xf32>
      %119 = math.rsqrt %118 : vector<64x1xf32>
      %120 = vector.broadcast %119 : vector<64x1xf32> to vector<64x128xf32>
      %121 = arith.mulf %111, %120 : vector<64x128xf32>
      %cst_67 = arith.constant 0.000000e+00 : f32
      %122 = vector.broadcast %cst_67 : f32 to vector<64x128xf32>
      %123 = arith.cmpf ogt, %121, %122 : vector<64x128xf32>
      %124 = math.exp %121 : vector<64x128xf32>
      %cst_68 = arith.constant 1.000000e+00 : f32
      %125 = vector.broadcast %cst_68 : f32 to vector<64x128xf32>
      %126 = arith.subf %124, %125 : vector<64x128xf32>
      %127 = arith.select %123, %121, %126 : vector<64x128xi1>, vector<64x128xf32>
      %c0_69 = arith.constant 0 : index
      %c0_70 = arith.constant 0 : index
      %128 = vector.load %arg12[%c0_69, %c0_70] : memref<128x32xf32, #tpu.memory_space<vmem>>, vector<128x32xf32>
      %cst_71 = arith.constant dense<0.000000e+00> : vector<64x32xf32>
      %129 = tpu.matmul %127, %128, %cst_71 {dimension_numbers = #tpu.dot_dimension_numbers<[1], [0], [0], [1], [0, 0, 1, 1], [], []>} : vector<64x128xf32>, vector<128x32xf32>, vector<64x32xf32> -> vector<64x32xf32>
      %c0_72 = arith.constant 0 : index
      %c0_73 = arith.constant 0 : index
      %130 = vector.load %arg13[%c0_72, %c0_73] : memref<1x32xf32, #tpu.memory_space<vmem>>, vector<1x32xf32>
      %131 = vector.broadcast %130 : vector<1x32xf32> to vector<64x32xf32>
      %132 = arith.addf %129, %131 : vector<64x32xf32>
      %c0_74 = arith.constant 0 : index
      %c0_75 = arith.constant 0 : index
      %133 = vector.load %arg14[%c0_74, %c0_75] : memref<64x32xf32, #tpu.memory_space<vmem>>, vector<64x32xf32>
      tpu.vector_store %arg14[%c0_74, %c0_75], %132 {strides = array<i32>} : memref<64x32xf32, #tpu.memory_space<vmem>>, vector<64x32xf32>,
    } else {
    }
    return
  }
  func.func @transform_0(%arg0: i32) -> (i32, i32) {
    %c0_i32 = arith.constant 0 : i32
    %c0_i32_0 = arith.constant 0 : i32
    %c0_i32_1 = arith.constant 0 : i32
    return %c0_i32, %c0_i32_0 : i32, i32
  }
  func.func @transform_1(%arg0: i32) -> (i32, i32) {
    %c0_i32 = arith.constant 0 : i32
    %c0_i32_0 = arith.constant 0 : i32
    return %arg0, %c0_i32 : i32, i32
  }
  func.func @transform_2(%arg0: i32) -> (i32, i32) {
    %c0_i32 = arith.constant 0 : i32
    %c0_i32_0 = arith.constant 0 : i32
    return %arg0, %c0_i32 : i32, i32
  }
  func.func @transform_3(%arg0: i32) -> (i32, i32) {
    %c0_i32 = arith.constant 0 : i32
    %c0_i32_0 = arith.constant 0 : i32
    return %arg0, %c0_i32 : i32, i32
  }
  func.func @transform_4(%arg0: i32) -> (i32, i32) {
    %c0_i32 = arith.constant 0 : i32
    %c0_i32_0 = arith.constant 0 : i32
    return %c0_i32, %arg0 : i32, i32
  }
  func.func @transform_5(%arg0: i32) -> (i32, i32) {
    %c0_i32 = arith.constant 0 : i32
    %c0_i32_0 = arith.constant 0 : i32
    %c0_i32_1 = arith.constant 0 : i32
    return %c0_i32, %c0_i32_0 : i32, i32
  }
  func.func @transform_6(%arg0: i32) -> (i32, i32) {
    %c0_i32 = arith.constant 0 : i32
    %c0_i32_0 = arith.constant 0 : i32
    %c0_i32_1 = arith.constant 0 : i32
    return %c0_i32, %c0_i32_0 : i32, i32
  }
  func.func @transform_7(%arg0: i32) -> (i32, i32) {
    %c0_i32 = arith.constant 0 : i32
    %c0_i32_0 = arith.constant 0 : i32
    %c0_i32_1 = arith.constant 0 : i32
    return %c0_i32, %c0_i32_0 : i32, i32
  }
  func.func @transform_8(%arg0: i32) -> (i32, i32) {
    %c0_i32 = arith.constant 0 : i32
    %c0_i32_0 = arith.constant 0 : i32
    %c0_i32_1 = arith.constant 0 : i32
    return %c0_i32, %c0_i32_0 : i32, i32
  }
  func.func @transform_9(%arg0: i32) -> (i32, i32) {
    %c0_i32 = arith.constant 0 : i32
    %c0_i32_0 = arith.constant 0 : i32
    %c0_i32_1 = arith.constant 0 : i32
    return %c0_i32, %c0_i32_0 : i32, i32
  }
  func.func @transform_10(%arg0: i32) -> (i32, i32) {
    %c0_i32 = arith.constant 0 : i32
    %c0_i32_0 = arith.constant 0 : i32
    %c0_i32_1 = arith.constant 0 : i32
    return %c0_i32, %c0_i32_0 : i32, i32
  }
  func.func @transform_11(%arg0: i32) -> (i32, i32) {
    %c0_i32 = arith.constant 0 : i32
    %c0_i32_0 = arith.constant 0 : i32
    %c0_i32_1 = arith.constant 0 : i32
    return %c0_i32, %c0_i32_0 : i32, i32
  }
  func.func @transform_12(%arg0: i32) -> (i32, i32) {
    %c0_i32 = arith.constant 0 : i32
    %c0_i32_0 = arith.constant 0 : i32
    %c0_i32_1 = arith.constant 0 : i32
    return %c0_i32, %c0_i32_0 : i32, i32
  }
  func.func @transform_13(%arg0: i32) -> (i32, i32) {
    %c0_i32 = arith.constant 0 : i32
    %c0_i32_0 = arith.constant 0 : i32
    %c0_i32_1 = arith.constant 0 : i32
    return %c0_i32, %c0_i32_0 : i32, i32
  }
  func.func @transform_14(%arg0: i32) -> (i32, i32) {
    %c0_i32 = arith.constant 0 : i32
    %c0_i32_0 = arith.constant 0 : i32
    return %arg0, %c0_i32 : i32, i32
  }
}

</mosaic_0001>

<bundles_post_ra>
// kernel: tpu_custom_call.1
= control target key start
LH: loop header
LB: loop body
LE: loop exit
PB: predicated region body
PF: predicated region fallthrough
CT: control target
= control target key end

     0   :  { %s8712_s0 = inlined_call_operand.vmem [shape: f32[64,16], index: 0, kind: input, shape index: {}]   ;;  %s8713_s1 = inlined_call_operand.vmem [shape: bf16[512,128], index: 1, kind: input, shape index: {}]   ;;  %s8714_s2 = inlined_call_operand.vmem [shape: bf16[512,64], index: 2, kind: input, shape index: {}]   ;;  %s8715_s3 = inlined_call_operand.vmem [shape: bf16[512,64], index: 3, kind: input, shape index: {}]   ;;  %s8716_s4 = inlined_call_operand.vmem [shape: bf16[64,512], index: 4, kind: input, shape index: {}]   ;;  %s8717_s5 = inlined_call_operand.vmem [shape: f32[16,384], index: 5, kind: input, shape index: {}]   ;;  %s8718_s6 = inlined_call_operand.vmem [shape: f32[1,384], index: 6, kind: input, shape index: {}]   ;;  %s8719_s7 = inlined_call_operand.vmem [shape: bf16[128,128], index: 7, kind: input, shape index: {}]   ;;  %s8720_s8 = inlined_call_operand.vmem [shape: bf16[128,4], index: 8, kind: input, shape index: {}]   ;;  %s8721_s9 = inlined_call_operand.vmem [shape: f32[4,128], index: 9, kind: input, shape index: {}]   ;;  %s8722_s10 = inlined_call_operand.vmem [shape: bf16[128,128], index: 10, kind: input, shape index: {}]   ;;  %s8723_s11 = inlined_call_operand.vmem [shape: f32[128,32], index: 11, kind: input, shape index: {}]   ;;  %s8724_s12 = inlined_call_operand.vmem [shape: f32[1,32], index: 12, kind: input, shape index: {}]   ;;  %s8725_s13 = inlined_call_operand.vmem [shape: f32[64,32], index: 13, kind: output, shape index: {0}]   ;;  %s8726_s14 = inlined_call_operand.hbm [shape: bf16[512,128], index: 14, kind: output, shape index: {1}]  }
   0x1   :  { %8772 = sst [smem:[#allocation75_spill]] %s8713_s1 }
   0x2   :  { %8773 = sst [smem:[#allocation76_spill]] %s8716_s4 }
   0x3   :  { %8774 = sst [smem:[#allocation77_spill]] %s8726_s14 }
   0x4   :  { %20 = vsyncpa [#allocation8], 0 }
   0x5   :  { %22 = vsyncpa [#allocation8 + $0x1], 0  ;;  %s6611_s29 = smov 0   ;;  %s6613_s30 = smov 0  }
   0x6   :  { %s6615_s15 = smov 0   ;;  %s6617_s16 = smov 0  }
   0x7 LB: > { %8775 = sst [smem:[#allocation10_spill]] %s6514_s29  ;;  %s6632_s17 = sadd.s32 4294967295, %s6526_s16   ;;  %s6526_s16 = sphi %s6617_s16, %s8991_s16   ;;  %s6522_s15 = sphi %s6615_s15, %s8994_s15   ;;  %s6518_s30 = sphi %s6613_s30, %s8993_s30   ;;  %s6514_s29 = sphi %s6611_s29, %s8992_s29  }
   0x8   : > { %8776 = sst [smem:[#allocation11_spill]] %s6518_s30  ;;  %s5091_s18 = sadd.s32 4294967294, %s6526_s16  }
   0x9   : > { %8777 = sst [smem:[#allocation12_spill]] %s6522_s15  ;;  %s6636_s19 = sadd.s32 1, %s6526_s16  }
   0xa   : > { %8778 = sst [smem:[#allocation13_spill]] %s6526_s16  ;;  %s134_s20 = sadd.s32 1, %s6522_s15 }
   0xb   : > { %8779 = sst [smem:[#allocation14_spill]] %s6636_s19  ;;  %s131_s21 = ssub.s32 %s6526_s16, %s6636_s19 }
   0xc   : > { %p141_p0 = scmp.ne.s32.totalorder %s6522_s15, %s6518_s30  ;;  %p132_p1 = scmp.eq.s32.totalorder %s131_s21, 0 }
   0xd   : > { %p142_p2 = scmp.eq.s32.totalorder %s6526_s16, 0  ;;  %p360_p3 = scmp.eq.s32.totalorder %s6632_s17, 1 }
   0xe   : > { %p365_p4 = scmp.ne.s32.totalorder %s6518_s30, %s6514_s29  ;;  %p366_p7 = scmp.eq.s32.totalorder %s5091_s18, 1 }
   0xf   : > { %s6648_s22 = scalar_select %p132_p1, %s6522_s15, %s134_s20  }
  0x10   : > { %p143_p5 = por %p142_p2, %p141_p0  ;;  %p6650_p6 = por %p360_p3, %p141_p0 }
  0x11   : > { %8780 = sst [smem:[#allocation15_spill]] %s6648_s22  ;;  %p6654_p8 = por %p366_p7, %p365_p4 }
  0x12   : > { %p5093_p9 = scmp.ge.s32.totalorder %s6526_s16, 2 }
  0x13   : > { %s8782_s24 = scalar_select %p6654_p8, 1, 0 }
  0x14   : > { %409 = sbr.rel (%p5093_p9) target bundleno = 39 (0x27), region = 52 }
  0x15   : > { %8783 = sst [smem:[#allocation16_spill]] %s8782_s24 }
  0x19   : > { %439 = sbr.rel (!%p143_p5) target bundleno = 39 (0x27), region = 68  ;;  %s441_s25 = sand.u32 (%p143_p5), 1, %s6522_s15  }
  0x1a   : > { %s5385_s26 = sshll.u32 (%p143_p5), %s6526_s16, 3  ;;  %s5094_s27 = sshll.u32 (%p143_p5), %s441_s25, 6 }
  0x1b   : > { %s8784_s4 = sld [smem:[#allocation76_spill]] (%p143_p5)  ;;  %s443_s18 = scalar_lea.vmem (%p143_p5), [#allocation6], %s5094_s27 }
  0x21   : > { %s446_s21 = scalar_lea.vmem %s8784_s4, %s5385_s26 }
  0x22   : > { %v489_v0 = vld [vmem:[%s446_s21] sm:$0xff]  ;;  %v491_v1 = vld [vmem:[%s446_s21 + $0x10] sm:$0xff] }
  0x23   : > { %v493_v2 = vld [vmem:[%s446_s21 + $0x20] sm:$0xff]  ;;  %490 = vst [vmem:[%s443_s18] sm:$0xff] %v489_v0  ;;  %492 = vst [vmem:[%s443_s18 + $0x8] sm:$0xff] %v491_v1  ;;  %v495_v3 = vld [vmem:[%s446_s21 + $0x30] sm:$0xff] }
  0x24   : > { %494 = vst [vmem:[%s443_s18 + $0x10] sm:$0xff] %v493_v2  ;;  %v497_v4 = vld [vmem:[%s446_s21 + $0x40] sm:$0xff]  ;;  %v499_v5 = vld [vmem:[%s446_s21 + $0x50] sm:$0xff]  ;;  %496 = vst [vmem:[%s443_s18 + $0x18] sm:$0xff] %v495_v3 }
  0x25   : > { %498 = vst [vmem:[%s443_s18 + $0x20] sm:$0xff] %v497_v4  ;;  %500 = vst [vmem:[%s443_s18 + $0x28] sm:$0xff] %v499_v5  ;;  %v501_v6 = vld [vmem:[%s446_s21 + $0x60] sm:$0xff]  ;;  %v503_v7 = vld [vmem:[%s446_s21 + $0x70] sm:$0xff] }
  0x26   : > { %502 = vst [vmem:[%s443_s18 + $0x30] sm:$0xff] %v501_v6  ;;  %504 = vst [vmem:[%s443_s18 + $0x38] sm:$0xff] %v503_v7 }
  0x27 PF: > { %p5097_p10 = scmp.ge.s32.totalorder %s6526_s16, 1  ;;  %p509_p11 = scmp.lt.s32.totalorder %s6526_s16, 3 }
  0x29   : > { %p510_p12 = pnand %p5097_p10, %p509_p11 }
  0x2b   : > { %513 = sbr.rel (%p510_p12) target bundleno = 2213 (0x8a5), region = 106 }
  0x30   : > { %s6669_s25 = sand.u32 1, %s6518_s30   ;;  %s5100_s26 = sshll.u32 %s6632_s17, 5 }
  0x31   : > { %s5098_s27 = sshll.u32 %s6669_s25, 6  ;;  %s5099_s28 = sshll.u32 %s6669_s25, 7 }
  0x32   : > { %p577_p13 = scmp.lt.s32.totalorder %s5100_s26, 63  ;;  %s8785_s1 = sld [smem:[#allocation75_spill]] }
  0x33   : > { %s6689_s29 = scalar_lea.vmem [#allocation6], %s5098_s27  ;;  %s6691_s14 = scalar_lea.vmem [#allocation7], %s5099_s28 }
  0x34   : > { %s8996_s26 = smov (!%p577_p13, %s5100_s26), 63  ;;  %p5106_p0 = scmp.ne.s32.totalorder %s6632_s17, 0 }
  0x35   : > { %s5101_s20 = sshll.u32 %s8996_s26, 2 }
  0x36   : > { %s6682_s19 = scalar_lea.vmem %s8714_s2, %s5101_s20  ;;  %s6687_s24 = scalar_lea.vmem %s8715_s3, %s5101_s20 }
  0x37   : > { %600 = sbr.rel (%p5106_p0) target bundleno = 286 (0x11e), region = 114 }
  0x38   : > { %s6677_s4 = scalar_lea.vmem %s8785_s1, %s5101_s20 }
  0x3c   : > { %v613_v8 = vld [vmem:[%s8717_s5 + $0x20] sm:$0xff]  ;;  %v612_v9 = vld [vmem:[%s8717_s5 + $0x18] sm:$0xff]  ;;  %v610_v10 = vld [vmem:[%s8717_s5 + $0x8] sm:$0xff]  ;;  %v6528_v12 = vmov 0.0   ;;  %vm632_vm0 = vcmask 130048   ;;  %vm971_vm1 = vcmask 24576   ;;  %v617_v24 = vlaneseq }
  0x3d   : > { %685 = vmatprep.subr.mxu0 %v613_v8  ;;  %6049 = vmatprep.subr.mxu1 %v613_v8  ;;  %v609_v11 = vld [vmem:[%s8717_s5] sm:$0xff]  ;;  %973 = vst [vmem:[#allocation5] sm:$0xff] %v6528_v12  ;;  %974 = vst [vmem:[#allocation5 + $0x18] sm:$0xff] %v6528_v12  ;;  %v607_v14 = vld [vmem:[%s8712_s0 + $0x30] sm:$0xff]  ;;  %v6529_v23 = vmov -1e+30  }
  0x3e   : > { %975 = vst [vmem:[#allocation5 + $0x50] sm:$0xff] %v6528_v12  ;;  %976 = vst [vmem:[#allocation5 + $0x60] sm:$0xff] %v6528_v12  ;;  %686 = vmatpush1.msra.mxu0 %v612_v9  ;;  %6051 = vmatpush1.msra.mxu1 %v612_v9  ;;  %v601_v13 = vld [vmem:[%s8712_s0] sm:$0xff]  ;;  %v614_v15 = vld [vmem:[%s8717_s5 + $0x28] sm:$0xff]  ;;  %v618_v25 = vshrl.u32 %v617_v24, 7 }
  0x3f   : > { %977 = vst [vmem:[#allocation5 + $0x68] sm:$0xff] %v6528_v12  ;;  %978 = vst [vmem:[#allocation5 + $0x20] sm:$0xff] %v6528_v12  ;;  %687 = vmatprep.subr.mxu0 %v610_v10  ;;  %6050 = vmatprep.subr.mxu1 %v610_v10  ;;  %v611_v16 = vld [vmem:[%s8717_s5 + $0x10] sm:$0xff]  ;;  %v602_v17 = vld [vmem:[%s8712_s0 + $0x8] sm:$0xff] }
  0x40   : > { %979 = vst [vmem:[#allocation5 + $0x70] sm:$0xff] %v6528_v12  ;;  %980 = vst [vmem:[#allocation5 + $0x10] sm:$0xff] %v6528_v12  ;;  %688 = vmatpush1.msra.mxu0 %v609_v11  ;;  %6052 = vmatpush1.msra.mxu1 %v609_v11  ;;  %v608_v18 = vld [vmem:[%s8712_s0 + $0x38] sm:$0xff]  ;;  %v603_v19 = vld [vmem:[%s8712_s0 + $0x10] sm:$0xff]  ;;  %v619_v26 = vsub.s32 0, %v618_v25  ;;  %v623_v27 = vsub.s32 1, %v618_v25 }
  0x41   : > { %981 = vst [vmem:[#allocation5 + $0x28] sm:$0xff] %v6528_v12  ;;  %982 = vst [vmem:[#allocation5 + $0x40] sm:$0xff] %v6528_v12  ;;  %721 = vmatprep.mubr.f32.mxu0 %v6528_v12  ;;  %757 = vmatprep.mubr.f32.mxu1 %v6528_v12  ;;  %v604_v20 = vld [vmem:[%s8712_s0 + $0x18] sm:$0xff]  ;;  %v605_v21 = vld [vmem:[%s8712_s0 + $0x20] sm:$0xff]  ;;  %v627_v35 = vsub.s32 2, %v618_v25 }
  0x42   : > { %983 = vst [vmem:[#allocation5 + $0x38] sm:$0xff] %v6528_v12  ;;  %984 = vst [vmem:[#allocation5 + $0x8] sm:$0xff] %v6528_v12  ;;  %5107 = vmatmul.mubr.msk.f32.vlgmr.msra.gmra.mxu0 %vm632_vm0, %v601_v13  ;;  %5113 = vmatmul.mubr.msk.f32.vlgmr.msra.gmra.mxu1 %vm632_vm0, %v607_v14  ;;  %v606_v22 = vld [vmem:[%s8712_s0 + $0x28] sm:$0xff]  ;;  %v615_v28 = vld [vmem:[%s8718_s6] sm:$0x7] }
  0x43   : > { %985 = vst [vmem:[#allocation5 + $0x58] sm:$0xff] %v6528_v12  ;;  %986 = vst [vmem:[#allocation5 + $0x48] sm:$0xff] %v6528_v12  ;;  %5726 = vmatprep.subr.mxu1 %v614_v15  ;;  %727 = vmatprep.mubr.f32.mxu0 %v6528_v12  ;;  %v6755_v29 = vrot.slane %v615_v28, %v619_v26  ;;  %v6757_v30 = vrot.slane %v615_v28, %v623_v27 }
  0x44   : > { %987 = vst [vmem:[#allocation5 + $0x78] sm:$0xff] %v6528_v12  ;;  %988 = vst [vmem:[#allocation5 + $0x30] sm:$0xff] %v6528_v12  ;;  %5727 = vmatpush3.msra.mxu1 %v614_v15  ;;  %763 = vmatprep.mubr.f32.mxu1 %v6528_v12  ;;  %v628_v46 = vrot.slane %v615_v28, %v627_v35 }
  0x45   : > { %5728 = vmatprep.subr.mxu1 %v611_v16  ;;  %972 = vst.msk [vmem:[#allocation4] sm:$0x1] %vm971_vm1, %v6529_v23 }
  0x46   : > { %5108 = vmatmul.mubr.msk.f32.gmra.mxu0 %vm632_vm0, %v602_v17  ;;  %5114 = vmatmul.mubr.msk.f32.gmra.mxu1 %vm632_vm0, %v608_v18 }
  0x47   : > { %5729 = vmatpush3.msra.mxu1 %v611_v16  ;;  %733 = vmatprep.mubr.f32.mxu0 %v6528_v12 }
  0x48   : > { %5730 = vmatprep.mubr.msk.f32.mxu1 %vm632_vm0, %v601_v13 }
  0x4a   : > { %5109 = vmatmul.mubr.msk.f32.gmra.mxu0 %vm632_vm0, %v603_v19  ;;  %5731 = vmatmul.mubr.msk.f32.vlgmr.msra.gmra.mxu1 %vm632_vm0, %v602_v17 }
  0x4b   : > { %739 = vmatprep.mubr.f32.mxu0 %v6528_v12  ;;  %5733 = vmatprep.mubr.msk.f32.mxu1 %vm632_vm0, %v603_v19 }
  0x4e   : > { %5110 = vmatmul.mubr.msk.f32.gmra.mxu0 %vm632_vm0, %v604_v20  ;;  %5734 = vmatmul.mubr.msk.f32.gmra.mxu1 %vm632_vm0, %v604_v20 }
  0x4f   : > { %745 = vmatprep.mubr.f32.mxu0 %v6528_v12  ;;  %5736 = vmatprep.mubr.msk.f32.mxu1 %vm632_vm0, %v605_v21 }
  0x52   : > { %5111 = vmatmul.mubr.msk.f32.gmra.mxu0 %vm632_vm0, %v605_v21  ;;  %5737 = vmatmul.mubr.msk.f32.gmra.mxu1 %vm632_vm0, %v606_v22 }
  0x53   : > { %751 = vmatprep.mubr.f32.mxu0 %v6528_v12  ;;  %5739 = vmatprep.mubr.msk.f32.mxu1 %vm632_vm0, %v607_v14 }
  0x56   : > { %5112 = vmatmul.mubr.msk.f32.gmra.mxu0 %vm632_vm0, %v606_v22  ;;  %5740 = vmatmul.mubr.msk.f32.gmra.mxu1 %vm632_vm0, %v608_v18 }
 0x102   : > { %v723_v31 = vpop.f32.mrf.mxu0  ;;  %v759_v32 = vpop.f32.mrf.mxu1 }
 0x103   : > { %v724_v36 = vadd.f32 %v723_v31, %v6755_v29  ;;  %v760_v37 = vadd.f32 %v759_v32, %v6755_v29 }
 0x104   : > { %v725_v33 = vpop.f32.mrf.mxu0  ;;  %v761_v34 = vpop.f32.mrf.mxu1 }
 0x105   : > { %v726_v38 = vadd.f32 %v725_v33, %v6757_v30  ;;  %v762_v39 = vadd.f32 %v761_v34, %v6757_v30 }
 0x106   : > { %v729_v40 = vpop.f32.mrf.mxu0  ;;  %v765_v41 = vpop.f32.mrf.mxu1 }
 0x107   : > { %v5386_v42 = vpack.c.bf16 %v726_v38, %v724_v36  ;;  %v5392_v43 = vpack.c.bf16 %v762_v39, %v760_v37  ;;  %v730_v47 = vadd.f32 %v729_v40, %v6755_v29  ;;  %v766_v48 = vadd.f32 %v765_v41, %v6755_v29 }
 0x108   : > { %v731_v44 = vpop.f32.mrf.mxu0  ;;  %v767_v45 = vpop.f32.mrf.mxu1 }
 0x109   : > { %923 = vst [vmem:[#allocation2 + $0x30] sm:$0xff] %v5386_v42  ;;  %929 = vst [vmem:[#allocation2 + $0x28] sm:$0xff] %v5392_v43  ;;  %v732_v49 = vadd.f32 %v731_v44, %v6757_v30  ;;  %v768_v50 = vadd.f32 %v767_v45, %v6757_v30 }
 0x10a   : > { %v735_v51 = vpop.f32.mrf.mxu0  ;;  %v5732_v52 = vpop.f32.mrf.mxu1 }
 0x10b   : > { %v5387_v53 = vpack.c.bf16 %v732_v49, %v730_v47  ;;  %v5393_v54 = vpack.c.bf16 %v768_v50, %v766_v48  ;;  %v736_v57 = vadd.f32 %v735_v51, %v6755_v29  ;;  %v842_v58 = vadd.f32 %v5732_v52, %v628_v46 }
 0x10c   : > { %v737_v55 = vpop.f32.mrf.mxu0  ;;  %v836_v56 = vpop.f32.mrf.mxu1 }
 0x10d   : > { %924 = vst [vmem:[#allocation2] sm:$0xff] %v5387_v53  ;;  %930 = vst [vmem:[#allocation2 + $0x38] sm:$0xff] %v5393_v54  ;;  %v738_v59 = vadd.f32 %v737_v55, %v6757_v30  ;;  %v837_v60 = vadd.f32 %v836_v56, %v628_v46 }
 0x10e   : > { %v741_v61 = vpop.f32.mrf.mxu0  ;;  %v5735_v62 = vpop.f32.mrf.mxu1 }
 0x10f   : > { %v5388_v63 = vpack.c.bf16 %v738_v59, %v736_v57  ;;  %v5438_v0 = vpack.c.bf16 %v842_v58, %v837_v60  ;;  %v742_v3 = vadd.f32 %v741_v61, %v6755_v29  ;;  %v852_v4 = vadd.f32 %v5735_v62, %v628_v46 }
 0x110   : > { %v743_v1 = vpop.f32.mrf.mxu0  ;;  %v846_v2 = vpop.f32.mrf.mxu1 }
 0x111   : > { %925 = vst [vmem:[#allocation2 + $0x18] sm:$0xff] %v5388_v63  ;;  %5439 = vst [vmem:[#allocation3] sm:$0xff] %v5438_v0   ;;  %v744_v5 = vadd.f32 %v743_v1, %v6757_v30  ;;  %v847_v6 = vadd.f32 %v846_v2, %v628_v46 }
 0x112   : > { %v747_v7 = vpop.f32.mrf.mxu0  ;;  %v5738_v8 = vpop.f32.mrf.mxu1 }
 0x113   : > { %v5389_v9 = vpack.c.bf16 %v744_v5, %v742_v3  ;;  %v5443_v10 = vpack.c.bf16 %v852_v4, %v847_v6  ;;  %v748_v13 = vadd.f32 %v747_v7, %v6755_v29  ;;  %v862_v14 = vadd.f32 %v5738_v8, %v628_v46 }
 0x114   : > { %v749_v11 = vpop.f32.mrf.mxu0  ;;  %v856_v12 = vpop.f32.mrf.mxu1 }
 0x115   : > { %926 = vst [vmem:[#allocation2 + $0x10] sm:$0xff] %v5389_v9  ;;  %5535 = vst [vmem:[#allocation3 + $0x8] sm:$0xff] %v5443_v10   ;;  %v750_v15 = vadd.f32 %v749_v11, %v6757_v30  ;;  %v857_v16 = vadd.f32 %v856_v12, %v628_v46 }
 0x116   : > { %v753_v17 = vpop.f32.mrf.mxu0  ;;  %v5741_v18 = vpop.f32.mrf.mxu1 }
 0x117   : > { %v5390_v19 = vpack.c.bf16 %v750_v15, %v748_v13  ;;  %v5448_v20 = vpack.c.bf16 %v862_v14, %v857_v16  ;;  %v754_v23 = vadd.f32 %v753_v17, %v6755_v29  ;;  %v872_v24 = vadd.f32 %v5741_v18, %v628_v46 }
 0x118   : > { %v755_v21 = vpop.f32.mrf.mxu0  ;;  %v866_v22 = vpop.f32.mrf.mxu1 }
 0x119   : > { %927 = vst [vmem:[#allocation2 + $0x8] sm:$0xff] %v5390_v19  ;;  %5536 = vst [vmem:[#allocation3 + $0x10] sm:$0xff] %v5448_v20   ;;  %v756_v25 = vadd.f32 %v755_v21, %v6757_v30  ;;  %v867_v26 = vadd.f32 %v866_v22, %v628_v46 }
 0x11b   : > { %v5391_v27 = vpack.c.bf16 %v756_v25, %v754_v23  ;;  %v5453_v28 = vpack.c.bf16 %v872_v24, %v867_v26 }
 0x11d   : > { %928 = vst [vmem:[#allocation2 + $0x20] sm:$0xff] %v5391_v27  ;;  %5537 = vst [vmem:[#allocation3 + $0x18] sm:$0xff] %v5453_v28  }
 0x11e PF: > { %v6099_v31 = vld [vmem:[#allocation2 + $0x2c] ss:$16 sps:$4 sm:$0xff]   ;;  %v6530_v33 = vmov 0   ;;  %v6102_v34 = vld [vmem:[#allocation2 + $0x28] ss:$16 sps:$4 sm:$0xff]   ;;  %v6113_v40 = vld [vmem:[#allocation3] sm:$0xff]  }
 0x11f   : > { %1262 = vmatprep.mubr.bf16.mxu0 %v6530_v33  ;;  %1238 = vmatprep.subr.bf16.mxu0 %v6099_v31  ;;  %v6107_v36 = vld [vmem:[#allocation2 + $0x1c] ss:$-8 sps:$4 sm:$0xff]   ;;  %v6109_v37 = vld [vmem:[#allocation3 + $0x8] sm:$0xff]   ;;  %v6110_v38 = vld [vmem:[#allocation2 + $0x18] ss:$-8 sps:$4 sm:$0xff]   ;;  %vm1181_vm2 = vcmask 523264  }
 0x120   : > { %1239 = vmatpush1.bf16.msra.mxu0 %v6102_v34  ;;  %v6105_v29 = vld [vmem:[#allocation3 + $0x10] sm:$0xff]   ;;  %v6777_v41 = vld [vmem:[%s6687_s24] sm:$0xff]   ;;  %v6780_v43 = vld [vmem:[%s6687_s24 + $0x8] sm:$0xff]   ;;  %p5362_p1 = scmp.ne.s32.totalorder %s6632_s17, 1 }
 0x121   : > { %v6111_v39 = vld [vmem:[#allocation2 + $0x34] ss:$-48 sps:$4 sm:$0xff]   ;;  %v6114_v42 = vld [vmem:[#allocation2 + $0x30] ss:$-48 sps:$4 sm:$0xff]   ;;  %v6118_v44 = vld [vmem:[%s8719_s7 + $0x38] sm:$0xff]   ;;  %5750 = vmatprep.mubr.msk.bf16.mxu1 %vm1181_vm2, %v6777_v41 }
 0x122   : > { %v6788_v45 = vld [vmem:[%s6687_s24 + $0x10] sm:$0xff]   ;;  %v6116_v46 = vld [vmem:[%s6682_s19] sm:$0xff]   ;;  %v6799_v48 = vld [vmem:[%s6687_s24 + $0x18] sm:$0xff]  }
 0x123   : > { %v6122_v47 = vld [vmem:[%s8719_s7 + $0x30] sm:$0xff]   ;;  %v6804_v49 = vld [vmem:[%s6687_s24 + $0x20] sm:$0xff]   ;;  %v6126_v50 = vld [vmem:[%s8719_s7 + $0x28] sm:$0xff]  }
 0x124   : > { %v6101_v32 = vld [vmem:[#allocation3 + $0x18] sm:$0xff]   ;;  %v6103_v35 = vld [vmem:[#allocation2 + $0xc] ss:$24 sps:$4 sm:$0xff]   ;;  %v6106_v30 = vld [vmem:[#allocation2 + $0x8] ss:$24 sps:$4 sm:$0xff]  }
 0x125   : > { %5742 = vmatprep.subr.bf16.mxu1 %v6101_v32  ;;  %1240 = vmatprep.subr.bf16.mxu0 %v6103_v35  ;;  %v6120_v51 = vld [vmem:[%s6682_s19 + $0x8] sm:$0xff]   ;;  %v6130_v52 = vld [vmem:[%s8719_s7 + $0x20] sm:$0xff]   ;;  %v6823_v54 = vld [vmem:[%s6687_s24 + $0x30] sm:$0xff]  }
 0x126   : > { %5743 = vmatpush3.bf16.msra.mxu1 %v6101_v32  ;;  %1241 = vmatpush1.bf16.msra.mxu0 %v6106_v30  ;;  %v6820_v53 = vld [vmem:[%s6687_s24 + $0x28] sm:$0xff]   ;;  %v6134_v55 = vld [vmem:[%s8719_s7 + $0x18] sm:$0xff]   ;;  %v6124_v56 = vld [vmem:[%s6682_s19 + $0x10] sm:$0xff]  }
 0x127   : > { %5744 = vmatprep.subr.bf16.mxu1 %v6105_v29  ;;  %1242 = vmatprep.subr.bf16.mxu0 %v6107_v36  ;;  %v6138_v57 = vld [vmem:[%s8719_s7 + $0x10] sm:$0xff]   ;;  %v6839_v58 = vld [vmem:[%s6687_s24 + $0x38] sm:$0xff]   ;;  %v6842_v59 = vld [vmem:[%s6687_s24 + $0x40] sm:$0xff]  }
 0x128   : > { %v6142_v60 = vld [vmem:[%s8719_s7 + $0x8] sm:$0xff]   ;;  %v6128_v61 = vld [vmem:[%s6682_s19 + $0x18] sm:$0xff]   ;;  %v6146_v62 = vld [vmem:[%s8719_s7] sm:$0xff]  }
 0x129   : > { %v6858_v63 = vld [vmem:[%s6687_s24 + $0x48] sm:$0xff]   ;;  %v6861_v0 = vld [vmem:[%s6687_s24 + $0x50] sm:$0xff]   ;;  %v6132_v1 = vld [vmem:[%s6682_s19 + $0x20] sm:$0xff]  }
 0x12a   : > { %5745 = vmatpush3.bf16.msra.mxu1 %v6105_v29  ;;  %1243 = vmatpush1.bf16.msra.mxu0 %v6110_v38  ;;  %v6871_v2 = vld [vmem:[%s6687_s24 + $0x58] sm:$0xff]   ;;  %v6874_v3 = vld [vmem:[%s6687_s24 + $0x60] sm:$0xff]   ;;  %v6136_v4 = vld [vmem:[%s6682_s19 + $0x28] sm:$0xff]  }
 0x12b   : > { %5746 = vmatprep.subr.bf16.mxu1 %v6109_v37  ;;  %1244 = vmatprep.subr.bf16.mxu0 %v6111_v39  ;;  %v6878_v5 = vld [vmem:[%s6687_s24 + $0x68] sm:$0xff]   ;;  %v6884_v6 = vld [vmem:[%s6687_s24 + $0x70] sm:$0xff]   ;;  %v6897_v8 = vld [vmem:[%s6687_s24 + $0x78] sm:$0xff]  }
 0x12c   : > { %v6140_v7 = vld [vmem:[%s6682_s19 + $0x30] sm:$0xff]   ;;  %v6144_v9 = vld [vmem:[%s6682_s19 + $0x38] sm:$0xff]   ;;  %v6147_v10 = vld [vmem:[%s6677_s4] sm:$0xff]  }
 0x12d   : > { %v6148_v11 = vld [vmem:[%s6682_s19 + $0x40] sm:$0xff]   ;;  %v6149_v12 = vld [vmem:[%s6677_s4 + $0x8] sm:$0xff]   ;;  %v6150_v13 = vld [vmem:[%s6677_s4 + $0x10] sm:$0xff]  }
 0x12e   : > { %5747 = vmatpush3.bf16.msra.mxu1 %v6109_v37  ;;  %1245 = vmatpush1.bf16.msra.mxu0 %v6114_v42  ;;  %v6151_v14 = vld [vmem:[%s6682_s19 + $0x48] sm:$0xff]   ;;  %v6152_v15 = vld [vmem:[%s6677_s4 + $0x18] sm:$0xff]   ;;  %v6153_v16 = vld [vmem:[%s6677_s4 + $0x20] sm:$0xff]  }
 0x12f   : > { %5748 = vmatprep.subr.bf16.mxu1 %v6113_v40  ;;  %v6154_v17 = vld [vmem:[%s6682_s19 + $0x50] sm:$0xff]   ;;  %v6155_v18 = vld [vmem:[%s6677_s4 + $0x28] sm:$0xff]   ;;  %v6171_v20 = vld [vmem:[%s8720_s8 + $0x38] sm:$0xff]  }
 0x130   : > { %v6156_v19 = vld [vmem:[%s6677_s4 + $0x30] sm:$0xff]   ;;  %v6157_v21 = vld [vmem:[%s6682_s19 + $0x58] sm:$0xff]   ;;  %v6159_v23 = vld [vmem:[%s6677_s4 + $0x40] sm:$0xff]  }
 0x131   : > { %5163 = vmatmul.mubr.msk.bf16.vlgmr.msra.gmra.mxu0 %vm1181_vm2, %v6116_v46  ;;  %v6158_v22 = vld [vmem:[%s6677_s4 + $0x38] sm:$0xff]   ;;  %v6172_v24 = vld [vmem:[%s8720_s8 + $0x30] sm:$0xff]   ;;  %v6160_v25 = vld [vmem:[%s6682_s19 + $0x60] sm:$0xff]  }
 0x132   : > { %5749 = vmatpush3.bf16.msra.mxu1 %v6113_v40  ;;  %1272 = vmatprep.mubr.bf16.mxu0 %v6530_v33  ;;  %v6161_v26 = vld [vmem:[%s6677_s4 + $0x48] sm:$0xff]   ;;  %v6162_v27 = vld [vmem:[%s6677_s4 + $0x50] sm:$0xff]   ;;  %v6164_v32 = vld [vmem:[%s6677_s4 + $0x58] sm:$0xff]  }
 0x133   : > { %5782 = vmatprep.subr.bf16.mxu1 %v6118_v44  ;;  %v6173_v28 = vld [vmem:[%s8720_s8 + $0x28] sm:$0xff]   ;;  %v6165_v34 = vld [vmem:[%s6677_s4 + $0x60] sm:$0xff]   ;;  %v6166_v29 = vld [vmem:[%s6682_s19 + $0x70] sm:$0xff]  }
 0x134   : > { %v6163_v31 = vld [vmem:[%s6682_s19 + $0x68] sm:$0xff]   ;;  %v6174_v35 = vld [vmem:[%s8720_s8 + $0x20] sm:$0xff]   ;;  %v6168_v36 = vld [vmem:[%s6677_s4 + $0x70] sm:$0xff]  }
 0x135   : > { %5751 = vmatmul.mubr.msk.bf16.vlgmr.msra.gmra.mxu1 %vm1181_vm2, %v6780_v43  ;;  %v6167_v30 = vld [vmem:[%s6677_s4 + $0x68] sm:$0xff]   ;;  %v6175_v37 = vld [vmem:[%s8722_s10 + $0x38] sm:$0xff]   ;;  %v6177_v39 = vld [vmem:[%s8722_s10 + $0x30] sm:$0xff]  }
 0x136   : > { %5783 = vmatpush3.bf16.msra.mxu1 %v6118_v44  ;;  %5754 = vmatprep.mubr.msk.bf16.mxu1 %vm1181_vm2, %v6788_v45  ;;  %v6176_v38 = vld [vmem:[%s8720_s8 + $0x18] sm:$0xff]   ;;  %v6178_v44 = vld [vmem:[%s8722_s10 + $0x28] sm:$0xff]   ;;  %v6180_v46 = vld [vmem:[%s8722_s10 + $0x20] sm:$0xff]  }
 0x137   : > { %5784 = vmatprep.subr.bf16.mxu1 %v6122_v47  ;;  %5830 = vmatprep.subr.bf16.mxu0 %v6175_v37  ;;  %v6169_v40 = vld [vmem:[%s6682_s19 + $0x78] sm:$0xff]  }
 0x138   : > { %5831 = vmatpush3.bf16.msra.mxu0 %v6175_v37  ;;  %v6170_v42 = vld [vmem:[%s6677_s4 + $0x78] sm:$0xff]  }
 0x139   : > { %5164 = vmatmul.mubr.msk.bf16.gmra.mxu0 %vm1181_vm2, %v6120_v51  ;;  %5832 = vmatprep.subr.bf16.mxu0 %v6177_v39  ;;  %v6183_v51 = vld [vmem:[%s8722_s10 + $0x10] sm:$0xff]  }
 0x13a   : > { %5785 = vmatpush3.bf16.msra.mxu1 %v6122_v47  ;;  %1282 = vmatprep.mubr.bf16.mxu0 %v6530_v33  ;;  %v6181_v47 = vld [vmem:[%s8722_s10 + $0x18] sm:$0xff]  }
 0x13b   : > { %5786 = vmatprep.subr.bf16.mxu1 %v6126_v50 }
 0x13c   : > { %5833 = vmatpush3.bf16.msra.mxu0 %v6177_v39 }
 0x13d   : > { %5755 = vmatmul.mubr.msk.bf16.gmra.mxu1 %vm1181_vm2, %v6799_v48  ;;  %5834 = vmatprep.subr.bf16.mxu0 %v6178_v44 }
 0x13e   : > { %5758 = vmatprep.mubr.msk.bf16.mxu1 %vm1181_vm2, %v6804_v49  ;;  %5787 = vmatpush3.bf16.msra.mxu1 %v6126_v50  ;;  %v6182_v50 = vld [vmem:[%s8720_s8 + $0x8] sm:$0xff]  }
 0x13f   : > { %5788 = vmatprep.subr.bf16.mxu1 %v6130_v52 }
 0x140   : > { %5835 = vmatpush3.bf16.msra.mxu0 %v6178_v44 }
 0x141   : > { %5165 = vmatmul.mubr.msk.bf16.gmra.mxu0 %vm1181_vm2, %v6124_v56  ;;  %5836 = vmatprep.subr.bf16.mxu0 %v6180_v46  ;;  %v6186_v56 = vld [vmem:[%s8722_s10] sm:$0xff]  }
 0x142   : > { %5789 = vmatpush3.bf16.msra.mxu1 %v6130_v52  ;;  %1292 = vmatprep.mubr.bf16.mxu0 %v6530_v33  ;;  %v6184_v52 = vld [vmem:[%s8722_s10 + $0x8] sm:$0xff]  }
 0x143   : > { %5790 = vmatprep.subr.bf16.mxu1 %v6134_v55 }
 0x144   : > { %5837 = vmatpush3.bf16.msra.mxu0 %v6180_v46 }
 0x145   : > { %5759 = vmatmul.mubr.msk.bf16.gmra.mxu1 %vm1181_vm2, %v6820_v53  ;;  %5838 = vmatprep.subr.bf16.mxu0 %v6181_v47 }
 0x146   : > { %5762 = vmatprep.mubr.msk.bf16.mxu1 %vm1181_vm2, %v6823_v54  ;;  %5791 = vmatpush3.bf16.msra.mxu1 %v6134_v55  ;;  %v6185_v55 = vld [vmem:[%s8720_s8] sm:$0xff]  }
 0x147   : > { %5792 = vmatprep.subr.bf16.mxu1 %v6138_v57 }
 0x148   : > { %5839 = vmatpush3.bf16.msra.mxu0 %v6181_v47 }
 0x149   : > { %5166 = vmatmul.mubr.msk.bf16.gmra.mxu0 %vm1181_vm2, %v6128_v61  ;;  %5840 = vmatprep.subr.bf16.mxu0 %v6183_v51  ;;  %v3430_v61 = vunpack.c.l.bf16 %v6777_v41 }
 0x14a   : > { %5793 = vmatpush3.bf16.msra.mxu1 %v6138_v57  ;;  %1302 = vmatprep.mubr.bf16.mxu0 %v6530_v33 }
 0x14b   : > { %5794 = vmatprep.subr.bf16.mxu1 %v6142_v60 }
 0x14c   : > { %5841 = vmatpush3.bf16.msra.mxu0 %v6183_v51 }
 0x14d   : > { %5763 = vmatmul.mubr.msk.bf16.gmra.mxu1 %vm1181_vm2, %v6839_v58  ;;  %5842 = vmatprep.subr.bf16.mxu0 %v6184_v52 }
 0x14e   : > { %5766 = vmatprep.mubr.msk.bf16.mxu1 %vm1181_vm2, %v6842_v59  ;;  %5795 = vmatpush3.bf16.msra.mxu1 %v6142_v60 }
 0x14f   : > { %5796 = vmatprep.subr.bf16.mxu1 %v6146_v62 }
 0x150   : > { %5843 = vmatpush3.bf16.msra.mxu0 %v6184_v52 }
 0x151   : > { %5167 = vmatmul.mubr.msk.bf16.gmra.mxu0 %vm1181_vm2, %v6132_v1  ;;  %5844 = vmatprep.subr.bf16.mxu0 %v6186_v56 }
 0x152   : > { %5797 = vmatpush3.bf16.msra.mxu1 %v6146_v62  ;;  %1312 = vmatprep.mubr.bf16.mxu0 %v6530_v33 }
 0x153   : > { %5878 = vmatprep.subr.bf16.mxu1 %v6171_v20 }
 0x154   : > { %5845 = vmatpush3.bf16.msra.mxu0 %v6186_v56  ;;  %v3443_v56 = vunpack.c.h.bf16 %v6823_v54 }
 0x155   : > { %5767 = vmatmul.mubr.msk.bf16.gmra.mxu1 %vm1181_vm2, %v6858_v63 }
 0x156   : > { %5770 = vmatprep.mubr.msk.bf16.mxu1 %vm1181_vm2, %v6861_v0 }
 0x159   : > { %5168 = vmatmul.mubr.msk.bf16.gmra.mxu0 %vm1181_vm2, %v6136_v4  ;;  %v3462_v4 = vsel %vm1181_vm2, %v3430_v61, 0.0 }
 0x15a   : > { %1322 = vmatprep.mubr.bf16.mxu0 %v6530_v33  ;;  %3463 = vadd.xlane.f32.xlu0 %v3462_v4 }
 0x15d   : > { %5771 = vmatmul.mubr.msk.bf16.gmra.mxu1 %vm1181_vm2, %v6871_v2 }
 0x15e   : > { %5774 = vmatprep.mubr.msk.bf16.mxu1 %vm1181_vm2, %v6874_v3 }
 0x161   : > { %5169 = vmatmul.mubr.msk.bf16.gmra.mxu0 %vm1181_vm2, %v6140_v7  ;;  %v3432_v7 = vunpack.c.l.bf16 %v6780_v43 }
 0x162   : > { %1332 = vmatprep.mubr.bf16.mxu0 %v6530_v33 }
 0x165   : > { %5775 = vmatmul.mubr.msk.bf16.gmra.mxu1 %vm1181_vm2, %v6878_v5 }
 0x166   : > { %5778 = vmatprep.mubr.msk.bf16.mxu1 %vm1181_vm2, %v6884_v6 }
 0x169   : > { %5170 = vmatmul.mubr.msk.bf16.gmra.mxu0 %vm1181_vm2, %v6144_v9  ;;  %v3431_v9 = vunpack.c.h.bf16 %v6777_v41  ;;  %v3433_v41 = vunpack.c.h.bf16 %v6780_v43 }
 0x16a   : > { %1342 = vmatprep.mubr.bf16.mxu0 %v6530_v33 }
 0x16d   : > { %5779 = vmatmul.mubr.msk.bf16.gmra.mxu1 %vm1181_vm2, %v6897_v8 }
 0x16e   : > { %5798 = vmatprep.mubr.bf16.mxu1 %v6147_v10 }
 0x171   : > { %5171 = vmatmul.mubr.msk.bf16.gmra.mxu0 %vm1181_vm2, %v6148_v11 }
 0x172   : > { %1352 = vmatprep.mubr.bf16.mxu0 %v6530_v33 }
 0x175   : > { %5799 = vmatmul.mubr.bf16.vlgmr.msra.gmra.mxu1 %v6149_v12  ;;  %v3468_v12 = vsel %vm1181_vm2, %v3432_v7, 0.0 }
 0x176   : > { %5802 = vmatprep.mubr.bf16.mxu1 %v6150_v13  ;;  %5879 = vmatpush3.bf16.msra.mxu1 %v6171_v20  ;;  %v3465_v13 = vsel %vm1181_vm2, %v3431_v9, 0.0  ;;  %v3436_v20 = vunpack.c.l.bf16 %v6799_v48 }
 0x177   : > { %5880 = vmatprep.subr.bf16.mxu1 %v6172_v24  ;;  %3469 = vadd.xlane.f32.xlu1 %v3468_v12  ;;  %v3501_v12 = vsel %vm1181_vm2, %v3443_v56, 0.0 }
 0x178   : > { %3466 = vadd.xlane.f32.xlu0 %v3465_v13 }
 0x179   : > { %5172 = vmatmul.mubr.msk.bf16.gmra.mxu0 %vm1181_vm2, %v6151_v14 }
 0x17a   : > { %1362 = vmatprep.mubr.bf16.mxu0 %v6530_v33  ;;  %5881 = vmatpush3.bf16.msra.mxu1 %v6172_v24 }
 0x17b   : > { %5882 = vmatprep.subr.bf16.mxu1 %v6173_v28 }
 0x17d   : > { %5803 = vmatmul.mubr.bf16.gmra.mxu1 %v6152_v15 }
 0x17e   : > { %5806 = vmatprep.mubr.bf16.mxu1 %v6153_v16  ;;  %5883 = vmatpush3.bf16.msra.mxu1 %v6173_v28  ;;  %v3438_v28 = vunpack.c.l.bf16 %v6804_v49 }
 0x17f   : > { %5884 = vmatprep.subr.bf16.mxu1 %v6174_v35 }
 0x181   : > { %5173 = vmatmul.mubr.msk.bf16.gmra.mxu0 %vm1181_vm2, %v6154_v17 }
 0x182   : > { %1372 = vmatprep.mubr.bf16.mxu0 %v6530_v33  ;;  %5885 = vmatpush3.bf16.msra.mxu1 %v6174_v35 }
 0x183   : > { %5886 = vmatprep.subr.bf16.mxu1 %v6176_v38 }
 0x185   : > { %5807 = vmatmul.mubr.bf16.gmra.mxu1 %v6155_v18  ;;  %v3434_v18 = vunpack.c.l.bf16 %v6788_v45 }
 0x186   : > { %5810 = vmatprep.mubr.bf16.mxu1 %v6156_v19  ;;  %5887 = vmatpush3.bf16.msra.mxu1 %v6176_v38  ;;  %v3435_v19 = vunpack.c.h.bf16 %v6788_v45  ;;  %v3480_v45 = vsel %vm1181_vm2, %v3436_v20, 0.0 }
 0x187   : > { %v3474_v24 = vsel %vm1181_vm2, %v3434_v18, 0.0 }
 0x188   : > { %3475 = vadd.xlane.f32.xlu0 %v3474_v24  ;;  %v3477_v43 = vsel %vm1181_vm2, %v3435_v19, 0.0 }
 0x189   : > { %5174 = vmatmul.mubr.msk.bf16.gmra.mxu0 %vm1181_vm2, %v6157_v21 }
 0x18a   : > { %1382 = vmatprep.mubr.bf16.mxu0 %v6530_v33 }
 0x18c   : > { %3481 = vadd.xlane.f32.xlu0 %v3480_v45  ;;  %v3447_v45 = vunpack.c.h.bf16 %v6842_v59 }
 0x18d   : > { %5811 = vmatmul.mubr.bf16.gmra.mxu1 %v6158_v22 }
 0x18e   : > { %5814 = vmatprep.mubr.bf16.mxu1 %v6159_v23  ;;  %v3471_v23 = vsel %vm1181_vm2, %v3433_v41, 0.0  ;;  %v3445_v41 = vunpack.c.h.bf16 %v6839_v58 }
 0x18f   : > { %3472 = vadd.xlane.f32.xlu1 %v3471_v23 }
 0x190   : > { %v3507_v24 = vsel %vm1181_vm2, %v3445_v41, 0.0 }
 0x191   : > { %5175 = vmatmul.mubr.msk.bf16.gmra.mxu0 %vm1181_vm2, %v6160_v25 }
 0x192   : > { %1392 = vmatprep.mubr.bf16.mxu0 %v6530_v33 }
 0x193   : > { %3478 = vadd.xlane.f32.xlu1 %v3477_v43 }
 0x195   : > { %5815 = vmatmul.mubr.bf16.gmra.mxu1 %v6161_v26 }
 0x196   : > { %5818 = vmatprep.mubr.bf16.mxu1 %v6162_v27  ;;  %v3437_v27 = vunpack.c.h.bf16 %v6799_v48  ;;  %v3440_v48 = vunpack.c.l.bf16 %v6820_v53 }
 0x198   : > { %v3492_v44 = vsel %vm1181_vm2, %v3440_v48, 0.0 }
 0x199   : > { %5176 = vmatmul.mubr.msk.bf16.gmra.mxu0 %vm1181_vm2, %v6163_v31 }
 0x19a   : > { %1402 = vmatprep.mubr.bf16.mxu0 %v6530_v33 }
 0x19d   : > { %5819 = vmatmul.mubr.bf16.gmra.mxu1 %v6164_v32 }
 0x19e   : > { %5822 = vmatprep.mubr.bf16.mxu1 %v6165_v34 }
 0x1a1   : > { %5177 = vmatmul.mubr.msk.bf16.gmra.mxu0 %vm1181_vm2, %v6166_v29  ;;  %v3483_v29 = vsel %vm1181_vm2, %v3437_v27, 0.0 }
 0x1a2   : > { %1412 = vmatprep.mubr.bf16.mxu0 %v6530_v33  ;;  %v6179_v33 = vld [vmem:[%s8720_s8 + $0x10] sm:$0xff]   ;;  %3484 = vadd.xlane.f32.xlu1 %v3483_v29 }
 0x1a3   : > { %5888 = vmatprep.subr.bf16.mxu1 %v6179_v33 }
 0x1a4   : > { %5889 = vmatpush3.bf16.msra.mxu1 %v6179_v33  ;;  %v3441_v33 = vunpack.c.h.bf16 %v6820_v53  ;;  %v3444_v53 = vunpack.c.l.bf16 %v6839_v58  ;;  %v3448_v58 = vunpack.c.l.bf16 %v6858_v63 }
 0x1a5   : > { %5823 = vmatmul.mubr.bf16.gmra.mxu1 %v6167_v30  ;;  %5890 = vmatprep.subr.bf16.mxu1 %v6182_v50  ;;  %v3486_v30 = vsel %vm1181_vm2, %v3438_v28, 0.0 }
 0x1a6   : > { %5826 = vmatprep.mubr.bf16.mxu1 %v6168_v36  ;;  %v3439_v36 = vunpack.c.h.bf16 %v6804_v49  ;;  %3487 = vadd.xlane.f32.xlu0 %v3486_v30  ;;  %v3442_v49 = vunpack.c.l.bf16 %v6823_v54  ;;  %v3495_v52 = vsel %vm1181_vm2, %v3441_v33, 0.0  ;;  %v3504_v13 = vsel %vm1181_vm2, %v3444_v53, 0.0 }
 0x1a7   : > { %v3446_v54 = vunpack.c.l.bf16 %v6842_v59  ;;  %v3516_v48 = vsel %vm1181_vm2, %v3448_v58, 0.0  ;;  %v3450_v59 = vunpack.c.l.bf16 %v6861_v0  ;;  %v3451_v53 = vunpack.c.h.bf16 %v6861_v0 }
 0x1a8   : > { %5891 = vmatpush3.bf16.msra.mxu1 %v6182_v50  ;;  %v3454_v0 = vunpack.c.l.bf16 %v6874_v3 }
 0x1a9   : > { %5178 = vmatmul.mubr.msk.bf16.gmra.mxu0 %vm1181_vm2, %v6169_v40  ;;  %5892 = vmatprep.subr.bf16.mxu1 %v6185_v55  ;;  %v3510_v43 = vsel %vm1181_vm2, %v3446_v54, 0.0  ;;  %v3522_v56 = vsel %vm1181_vm2, %v3450_v59, 0.0 }
 0x1aa   : > { %3493 = vadd.xlane.f32.xlu0 %v3492_v44 }
 0x1ac   : > { %5893 = vmatpush3.bf16.msra.mxu1 %v6185_v55  ;;  %v3498_v55 = vsel %vm1181_vm2, %v3442_v49, 0.0 }
 0x1ad   : > { %5827 = vmatmul.mubr.bf16.gmra.mxu1 %v6170_v42  ;;  %v3489_v42 = vsel %vm1181_vm2, %v3439_v36, 0.0  ;;  %v3513_v36 = vsel %vm1181_vm2, %v3447_v45, 0.0  ;;  %v3453_v45 = vunpack.c.h.bf16 %v6871_v2 }
 0x1ae   : > { %3490 = vadd.xlane.f32.xlu1 %v3489_v42  ;;  %3499 = vadd.xlane.f32.xlu0 %v3498_v55  ;;  %v3449_v42 = vunpack.c.h.bf16 %v6858_v63  ;;  %v3452_v63 = vunpack.c.l.bf16 %v6871_v2  ;;  %v3456_v2 = vunpack.c.l.bf16 %v6878_v5 }
 0x1af   : > { %v3531_v59 = vsel %vm1181_vm2, %v3453_v45, 0.0 }
 0x1b0   : > { %v3519_v55 = vsel %vm1181_vm2, %v3449_v42, 0.0  ;;  %v3540_v45 = vsel %vm1181_vm2, %v3456_v2, 0.0  ;;  %v3459_v2 = vunpack.c.h.bf16 %v6884_v6 }
 0x1b2   : > { %3496 = vadd.xlane.f32.xlu1 %v3495_v52  ;;  %3505 = vadd.xlane.f32.xlu0 %v3504_v13 }
 0x1b6   : > { %3502 = vadd.xlane.f32.xlu1 %v3501_v12  ;;  %3511 = vadd.xlane.f32.xlu0 %v3510_v43  ;;  %v3528_v43 = vsel %vm1181_vm2, %v3452_v63, 0.0 }
 0x1ba   : > { %3508 = vadd.xlane.f32.xlu1 %v3507_v24  ;;  %3517 = vadd.xlane.f32.xlu0 %v3516_v48  ;;  %v3525_v24 = vsel %vm1181_vm2, %v3451_v53, 0.0 }
 0x1be   : > { %3514 = vadd.xlane.f32.xlu1 %v3513_v36  ;;  %3523 = vadd.xlane.f32.xlu0 %v3522_v56  ;;  %v3455_v56 = vunpack.c.h.bf16 %v6874_v3  ;;  %v3458_v3 = vunpack.c.l.bf16 %v6884_v6 }
 0x1c2   : > { %3520 = vadd.xlane.f32.xlu1 %v3519_v55  ;;  %3529 = vadd.xlane.f32.xlu0 %v3528_v43  ;;  %v3534_v55 = vsel %vm1181_vm2, %v3454_v0, 0.0  ;;  %v3457_v0 = vunpack.c.h.bf16 %v6878_v5  ;;  %v3460_v5 = vunpack.c.l.bf16 %v6897_v8 }
 0x1c6   : > { %3526 = vadd.xlane.f32.xlu1 %v3525_v24  ;;  %3535 = vadd.xlane.f32.xlu0 %v3534_v55 }
 0x1ca   : > { %3532 = vadd.xlane.f32.xlu1 %v3531_v59  ;;  %3541 = vadd.xlane.f32.xlu0 %v3540_v45 }
 0x1f1   : > { %v6991_v57 = vpop.f32.mrf.mxu0 }
 0x1f3   : > { %v6996_v62 = vpop.f32.mrf.mxu0 }
 0x1f4   : > { %8786 = vst [vmem:[#allocation17_spill] sm:$0xff] %v6996_v62 }
 0x1f5   : > { %v6993_v60 = vpop.f32.mrf.mxu1  ;;  %v7003_v10 = vpop.f32.mrf.mxu0 }
 0x1f7   : > { %v6998_v1 = vpop.f32.mrf.mxu1  ;;  %v7009_v14 = vpop.f32.mrf.mxu0 }
 0x1f8   : > { %8787 = vst [vmem:[#allocation18_spill] sm:$0xff] %v7009_v14  ;;  %v3537_v14 = vsel %vm1181_vm2, %v3455_v56, 0.0  ;;  %v3546_v56 = vsel %vm1181_vm2, %v3458_v3, 0.0  ;;  %v3461_v3 = vunpack.c.h.bf16 %v6897_v8  ;;  %v2097_v8 = vadd.f32 %v6998_v1, %v6991_v57 }
 0x1f9   : > { %v7005_v11 = vpop.f32.mrf.mxu1  ;;  %v7013_v16 = vpop.f32.mrf.mxu0  ;;  %3538 = vadd.xlane.f32.xlu1 %v3537_v14  ;;  %3547 = vadd.xlane.f32.xlu0 %v3546_v56 }
 0x1fb   : > { %v7011_v15 = vpop.f32.mrf.mxu1  ;;  %v7021_v21 = vpop.f32.mrf.mxu0 }
 0x1fc   : > { %8788 = vst [vmem:[#allocation19_spill] sm:$0xff] %v7021_v21 }
 0x1fd   : > { %v7015_v17 = vpop.f32.mrf.mxu1  ;;  %v7027_v25 = vpop.f32.mrf.mxu0 }
 0x1ff   : > { %v7023_v22 = vpop.f32.mrf.mxu1  ;;  %v7035_v31 = vpop.f32.mrf.mxu0 }
 0x200   : > { %8789 = vst [vmem:[#allocation20_spill] sm:$0xff] %v7035_v31 }
 0x201   : > { %v7029_v26 = vpop.f32.mrf.mxu1  ;;  %v7039_v34 = vpop.f32.mrf.mxu0 }
 0x203   : > { %v7037_v32 = vpop.f32.mrf.mxu1  ;;  %v7047_v37 = vpop.f32.mrf.mxu0 }
 0x204   : > { %8790 = vst [vmem:[#allocation21_spill] sm:$0xff] %v7047_v37 }
 0x205   : > { %v7041_v35 = vpop.f32.mrf.mxu1  ;;  %v7051_v39 = vpop.f32.mrf.mxu0 }
 0x207   : > { %v7049_v38 = vpop.f32.mrf.mxu1  ;;  %v7059_v46 = vpop.f32.mrf.mxu0 }
 0x208   : > { %8791 = vst [vmem:[#allocation22_spill] sm:$0xff] %v7059_v46 }
 0x209   : > { %v7053_v40 = vpop.f32.mrf.mxu1  ;;  %v7063_v50 = vpop.f32.mrf.mxu0 }
 0x20a   : > { %v2103_v57 = vadd.f32 %v7015_v17, %v7063_v50 }
 0x20b   : > { %v7061_v47 = vpop.f32.mrf.mxu1  ;;  %v7071_v61 = vpop.f32.mrf.mxu0 }
 0x20c   : > { %8792 = vst [vmem:[#allocation23_spill] sm:$0xff] %v7071_v61  ;;  %v3543_v61 = vsel %vm1181_vm2, %v3457_v0, 0.0  ;;  %v3552_v0 = vsel %vm1181_vm2, %v3460_v5, 0.0 }
 0x20d   : > { %v7065_v51 = vpop.f32.mrf.mxu1  ;;  %v7075_v7 = vpop.f32.mrf.mxu0  ;;  %3544 = vadd.xlane.f32.xlu1 %v3543_v61  ;;  %3553 = vadd.xlane.f32.xlu0 %v3552_v0  ;;  %v2099_v61 = vadd.f32 %v6993_v60, %v7013_v16  ;;  %v2098_v60 = vadd.f32 %v7011_v15, %v7003_v10 }
 0x20e   : > { %v2104_v17 = vadd.f32 %v7029_v26, %v7075_v7 }
 0x20f   : > { %v7073_v4 = vpop.f32.mrf.mxu1  ;;  %v7083_v18 = vpop.f32.mrf.mxu0 }
 0x210   : > { %8793 = vst [vmem:[#allocation24_spill] sm:$0xff] %v7083_v18 }
 0x211   : > { %v7077_v9 = vpop.f32.mrf.mxu1  ;;  %v7087_v20 = vpop.f32.mrf.mxu0 }
 0x213   : > { %v7085_v19 = vpop.f32.mrf.mxu1  ;;  %v7095_v27 = vpop.f32.mrf.mxu0 }
 0x214   : > { %8794 = vst [vmem:[#allocation25_spill] sm:$0xff] %v7095_v27 }
 0x215   : > { %v7089_v23 = vpop.f32.mrf.mxu1  ;;  %v7099_v29 = vpop.f32.mrf.mxu0 }
 0x217   : > { %v7097_v28 = vpop.f32.mrf.mxu1  ;;  %v7107_v44 = vpop.f32.mrf.mxu0 }
 0x218   : > { %8795 = vst [vmem:[#allocation26_spill] sm:$0xff] %v7107_v44 }
 0x219   : > { %v7101_v30 = vpop.f32.mrf.mxu1  ;;  %v7111_v49 = vpop.f32.mrf.mxu0 }
 0x21a   : > { %v2107_v7 = vadd.f32 %v7041_v35, %v7111_v49 }
 0x21b   : > { %v7109_v33 = vpop.f32.mrf.mxu1  ;;  %v7119_v12 = vpop.f32.mrf.mxu0 }
 0x21c   : > { %8796 = vst [vmem:[#allocation27_spill] sm:$0xff] %v7119_v12 }
 0x21d   : > { %v7113_v52 = vpop.f32.mrf.mxu1  ;;  %v7123_v41 = vpop.f32.mrf.mxu0 }
 0x21f   : > { %v7121_v13 = vpop.f32.mrf.mxu1  ;;  %v7131_v58 = vpop.f32.mrf.mxu0 }
 0x220   : > { %8797 = vst [vmem:[#allocation28_spill] sm:$0xff] %v7131_v58  ;;  %v3549_v58 = vsel %vm1181_vm2, %v3459_v2, 0.0 }
 0x221   : > { %v7125_v54 = vpop.f32.mrf.mxu1  ;;  %v7135_v48 = vpop.f32.mrf.mxu0  ;;  %3550 = vadd.xlane.f32.xlu1 %v3549_v58  ;;  %v2100_v58 = vadd.f32 %v7005_v11, %v7027_v25 }
 0x223   : > { %v7133_v36 = vpop.f32.mrf.mxu1  ;;  %v7143_v53 = vpop.f32.mrf.mxu0 }
 0x224   : > { %8798 = vst [vmem:[#allocation29_spill] sm:$0xff] %v7143_v53 }
 0x225   : > { %v7137_v42 = vpop.f32.mrf.mxu1  ;;  %v7147_v24 = vpop.f32.mrf.mxu0 }
 0x227   : > { %v7145_v63 = vpop.f32.mrf.mxu1  ;;  %v7155_v46 = vpop.f32.mrf.mxu0 }
 0x228   : > { %8799 = vst [vmem:[#allocation30_spill] sm:$0xff] %v7155_v46 }
 0x229   : > { %v7149_v43 = vpop.f32.mrf.mxu1  ;;  %v7159_v59 = vpop.f32.mrf.mxu0 }
 0x22b   : > { %v7157_v18 = vpop.f32.mrf.mxu1  ;;  %v7167_v27 = vpop.f32.mrf.mxu0 }
 0x22c   : > { %8800 = vst [vmem:[#allocation31_spill] sm:$0xff] %v7167_v27  ;;  %v3555_v27 = vsel %vm1181_vm2, %v3461_v3, 0.0 }
 0x22d   : > { %v7161_v55 = vpop.f32.mrf.mxu1  ;;  %v7171_v14 = vpop.f32.mrf.mxu0  ;;  %3556 = vadd.xlane.f32.xlu1 %v3555_v27  ;;  %v2101_v27 = vadd.f32 %v7023_v22, %v7039_v34  ;;  %v2102_v22 = vadd.f32 %v7037_v32, %v7051_v39  ;;  %v2105_v32 = vadd.f32 %v7049_v38, %v7087_v20 }
 0x22f   : > { %v7169_v44 = vpop.f32.mrf.mxu1  ;;  %v7178_v12 = vpop.f32.mrf.mxu0 }
 0x230   : > { %8801 = vst [vmem:[#allocation32_spill] sm:$0xff] %v7178_v12 }
 0x231   : > { %v7173_v45 = vpop.f32.mrf.mxu1  ;;  %v7184_v56 = vpop.f32.mrf.mxu0 }
 0x233   : > { %v7180_v6 = vpop.f32.mrf.mxu1  ;;  %v7187_v2 = vpop.f32.mrf.mxu0 }
 0x234   : > { %8802 = vst [vmem:[#allocation33_spill] sm:$0xff] %v7187_v2 }
 0x235   : > { %v5800_v53 = vpop.f32.mrf.mxu1  ;;  %v7193_v0 = vpop.f32.mrf.mxu0 }
 0x236   : > { %v2131_v46 = vadd.f32 %v5800_v53, %v2099_v61 }
 0x237   : > { %v1970_v5 = vpop.f32.mrf.mxu1  ;;  %v7197_v53 = vpop.f32.mrf.mxu0 }
 0x238   : > { %v2129_v16 = vadd.f32 %v2097_v8, %v1970_v5  ;;  %v2195_v37 = vmul.f32 0.01, %v2131_v46  ;;  %8803 = vst [vmem:[#allocation34_spill] sm:$0xff] %v7197_v53  ;;  %vm2163_vm3 = vcmp.gt.f32.partialorder %v2131_v46, 0.0 }
 0x239   : > { %v5801_v12 = vpop.f32.mrf.mxu1  ;;  %v7201_v11 = vpop.f32.mrf.mxu0 }
 0x23a   : > { %v2132_v3 = vadd.f32 %v5801_v12, %v2100_v58  ;;  %v2193_v10 = vmul.f32 0.01, %v2129_v16  ;;  %v2227_v12 = vsel %vm2163_vm3, %v2131_v46, %v2195_v37  ;;  %vm2161_vm6 = vcmp.gt.f32.partialorder %v2129_v16, 0.0 }
 0x23b   : > { %v1973_v61 = vpop.f32.mrf.mxu1  ;;  %v7205_v58 = vpop.f32.mrf.mxu0 }
 0x23c   : > { %v2130_v2 = vadd.f32 %v2098_v60, %v1973_v61  ;;  %vm2164_vm4 = vcmp.gt.f32.partialorder %v2132_v3, 0.0  ;;  %v2196_v1 = vmul.f32 0.01, %v2132_v3  ;;  %8804 = vst [vmem:[#allocation35_spill] sm:$0xff] %v7205_v58  ;;  %v2225_v37 = vsel %vm2161_vm6, %v2129_v16, %v2193_v10 }
 0x23d   : > { %v5804_v25 = vpop.f32.mrf.mxu1  ;;  %v7209_v53 = vpop.f32.mrf.mxu0 }
 0x23e   : > { %vm2162_vm5 = vcmp.gt.f32.partialorder %v2130_v2, 0.0  ;;  %v2194_v15 = vmul.f32 0.01, %v2130_v2  ;;  %v2228_v5 = vsel %vm2164_vm4, %v2132_v3, %v2196_v1  ;;  %v2135_v8 = vadd.f32 %v5804_v25, %v2103_v57 }
 0x23f   : > { %v1986_v60 = vpop.f32.mrf.mxu1  ;;  %v2258_v50 = vpack.c.bf16 %v2228_v5, %v2227_v12  ;;  %v7213_v3 = vpop.f32.mrf.mxu0 }
 0x240   : > { %v2133_v61 = vadd.f32 %v2101_v27, %v1986_v60  ;;  %v2226_v31 = vsel %vm2162_vm5, %v2130_v2, %v2194_v15  ;;  %v2199_v46 = vmul.f32 0.01, %v2135_v8  ;;  %8805 = vst [vmem:[#allocation36_spill] sm:$0xff] %v7213_v3  ;;  %vm2167_vm8 = vcmp.gt.f32.partialorder %v2135_v8, 0.0 }
 0x241   : > { %v5805_v21 = vpop.f32.mrf.mxu1  ;;  %v2257_v1 = vpack.c.bf16 %v2226_v31, %v2225_v37  ;;  %v7217_v2 = vpop.f32.mrf.mxu0  ;;  %v2108_v31 = vadd.f32 %v7053_v40, %v7123_v41  ;;  %v2106_v40 = vadd.f32 %v7061_v47, %v7099_v29  ;;  %v2109_v47 = vadd.f32 %v7073_v4, %v7135_v48 }
 0x242   : > { %v2136_v34 = vadd.f32 %v5805_v21, %v2104_v17  ;;  %v2197_v25 = vmul.f32 0.01, %v2133_v61  ;;  %vm2165_vm9 = vcmp.gt.f32.partialorder %v2133_v61, 0.0  ;;  %v2231_v5 = vsel %vm2167_vm8, %v2135_v8, %v2199_v46 }
 0x243   : > { %v1989_v57 = vpop.f32.mrf.mxu1  ;;  %5846 = vmatprep.mubr.bf16.mxu0 %v2257_v1  ;;  %5894 = vmatprep.mubr.bf16.mxu1 %v2257_v1  ;;  %v7223_v27 = vpop.f32.mrf.mxu0  ;;  %v2111_v8 = vadd.f32 %v7065_v51, %v7159_v59  ;;  %v2112_v1 = vadd.f32 %v7077_v9, %v7171_v14 }
 0x244   : > { %vm2168_vm7 = vcmp.gt.f32.partialorder %v2136_v34, 0.0  ;;  %v2200_v58 = vmul.f32 0.01, %v2136_v34  ;;  %v2134_v26 = vadd.f32 %v2102_v22, %v1989_v57  ;;  %5847 = vmatmul.mubr.bf16.vlgmr.msra.gmra.mxu0 %v2258_v50  ;;  %5895 = vmatmul.mubr.bf16.vlgmr.msra.gmra.mxu1 %v2258_v50  ;;  %8806 = vst [vmem:[#allocation37_spill] sm:$0xff] %v7223_v27  ;;  %v2229_v15 = vsel %vm2165_vm9, %v2133_v61, %v2197_v25 }
 0x245   : > { %v5808_v21 = vpop.f32.mrf.mxu1  ;;  %v7228_v38 = vpop.f32.mrf.mxu0 }
 0x246   : > { %vm2166_vm10 = vcmp.gt.f32.partialorder %v2134_v26, 0.0  ;;  %v2198_v39 = vmul.f32 0.01, %v2134_v26  ;;  %v2139_v16 = vadd.f32 %v5808_v21, %v2107_v7  ;;  %v2232_v49 = vsel %vm2168_vm7, %v2136_v34, %v2200_v58 }
 0x247   : > { %v2002_v35 = vpop.f32.mrf.mxu1  ;;  %v2260_v17 = vpack.c.bf16 %v2232_v49, %v2231_v5  ;;  %v7232_v22 = vpop.f32.mrf.mxu0  ;;  %v2110_v49 = vadd.f32 %v7085_v19, %v7147_v24  ;;  %v2113_v19 = vadd.f32 %v7097_v28, %v7184_v56 }
 0x248   : > { %v2137_v10 = vadd.f32 %v2105_v32, %v2002_v35  ;;  %v2230_v12 = vsel %vm2166_vm10, %v2134_v26, %v2198_v39  ;;  %v2203_v50 = vmul.f32 0.01, %v2139_v16  ;;  %8807 = vst [vmem:[#allocation38_spill] sm:$0xff] %v7232_v22  ;;  %vm2171_vm12 = vcmp.gt.f32.partialorder %v2139_v16, 0.0 }
 0x249   : > { %v5809_v20 = vpop.f32.mrf.mxu1  ;;  %v2259_v60 = vpack.c.bf16 %v2230_v12, %v2229_v15  ;;  %v7236_v46 = vpop.f32.mrf.mxu0 }
 0x24a   : > { %v2140_v41 = vadd.f32 %v5809_v20, %v2108_v31  ;;  %v2201_v58 = vmul.f32 0.01, %v2137_v10  ;;  %vm2169_vm13 = vcmp.gt.f32.partialorder %v2137_v10, 0.0  ;;  %v2235_v39 = vsel %vm2171_vm12, %v2139_v16, %v2203_v50 }
 0x24b   : > { %v2005_v37 = vpop.f32.mrf.mxu1  ;;  %5850 = vmatprep.mubr.bf16.mxu0 %v2259_v60  ;;  %5898 = vmatprep.mubr.bf16.mxu1 %v2259_v60  ;;  %v7242_v26 = vpop.f32.mrf.mxu0  ;;  %v2115_v16 = vadd.f32 %v7089_v23, %v7201_v11 }
 0x24c   : > { %vm2172_vm11 = vcmp.gt.f32.partialorder %v2140_v41, 0.0  ;;  %v2204_v61 = vmul.f32 0.01, %v2140_v41  ;;  %v2138_v34 = vadd.f32 %v2106_v40, %v2005_v37  ;;  %5851 = vmatmul.mubr.bf16.gmra.mxu0 %v2260_v17  ;;  %5899 = vmatmul.mubr.bf16.gmra.mxu1 %v2260_v17  ;;  %8808 = vst [vmem:[#allocation39_spill] sm:$0xff] %v7242_v26  ;;  %v2233_v21 = vsel %vm2169_vm13, %v2137_v10, %v2201_v58 }
 0x24d   : > { %v5812_v57 = vpop.f32.mrf.mxu1  ;;  %v1378_v31 = vpop.f32.mrf.mxu0  ;;  %v2116_v40 = vadd.f32 %v7101_v30, %v7209_v53 }
 0x24e   : > { %vm2170_vm14 = vcmp.gt.f32.partialorder %v2138_v34, 0.0  ;;  %v2202_v29 = vmul.f32 0.01, %v2138_v34  ;;  %v2143_v25 = vadd.f32 %v5812_v57, %v2111_v8  ;;  %v2236_v51 = vsel %vm2172_vm11, %v2140_v41, %v2204_v61 }
 0x24f   : > { %v2018_v7 = vpop.f32.mrf.mxu1  ;;  %v2262_v35 = vpack.c.bf16 %v2236_v51, %v2235_v39  ;;  %v7248_v14 = vpop.f32.mrf.mxu0  ;;  %v2120_v39 = vadd.f32 %v7125_v54, %v1378_v31 }
 0x250   : > { %v2141_v59 = vadd.f32 %v2109_v47, %v2018_v7  ;;  %v2234_v32 = vsel %vm2170_vm14, %v2138_v34, %v2202_v29  ;;  %v2207_v9 = vmul.f32 0.01, %v2143_v25  ;;  %8809 = vst [vmem:[#allocation40_spill] sm:$0xff] %v7248_v14  ;;  %vm2175_vm0 = vcmp.gt.f32.partialorder %v2143_v25, 0.0 }
 0x251   : > { %v5813_v4 = vpop.f32.mrf.mxu1  ;;  %v2261_v48 = vpack.c.bf16 %v2234_v32, %v2233_v21  ;;  %v7252_v60 = vpop.f32.mrf.mxu0  ;;  %v2114_v47 = vadd.f32 %v7109_v33, %v7193_v0  ;;  %v2117_v33 = vadd.f32 %v7121_v13, %v7217_v2 }
 0x252   : > { %v2144_v15 = vadd.f32 %v5813_v4, %v2112_v1  ;;  %v2205_v5 = vmul.f32 0.01, %v2141_v59  ;;  %vm2173_vm1 = vcmp.gt.f32.partialorder %v2141_v59, 0.0  ;;  %v2239_v34 = vsel %vm2175_vm0, %v2143_v25, %v2207_v9 }
 0x253   : > { %v2021_v12 = vpop.f32.mrf.mxu1  ;;  %5854 = vmatprep.mubr.bf16.mxu0 %v2261_v48  ;;  %5902 = vmatprep.mubr.bf16.mxu1 %v2261_v48  ;;  %v7258_v50 = vpop.f32.mrf.mxu0  ;;  %v2119_v25 = vadd.f32 %v7113_v52, %v7236_v46 }
 0x254   : > { %vm2176_vm15 = vcmp.gt.f32.partialorder %v2144_v15, 0.0  ;;  %v2208_v10 = vmul.f32 0.01, %v2144_v15  ;;  %v2142_v20 = vadd.f32 %v2110_v49, %v2021_v12  ;;  %5855 = vmatmul.mubr.bf16.gmra.mxu0 %v2262_v35  ;;  %5903 = vmatmul.mubr.bf16.gmra.mxu1 %v2262_v35  ;;  %8810 = vst [vmem:[#allocation41_spill] sm:$0xff] %v7258_v50  ;;  %v2237_v58 = vsel %vm2173_vm1, %v2141_v59, %v2205_v5 }
 0x255   : > { %v5816_v17 = vpop.f32.mrf.mxu1  ;;  %v7262_v8 = vpop.f32.mrf.mxu0 }
 0x256   : > { %vm2174_vm2 = vcmp.gt.f32.partialorder %v2142_v20, 0.0  ;;  %v2206_v24 = vmul.f32 0.01, %v2142_v20  ;;  %v2147_v41 = vadd.f32 %v5816_v17, %v2115_v16  ;;  %v2240_v23 = vsel %vm2176_vm15, %v2144_v15, %v2208_v10 }
 0x257   : > { %v2034_v37 = vpop.f32.mrf.mxu1  ;;  %v2264_v57 = vpack.c.bf16 %v2240_v23, %v2239_v34  ;;  %v7266_v29 = vpop.f32.mrf.mxu0  ;;  %v2118_v10 = vadd.f32 %v7133_v36, %v7228_v38  ;;  %v2121_v36 = vadd.f32 %v7145_v63, %v7252_v60 }
 0x258   : > { %v2145_v11 = vadd.f32 %v2113_v19, %v2034_v37  ;;  %v2238_v61 = vsel %vm2174_vm2, %v2142_v20, %v2206_v24  ;;  %v2211_v53 = vmul.f32 0.01, %v2147_v41  ;;  %8811 = vst [vmem:[#allocation42_spill] sm:$0xff] %v7266_v29  ;;  %vm2179_vm4 = vcmp.gt.f32.partialorder %v2147_v41, 0.0 }
 0x259   : > { %v5817_v28 = vpop.f32.mrf.mxu1  ;;  %v2263_v56 = vpack.c.bf16 %v2238_v61, %v2237_v58  ;;  %v1394_v21 = vpop.f32.mrf.mxu0 }
 0x25a   : > { %v2148_v30 = vadd.f32 %v5817_v28, %v2116_v40  ;;  %v2209_v7 = vmul.f32 0.01, %v2145_v11  ;;  %vm2177_vm5 = vcmp.gt.f32.partialorder %v2145_v11, 0.0  ;;  %v2243_v9 = vsel %vm2179_vm4, %v2147_v41, %v2211_v53 }
 0x25b   : > { %v2037_v1 = vpop.f32.mrf.mxu1  ;;  %5858 = vmatprep.mubr.bf16.mxu0 %v2263_v56  ;;  %5906 = vmatprep.mubr.bf16.mxu1 %v2263_v56  ;;  %v7273_v48 = vpop.f32.mrf.mxu0  ;;  %v2123_v54 = vadd.f32 %v7137_v42, %v1394_v21 }
 0x25c   : > { %vm2180_vm3 = vcmp.gt.f32.partialorder %v2148_v30, 0.0  ;;  %v2212_v51 = vmul.f32 0.01, %v2148_v30  ;;  %v2146_v59 = vadd.f32 %v2114_v47, %v2037_v1  ;;  %5859 = vmatmul.mubr.bf16.gmra.mxu0 %v2264_v57  ;;  %5907 = vmatmul.mubr.bf16.gmra.mxu1 %v2264_v57  ;;  %8812 = vst [vmem:[#allocation43_spill] sm:$0xff] %v7273_v48  ;;  %v2241_v46 = vsel %vm2177_vm5, %v2145_v11, %v2209_v7 }
 0x25d   : > { %v5820_v32 = vpop.f32.mrf.mxu1  ;;  %v1398_v12 = vpop.f32.mrf.mxu0  ;;  %v2122_v1 = vadd.f32 %v7157_v18, %v7262_v8 }
 0x25e   : > { %vm2178_vm6 = vcmp.gt.f32.partialorder %v2146_v59, 0.0  ;;  %v2210_v0 = vmul.f32 0.01, %v2146_v59  ;;  %v2151_v4 = vadd.f32 %v5820_v32, %v2119_v25  ;;  %v2244_v49 = vsel %vm2180_vm3, %v2148_v30, %v2212_v51 }
 0x25f   : > { %v2050_v35 = vpop.f32.mrf.mxu1  ;;  %v2266_v2 = vpack.c.bf16 %v2244_v49, %v2243_v9  ;;  %v7280_v16 = vpop.f32.mrf.mxu0  ;;  %v2124_v23 = vadd.f32 %v7149_v43, %v1398_v12  ;;  %vm8739_vm3 = vcmask 1043456  }
 0x260   : > { %v2149_v52 = vadd.f32 %v2117_v33, %v2050_v35  ;;  %v2242_v15 = vsel %vm2178_vm6, %v2146_v59, %v2210_v0  ;;  %v2215_v31 = vmul.f32 0.01, %v2151_v4  ;;  %8813 = vst [vmem:[#allocation44_spill] sm:$0xff] %v7280_v16  ;;  %vm2183_vm8 = vcmp.gt.f32.partialorder %v2151_v4, 0.0 }
 0x261   : > { %v5821_v5 = vpop.f32.mrf.mxu1  ;;  %v2265_v13 = vpack.c.bf16 %v2242_v15, %v2241_v46  ;;  %v1404_v41 = vpop.f32.mrf.mxu0 }
 0x262   : > { %v2152_v20 = vadd.f32 %v5821_v5, %v2120_v39  ;;  %v2213_v19 = vmul.f32 0.01, %v2149_v52  ;;  %vm2181_vm9 = vcmp.gt.f32.partialorder %v2149_v52, 0.0  ;;  %v2247_v57 = vsel %vm2183_vm8, %v2151_v4, %v2215_v31 }
 0x263   : > { %v2053_v17 = vpop.f32.mrf.mxu1  ;;  %5862 = vmatprep.mubr.bf16.mxu0 %v2265_v13  ;;  %5910 = vmatprep.mubr.bf16.mxu1 %v2265_v13  ;;  %v7285_v11 = vpop.f32.mrf.mxu0  ;;  %v2125_v32 = vadd.f32 %v7169_v44, %v1404_v41 }
 0x264   : > { %vm2184_vm7 = vcmp.gt.f32.partialorder %v2152_v20, 0.0  ;;  %v2216_v24 = vmul.f32 0.01, %v2152_v20  ;;  %v2150_v40 = vadd.f32 %v2118_v10, %v2053_v17  ;;  %5863 = vmatmul.mubr.bf16.gmra.mxu0 %v2266_v2  ;;  %5911 = vmatmul.mubr.bf16.gmra.mxu1 %v2266_v2  ;;  %8814 = vst [vmem:[#allocation45_spill] sm:$0xff] %v7285_v11  ;;  %v2245_v28 = vsel %vm2181_vm9, %v2149_v52, %v2213_v19 }
 0x265   : > { %v5824_v37 = vpop.f32.mrf.mxu1  ;;  %v1408_v30 = vpop.f32.mrf.mxu0 }
 0x266   : > { %vm2182_vm10 = vcmp.gt.f32.partialorder %v2150_v40, 0.0  ;;  %v2214_v38 = vmul.f32 0.01, %v2150_v40  ;;  %v2155_v42 = vadd.f32 %v5824_v37, %v2123_v54  ;;  %v2248_v61 = vsel %vm2184_vm7, %v2152_v20, %v2216_v24 }
 0x267   : > { %v2066_v58 = vpop.f32.mrf.mxu1  ;;  %v2268_v53 = vpack.c.bf16 %v2248_v61, %v2247_v57  ;;  %v7291_v7 = vpop.f32.mrf.mxu0  ;;  %v2126_v2 = vadd.f32 %v7180_v6, %v1408_v30 }
 0x268   : > { %v2153_v34 = vadd.f32 %v2121_v36, %v2066_v58  ;;  %v2246_v56 = vsel %vm2182_vm10, %v2150_v40, %v2214_v38  ;;  %v2219_v47 = vmul.f32 0.01, %v2155_v42  ;;  %vm2187_vm11 = vcmp.gt.f32.partialorder %v2155_v42, 0.0  ;;  %8815 = vst [vmem:[#allocation46_spill] sm:$0xff] %v7291_v7  ;;  %v3865_v38 = vld [vmem:[%s8721_s9] sm:$0xf] }
 0x269   : > { %v5825_v63 = vpop.f32.mrf.mxu1  ;;  %v2267_v60 = vpack.c.bf16 %v2246_v56, %v2245_v28  ;;  %v1414_v33 = vpop.f32.mrf.mxu0  ;;  %5926 = vmatprep.subr.msk.mxu0 %vm8739_vm3, %v3865_v38 }
 0x26a   : > { %v2156_v43 = vadd.f32 %v5825_v63, %v2124_v23  ;;  %v2217_v59 = vmul.f32 0.01, %v2153_v34  ;;  %vm2185_vm13 = vcmp.gt.f32.partialorder %v2153_v34, 0.0  ;;  %v2251_v39 = vsel %vm2187_vm11, %v2155_v42, %v2219_v47  ;;  %5927 = vmatpush3.msk.msra.mxu0 %vm8739_vm3, %v3865_v38  ;;  %v7304_v42 = vpop.xlane.xlu0 %3463  ;;  %v7306_v23 = vpop.xlane.xlu1 %3469 }
 0x26b   : > { %v2069_v51 = vpop.f32.mrf.mxu1  ;;  %5866 = vmatprep.mubr.bf16.mxu0 %v2267_v60  ;;  %5914 = vmatprep.mubr.bf16.mxu1 %v2267_v60  ;;  %v2127_v18 = vadd.f32 %v7161_v55, %v1414_v33  ;;  %v7295_v35 = vpop.f32.mrf.mxu0  ;;  %vm3558_vm4 = vcmp.gt.f32.partialorder %v7304_v42, 0.0  ;;  %vm3560_vm5 = vcmp.gt.f32.partialorder %v7306_v23, 0.0 }
 0x26c   : > { %vm2188_vm12 = vcmp.gt.f32.partialorder %v2156_v43, 0.0  ;;  %v2220_v25 = vmul.f32 0.01, %v2156_v43  ;;  %v2154_v21 = vadd.f32 %v2122_v1, %v2069_v51  ;;  %5867 = vmatmul.mubr.bf16.gmra.mxu0 %v2268_v53  ;;  %5915 = vmatmul.mubr.bf16.gmra.mxu1 %v2268_v53  ;;  %8816 = vst [vmem:[#allocation47_spill] sm:$0xff] %v7295_v35  ;;  %v2249_v15 = vsel %vm2185_vm13, %v2153_v34, %v2217_v59 }
 0x26d   : > { %v5828_v0 = vpop.f32.mrf.mxu1  ;;  %v1418_v44 = vpop.f32.mrf.mxu0 }
 0x26e   : > { %vm2186_vm14 = vcmp.gt.f32.partialorder %v2154_v21, 0.0  ;;  %v2218_v4 = vmul.f32 0.01, %v2154_v21  ;;  %v2252_v8 = vsel %vm2188_vm12, %v2156_v43, %v2220_v25  ;;  %v2159_v12 = vadd.f32 %v5828_v0, %v2127_v18  ;;  %v7308_v58 = vpop.xlane.xlu0 %3466  ;;  %v7310_v61 = vpop.xlane.xlu1 %3472 }
 0x26f   : > { %v2082_v49 = vpop.f32.mrf.mxu1  ;;  %v2270_v52 = vpack.c.bf16 %v2252_v8, %v2251_v39  ;;  %v2128_v10 = vadd.f32 %v7173_v45, %v1418_v44  ;;  %v7334_v51 = vpop.f32.mrf.mxu0  ;;  %vm3559_vm6 = vcmp.gt.f32.partialorder %v7308_v58, 0.0  ;;  %vm3561_vm8 = vcmp.gt.f32.partialorder %v7310_v61, 0.0 }
 0x270   : > { %v2157_v46 = vadd.f32 %v2125_v32, %v2082_v49  ;;  %v2250_v9 = vsel %vm2186_vm14, %v2154_v21, %v2218_v4  ;;  %v2223_v31 = vmul.f32 0.01, %v2159_v12  ;;  %vm2191_vm0 = vcmp.gt.f32.partialorder %v2159_v12, 0.0  ;;  %8817 = vst [vmem:[#allocation48_spill] sm:$0xff] %v7334_v51 }
 0x271   : > { %v5829_v5 = vpop.f32.mrf.mxu1  ;;  %v2269_v13 = vpack.c.bf16 %v2250_v9, %v2249_v15 }
 0x272   : > { %v2221_v55 = vmul.f32 0.01, %v2157_v46  ;;  %vm2189_vm15 = vcmp.gt.f32.partialorder %v2157_v46, 0.0  ;;  %v2160_v17 = vadd.f32 %v5829_v5, %v2128_v10  ;;  %v2255_v37 = vsel %vm2191_vm0, %v2159_v12, %v2223_v31  ;;  %v7312_v34 = vpop.xlane.xlu0 %3475  ;;  %v7314_v28 = vpop.xlane.xlu1 %3478 }
 0x273   : > { %v2085_v20 = vpop.f32.mrf.mxu1  ;;  %5870 = vmatprep.mubr.bf16.mxu0 %v2269_v13  ;;  %5918 = vmatprep.mubr.bf16.mxu1 %v2269_v13  ;;  %vm3562_vm9 = vcmp.gt.f32.partialorder %v7312_v34, 0.0  ;;  %vm3563_vm10 = vcmp.gt.f32.partialorder %v7314_v28, 0.0 }
 0x274   : > { %v2158_v54 = vadd.f32 %v2126_v2, %v2085_v20  ;;  %5871 = vmatmul.mubr.bf16.gmra.mxu0 %v2270_v52  ;;  %5919 = vmatmul.mubr.bf16.gmra.mxu1 %v2270_v52  ;;  %vm2192_vm2 = vcmp.gt.f32.partialorder %v2160_v17, 0.0  ;;  %v2224_v24 = vmul.f32 0.01, %v2160_v17  ;;  %v2253_v40 = vsel %vm2189_vm15, %v2157_v46, %v2221_v55 }
 0x276   : > { %vm2190_vm1 = vcmp.gt.f32.partialorder %v2158_v54, 0.0  ;;  %v2222_v19 = vmul.f32 0.01, %v2158_v54  ;;  %v2256_v45 = vsel %vm2192_vm2, %v2160_v17, %v2224_v24  ;;  %v7316_v56 = vpop.xlane.xlu0 %3481  ;;  %v7318_v57 = vpop.xlane.xlu1 %3484 }
 0x277   : > { %v2272_v36 = vpack.c.bf16 %v2256_v45, %v2255_v37  ;;  %vm3564_vm11 = vcmp.gt.f32.partialorder %v7316_v56, 0.0  ;;  %vm3565_vm12 = vcmp.gt.f32.partialorder %v7318_v57, 0.0 }
 0x278   : > { %v2254_v41 = vsel %vm2190_vm1, %v2158_v54, %v2222_v19 }
 0x279   : > { %v2271_v6 = vpack.c.bf16 %v2254_v41, %v2253_v40 }
 0x27a   : > { %v7320_v47 = vpop.xlane.xlu0 %3487  ;;  %v7322_v30 = vpop.xlane.xlu1 %3490 }
 0x27b   : > { %5874 = vmatprep.mubr.bf16.mxu0 %v2271_v6  ;;  %5922 = vmatprep.mubr.bf16.mxu1 %v2271_v6  ;;  %vm3566_vm13 = vcmp.gt.f32.partialorder %v7320_v47, 0.0  ;;  %vm3567_vm14 = vcmp.gt.f32.partialorder %v7322_v30, 0.0 }
 0x27c   : > { %5875 = vmatmul.mubr.bf16.gmra.mxu0 %v2272_v36  ;;  %5923 = vmatmul.mubr.bf16.gmra.mxu1 %v2272_v36 }
 0x27e   : > { %v7324_v63 = vpop.xlane.xlu0 %3493  ;;  %v7326_v60 = vpop.xlane.xlu1 %3496 }
 0x27f   : > { %vm3568_vm15 = vcmp.gt.f32.partialorder %v7324_v63, 0.0  ;;  %vm3569_vm0 = vcmp.gt.f32.partialorder %v7326_v60, 0.0 }
 0x282   : > { %v7328_v53 = vpop.xlane.xlu0 %3499  ;;  %v7330_v1 = vpop.xlane.xlu1 %3502 }
 0x283   : > { %vm3571_vm1 = vcmp.gt.f32.partialorder %v7330_v1, 0.0 }
 0x286   : > { %v7332_v43 = vpop.xlane.xlu0 %3505  ;;  %v7336_v59 = vpop.xlane.xlu1 %3508 }
 0x28a   : > { %v7347_v0 = vpop.xlane.xlu0 %3511  ;;  %v7355_v18 = vpop.xlane.xlu1 %3514 }
 0x28b   : > { %vm3574_vm7 = vcmp.gt.f32.partialorder %v7347_v0, 0.0 }
 0x28e   : > { %v7367_v15 = vpop.xlane.xlu0 %3517  ;;  %v7373_v44 = vpop.xlane.xlu1 %3520 }
 0x28f   : > { %vm3576_vm2 = vcmp.gt.f32.partialorder %v7367_v15, 0.0  ;;  %vm3577_vm3 = vcmp.gt.f32.partialorder %v7373_v44, 0.0 }
 0x292   : > { %v7385_v20 = vpop.xlane.xlu0 %3523  ;;  %v7393_v31 = vpop.xlane.xlu1 %3526 }
 0x296   : > { %v7405_v41 = vpop.xlane.xlu0 %3529  ;;  %v7411_v45 = vpop.xlane.xlu1 %3532 }
 0x29a   : > { %v7423_v27 = vpop.xlane.xlu0 %3535  ;;  %v7431_v29 = vpop.xlane.xlu1 %3538 }
 0x29e   : > { %v7443_v11 = vpop.xlane.xlu0 %3541  ;;  %v7450_v62 = vpop.xlane.xlu1 %3544 }
 0x304   : > { %v7338_v25 = vpop.f32.mrf.mxu0  ;;  %v7340_v21 = vpop.f32.mrf.mxu1 }
 0x305   : > { %2505 = vadd.xlane.f32.xlu0 %v7338_v25 }
 0x306   : > { %v7343_v32 = vpop.f32.mrf.mxu0  ;;  %v7345_v33 = vpop.f32.mrf.mxu1 }
 0x308   : > { %v7349_v39 = vpop.f32.mrf.mxu0  ;;  %v7351_v4 = vpop.f32.mrf.mxu1 }
 0x309   : > { %2501 = vadd.xlane.f32.xlu0 %v7343_v32  ;;  %2507 = vadd.xlane.f32.xlu1 %v7349_v39  ;;  %v7499_v23 = vsel %vm3561_vm8, %v7351_v4, -1e+30  ;;  %vm3580_vm8 = vcmp.gt.f32.partialorder %v7405_v41, 0.0 }
 0x30a   : > { %v7357_v8 = vpop.f32.mrf.mxu0  ;;  %v7359_v49 = vpop.f32.mrf.mxu1 }
 0x30b   : > { %v7518_v61 = vsel %vm3559_vm6, %v7359_v49, -1e+30 }
 0x30c   : > { %v7361_v52 = vpop.f32.mrf.mxu0  ;;  %v7363_v46 = vpop.f32.mrf.mxu1 }
 0x30d   : > { %2503 = vadd.xlane.f32.xlu1 %v7357_v8  ;;  %2513 = vadd.xlane.f32.xlu0 %v7361_v52  ;;  %v7504_v42 = vsel %vm3564_vm11, %v7363_v46, -1e+30 }
 0x30e   : > { %v7369_v9 = vpop.f32.mrf.mxu0  ;;  %v7371_v12 = vpop.f32.mrf.mxu1 }
 0x30f   : > { %8818 = vst [vmem:[#allocation49_spill] sm:$0xff] %v7369_v9 }
 0x310   : > { %v7375_v5 = vpop.f32.mrf.mxu0  ;;  %v7377_v13 = vpop.f32.mrf.mxu1 }
 0x311   : > { %8819 = vst [vmem:[#allocation50_spill] sm:$0xff] %v7375_v5  ;;  %2509 = vadd.xlane.f32.xlu0 %v7369_v9  ;;  %2515 = vadd.xlane.f32.xlu1 %v7375_v5  ;;  %v7523_v56 = vsel %vm3565_vm12, %v7377_v13, -1e+30 }
 0x312   : > { %v7381_v2 = vpop.f32.mrf.mxu0  ;;  %v7383_v10 = vpop.f32.mrf.mxu1 }
 0x313   : > { %8820 = vst [vmem:[#allocation51_spill] sm:$0xff] %v7381_v2  ;;  %v7528_v34 = vsel %vm3563_vm10, %v7383_v10, -1e+30 }
 0x314   : > { %v7387_v55 = vpop.f32.mrf.mxu0  ;;  %v7389_v54 = vpop.f32.mrf.mxu1 }
 0x315   : > { %8821 = vst [vmem:[#allocation52_spill] sm:$0xff] %v7387_v55  ;;  %2511 = vadd.xlane.f32.xlu1 %v7381_v2  ;;  %2521 = vadd.xlane.f32.xlu0 %v7387_v55  ;;  %v7550_v13 = vsel %vm3568_vm15, %v7389_v54, -1e+30 }
 0x316   : > { %v7395_v17 = vpop.f32.mrf.mxu0  ;;  %v7397_v19 = vpop.f32.mrf.mxu1 }
 0x317   : > { %8822 = vst [vmem:[#allocation53_spill] sm:$0xff] %v7395_v17  ;;  %v7565_v63 = vsel %vm3566_vm13, %v7397_v19, -1e+30  ;;  %vm8844_vm13 = vcmp.gt.f32.partialorder %v7332_v43, 0.0 }
 0x318   : > { %v7399_v24 = vpop.f32.mrf.mxu0  ;;  %v7401_v40 = vpop.f32.mrf.mxu1 }
 0x319   : > { %8823 = vst [vmem:[#allocation54_spill] sm:$0xff] %v7399_v24  ;;  %2517 = vadd.xlane.f32.xlu0 %v7395_v17  ;;  %2523 = vadd.xlane.f32.xlu1 %v7399_v24  ;;  %v7575_v2 = vsel %vm3569_vm0, %v7401_v40, -1e+30 }
 0x31a   : > { %v7407_v6 = vpop.f32.mrf.mxu0  ;;  %v7409_v37 = vpop.f32.mrf.mxu1 }
 0x31b   : > { %8824 = vst [vmem:[#allocation55_spill] sm:$0xff] %v7407_v6  ;;  %v7580_v5 = vsel %vm3567_vm14, %v7409_v37, -1e+30  ;;  %vm8847_vm14 = vcmp.gt.f32.partialorder %v7328_v53, 0.0 }
 0x31c   : > { %v7413_v36 = vpop.f32.mrf.mxu0  ;;  %v7415_v38 = vpop.f32.mrf.mxu1 }
 0x31d   : > { %8825 = vst [vmem:[#allocation56_spill] sm:$0xff] %v7413_v36  ;;  %2519 = vadd.xlane.f32.xlu1 %v7407_v6  ;;  %2529 = vadd.xlane.f32.xlu0 %v7413_v36  ;;  %v7487_v36 = vsel %vm3558_vm4, %v7345_v33, -1e+30  ;;  %v7513_v33 = vpop.xlane.xlu1 %3550  ;;  %vm3575_vm4 = vcmp.gt.f32.partialorder %v7355_v18, 0.0  ;;  %v7585_v47 = vsel %vm8844_vm13, %v7415_v38, -1e+30 }
 0x31e   : > { %v7419_v3 = vpop.f32.mrf.mxu0  ;;  %v7421_v22 = vpop.f32.mrf.mxu1  ;;  %vm8849_vm13 = vcmp.gt.f32.partialorder %v7336_v59, 0.0 }
 0x31f   : > { %8826 = vst [vmem:[#allocation57_spill] sm:$0xff] %v7419_v3  ;;  %v7596_v30 = vsel %vm8847_vm14, %v7421_v22, -1e+30 }
 0x320   : > { %v7425_v14 = vpop.f32.mrf.mxu0  ;;  %v7427_v26 = vpop.f32.mrf.mxu1 }
 0x321   : > { %8827 = vst [vmem:[#allocation58_spill] sm:$0xff] %v7425_v14  ;;  %2525 = vadd.xlane.f32.xlu0 %v7419_v3  ;;  %2531 = vadd.xlane.f32.xlu1 %v7425_v14  ;;  %v7598_v43 = vpop.xlane.xlu1 %3556 }
 0x322   : > { %v7433_v50 = vpop.f32.mrf.mxu0  ;;  %v7435_v16 = vpop.f32.mrf.mxu1 }
 0x323   : > { %8828 = vst [vmem:[#allocation59_spill] sm:$0xff] %v7433_v50 }
 0x324   : > { %v7437_v48 = vpop.f32.mrf.mxu0  ;;  %v7439_v7 = vpop.f32.mrf.mxu1 }
 0x325   : > { %8829 = vst [vmem:[#allocation60_spill] sm:$0xff] %v7437_v48  ;;  %2527 = vadd.xlane.f32.xlu1 %v7433_v50  ;;  %2537 = vadd.xlane.f32.xlu0 %v7437_v48 }
 0x326   : > { %v7445_v35 = vpop.f32.mrf.mxu0  ;;  %v7447_v51 = vpop.f32.mrf.mxu1 }
 0x327   : > { %8830 = vst [vmem:[#allocation61_spill] sm:$0xff] %v7445_v35 }
 0x328   : > { %v7455_v50 = vpop.f32.mrf.mxu0  ;;  %v7457_v48 = vpop.f32.mrf.mxu1 }
 0x329   : > { %8831 = vst [vmem:[#allocation62_spill] sm:$0xff] %v7455_v50  ;;  %2533 = vadd.xlane.f32.xlu0 %v7445_v35  ;;  %2539 = vadd.xlane.f32.xlu1 %v7455_v50  ;;  %v7477_v50 = vpop.xlane.xlu0 %3547  ;;  %v7482_v35 = vsel %vm3560_vm5, %v7340_v21, -1e+30  ;;  %v7509_v21 = vsel %vm3562_vm9, %v7371_v12, -1e+30  ;;  %vm8835_vm5 = vcmask 31744  }
 0x32a   : > { %v7469_v14 = vpop.f32.mrf.mxu0  ;;  %v7471_v3 = vpop.f32.mrf.mxu1  ;;  %v3689_v58 = vsel %vm8835_vm5, %v7482_v35, -inf  ;;  %vm8836_vm6 = vmmov %vm8835_vm5  ;;  %vm3581_vm9 = vcmp.gt.f32.partialorder %v7411_v45, 0.0  ;;  %v7645_v15 = vsel %vm3577_vm3, %v7457_v48, -1e+30 }
 0x32b   : > { %8832 = vst [vmem:[#allocation63_spill] sm:$0xff] %v7469_v14  ;;  %v3687_v49 = vsel %vm8836_vm6, %v7487_v36, -inf  ;;  %vm8837_vm11 = vmmov %vm8835_vm5 }
 0x32c   : > { %v7492_v6 = vpop.f32.mrf.mxu0  ;;  %v7494_v24 = vpop.f32.mrf.mxu1  ;;  %v3690_v28 = vsel %vm8837_vm11, %v7499_v23, -inf  ;;  %vm8838_vm10 = vmmov %vm8835_vm5 }
 0x32d   : > { %8833 = vst [vmem:[#allocation64_spill] sm:$0xff] %v7492_v6  ;;  %2535 = vadd.xlane.f32.xlu1 %v7469_v14  ;;  %2545 = vadd.xlane.f32.xlu0 %v7492_v6  ;;  %v3695_v57 = vsel %vm8838_vm10, %v7504_v42, -inf  ;;  %vm8839_vm12 = vmmov %vm8835_vm5  ;;  %vm3578_vm5 = vcmp.gt.f32.partialorder %v7385_v20, 0.0  ;;  %v7570_v54 = vpop.xlane.xlu0 %3553 }
 0x32e   : > { %v7531_v4 = vpop.f32.mrf.mxu0  ;;  %v7533_v46 = vpop.f32.mrf.mxu1  ;;  %v3691_v12 = vsel %vm8839_vm12, %v7509_v21, -inf  ;;  %vm8841_vm11 = vmmov %vm8836_vm6  ;;  %v3696_v60 = vmax.f32 %v3689_v58, %v3695_v57  ;;  %v7605_v58 = vsel %vm8849_vm13, %v7427_v26, -1e+30  ;;  %vm3588_vm14 = vcmp.gt.f32.partialorder %v7570_v54, 0.0 }
 0x32f   : > { %8834 = vst [vmem:[#allocation65_spill] sm:$0xff] %v7531_v4  ;;  %v3688_v14 = vsel %vm8841_vm11, %v7518_v61, -inf  ;;  %vm8842_vm10 = vmmov %vm8836_vm6  ;;  %vm3579_vm11 = vcmp.gt.f32.partialorder %v7393_v31, 0.0  ;;  %v3692_v40 = vmax.f32 %v3687_v49, %v3691_v12  ;;  %v7621_v26 = vsel %vm3571_vm1, %v7435_v16, -1e+30 }
 0x330   : > { %v7553_v10 = vpop.f32.mrf.mxu0  ;;  %v5917_v6 = vpop.f32.mrf.mxu1  ;;  %v3697_v17 = vsel %vm8842_vm10, %v7523_v56, -inf  ;;  %vm8843_vm12 = vmmov %vm8836_vm6  ;;  %vm3583_vm10 = vcmp.gt.f32.partialorder %v7431_v29, 0.0  ;;  %vm3589_vm1 = vcmp.gt.f32.partialorder %v7598_v43, 0.0 }
 0x331   : > { %8840 = vst [vmem:[#allocation66_spill] sm:$0xff] %v7553_v10  ;;  %v3693_v55 = vsel %vm8843_vm12, %v7528_v34, -inf  ;;  %2541 = vadd.xlane.f32.xlu0 %v7531_v4  ;;  %2547 = vadd.xlane.f32.xlu1 %v7553_v10  ;;  %vm8846_vm0 = vmmov %vm8836_vm6  ;;  %v3698_v37 = vmax.f32 %v3690_v28, %v3697_v17  ;;  %v7630_v17 = vsel %vm3576_vm2, %v7439_v7, -1e+30  ;;  %v7635_v28 = vsel %vm3574_vm7, %v7447_v51, -1e+30 }
 0x332   : > { %v7589_v19 = vpop.f32.mrf.mxu0  ;;  %v3386_v10 = vpop.f32.mrf.mxu1  ;;  %v3703_v4 = vsel %vm8846_vm0, %v7550_v13, -inf  ;;  %v3694_v38 = vmax.f32 %v3688_v14, %v3693_v55  ;;  %vm8848_vm12 = vmmov %vm8846_vm0  ;;  %vm3586_vm0 = vcmp.gt.f32.partialorder %v7477_v50, 0.0  ;;  %v3701_v14 = vsel %vm8836_vm6, %v7580_v5, -inf }
 0x333   : > { %8845 = vst [vmem:[#allocation67_spill] sm:$0xff] %v7589_v19  ;;  %v3699_v9 = vsel %vm8848_vm12, %v7565_v63, -inf  ;;  %vm8851_vm15 = vmmov %vm8836_vm6  ;;  %v3704_v59 = vmax.f32 %v3696_v60, %v3703_v4  ;;  %v3713_v4 = vsel %vm8836_vm6, %v7605_v58, -inf  ;;  %v7650_v7 = vsel %vm3575_vm4, %v7471_v3, -1e+30 }
 0x334   : > { %v7608_v49 = vpop.f32.mrf.mxu0  ;;  %v5920_v57 = vpop.f32.mrf.mxu1  ;;  %v3705_v22 = vsel %vm8851_vm15, %v7575_v2, -inf  ;;  %vm8852_vm12 = vmmov %vm8836_vm6  ;;  %v3700_v12 = vmax.f32 %v3692_v40, %v3699_v9  ;;  %v3702_v0 = vmax.f32 %v3694_v38, %v3701_v14  ;;  %v7662_v3 = vsel %vm3581_vm9, %v5917_v6, -1e+30 }
 0x335   : > { %8850 = vst [vmem:[#allocation68_spill] sm:$0xff] %v7608_v49  ;;  %v3711_v53 = vsel %vm8852_vm12, %v7585_v47, -inf  ;;  %2543 = vadd.xlane.f32.xlu1 %v7589_v19  ;;  %2553 = vadd.xlane.f32.xlu0 %v7608_v49  ;;  %vm8853_vm13 = vmmov %vm8836_vm6  ;;  %v3706_v51 = vmax.f32 %v3698_v37, %v3705_v22  ;;  %v7673_v22 = vsel %vm3580_vm8, %v7494_v24, -1e+30  ;;  %vm8859_vm9 = vcmp.gt.f32.partialorder %v7450_v62, 0.0 }
 0x336   : > { %v3707_v55 = vsel %vm8853_vm13, %v7596_v30, -inf  ;;  %v7637_v16 = vpop.f32.mrf.mxu0  ;;  %v3399_v1 = vpop.f32.mrf.mxu1  ;;  %v3712_v60 = vmax.f32 %v3704_v59, %v3711_v53  ;;  %vm8854_vm7 = vmmov %vm8836_vm6  ;;  %v7680_v53 = vsel %vm3578_vm5, %v7533_v46, -1e+30  ;;  %v7684_v59 = vsel %vm3579_vm11, %v3386_v10, -1e+30 }
 0x337   : > { %v3709_v49 = vsel %vm8854_vm7, %v7621_v26, -inf  ;;  %v3708_v19 = vmax.f32 %v3700_v12, %v3707_v55  ;;  %vm8855_vm2 = vmmov %vm8836_vm6  ;;  %v3714_v18 = vmax.f32 %v3706_v51, %v3713_v4  ;;  %vm8861_vm12 = vcmp.gt.f32.partialorder %v7443_v11, 0.0 }
 0x338   : > { %v7654_v9 = vpop.f32.mrf.mxu0  ;;  %v5921_v40 = vpop.f32.mrf.mxu1  ;;  %v3719_v44 = vsel %vm8855_vm2, %v7630_v17, -inf  ;;  %vm8856_vm3 = vmmov %vm8855_vm2  ;;  %v3710_v45 = vmax.f32 %v3702_v0, %v3709_v49  ;;  %v7694_v49 = vsel %vm8861_vm12, %v5920_v57, -1e+30  ;;  %vm8864_vm11 = vcmp.gt.f32.partialorder %v7423_v27, 0.0 }
 0x339   : > { %v3715_v48 = vsel %vm8856_vm3, %v7635_v28, -inf  ;;  %2549 = vadd.xlane.f32.xlu0 %v7637_v16  ;;  %2555 = vadd.xlane.f32.xlu1 %v7654_v9  ;;  %vm8857_vm4 = vmmov %vm8855_vm2  ;;  %v7688_v55 = vsel %vm8859_vm9, %v5921_v40, -1e+30  ;;  %v3720_v41 = vmax.f32 %v3712_v60, %v3719_v44  ;;  %v7702_v62 = vsel %vm8864_vm11, %v3399_v1, -1e+30 }
 0x33a   : > { %v3721_v37 = vsel %vm8857_vm4, %v7645_v15, -inf  ;;  %vm8858_vm15 = vmmov %vm8855_vm2  ;;  %v7675_v14 = vpop.f32.mrf.mxu0  ;;  %v3402_v6 = vpop.f32.mrf.mxu1  ;;  %v3716_v24 = vmax.f32 %v3708_v19, %v3715_v48  ;;  %v3735_v29 = vsel %vm8855_vm2, %v7694_v49, -inf  ;;  %vm3587_vm4 = vcmp.gt.f32.partialorder %v7513_v33, 0.0 }
 0x33b   : > { %v3717_v38 = vsel %vm8858_vm15, %v7650_v7, -inf  ;;  %vm8860_vm8 = vmmov %vm8855_vm2  ;;  %v3722_v4 = vmax.f32 %v3714_v18, %v3721_v37  ;;  %v7706_v10 = vsel %vm3583_vm10, %v3402_v6, -1e+30  ;;  %vm3761_vm9 = vcmask 24576  }
 0x33c   : > { %v3729_v12 = vsel %vm8860_vm8, %v7662_v3, -inf  ;;  %v7696_v20 = vpop.f32.mrf.mxu0  ;;  %v5924_v46 = vpop.f32.mrf.mxu1  ;;  %vm8863_vm5 = vmmov %vm8855_vm2  ;;  %v3718_v11 = vmax.f32 %v3710_v45, %v3717_v38 }
 0x33d   : > { %8862 = vst [vmem:[#allocation69_spill] sm:$0xff] %v7696_v20  ;;  %v3727_v31 = vsel %vm8863_vm5, %v7673_v22, -inf  ;;  %2551 = vadd.xlane.f32.xlu1 %v7675_v14  ;;  %vm8865_vm13 = vmmov %vm8855_vm2  ;;  %v3730_v1 = vmax.f32 %v3722_v4, %v3729_v12  ;;  %v7721_v60 = vsel %vm3588_vm14, %v5924_v46, -1e+30 }
 0x33e   : > { %v3723_v19 = vsel %vm8865_vm13, %v7680_v53, -inf  ;;  %vm8866_vm6 = vmmov %vm8855_vm2  ;;  %v7715_v0 = vpop.f32.mrf.mxu0  ;;  %v3415_v27 = vpop.f32.mrf.mxu1  ;;  %v3728_v44 = vmax.f32 %v3720_v41, %v3727_v31 }
 0x33f   : > { %v3725_v57 = vsel %vm8866_vm6, %v7684_v59, -inf  ;;  %vm8867_vm7 = vmmov %vm8855_vm2  ;;  %v7725_v40 = vsel %vm3586_vm0, %v3415_v27, -1e+30  ;;  %2557 = vadd.xlane.f32.xlu0 %v7715_v0  ;;  %v3724_v38 = vmax.f32 %v3716_v24, %v3723_v19 }
 0x340   : > { %v3737_v51 = vsel %vm8867_vm7, %v7688_v55, -inf  ;;  %vm8868_vm10 = vmmov %vm8855_vm2  ;;  %v7733_v37 = vpop.f32.mrf.mxu0  ;;  %v5925_v54 = vpop.f32.mrf.mxu1  ;;  %v3726_v6 = vmax.f32 %v3718_v11, %v3725_v57  ;;  %v3736_v12 = vmax.f32 %v3728_v44, %v3735_v29 }
 0x341   : > { %v3731_v48 = vsel %vm8868_vm10, %v7702_v62, -inf  ;;  %vm8869_vm3 = vmmov %vm8855_vm2  ;;  %v3738_v45 = vmax.f32 %v3730_v1, %v3737_v51  ;;  %v7737_v50 = vsel %vm3589_vm1, %v5925_v54, -1e+30 }
 0x342   : > { %v3733_v18 = vsel %vm8869_vm3, %v7706_v10, -inf  ;;  %vm8870_vm0 = vmmov %vm8855_vm2  ;;  %v7745_v31 = vpop.f32.mrf.mxu0  ;;  %v3418_v27 = vpop.f32.mrf.mxu1  ;;  %v3732_v24 = vmax.f32 %v3724_v38, %v3731_v48 }
 0x343   : > { %v3743_v41 = vsel %vm8870_vm0, %v7721_v60, -inf  ;;  %vm8871_vm14 = vmmov %vm8870_vm0  ;;  %8873 = vst [vmem:[#allocation70_spill] sm:$0xff] %v7745_v31  ;;  %v3734_v11 = vmax.f32 %v3726_v6, %v3733_v18  ;;  %v7749_v43 = vsel %vm3587_vm4, %v3418_v27, -1e+30  ;;  %2561 = vadd.xlane.f32.xlu0 %v7696_v20  ;;  %2559 = vadd.xlane.f32.xlu1 %v7745_v31  ;;  %v2498_v6 = vlaneseq  ;;  %v7756_v27 = vld [vmem:[#allocation4] sm:$0x1] }
 0x344   : > { %v3739_v46 = vsel %vm8871_vm14, %v7725_v40, -inf  ;;  %vm8872_vm15 = vmmov %vm8870_vm0  ;;  %v3744_v51 = vmax.f32 %v3736_v12, %v3743_v41  ;;  %8875 = vst [vmem:[#allocation71_spill] sm:$0xff] %v7756_v27 }
 0x345   : > { %v3745_v4 = vsel %vm8872_vm15, %v7737_v50, -inf  ;;  %vm8874_vm1 = vmmov %vm8870_vm0  ;;  %v3740_v1 = vmax.f32 %v3732_v24, %v3739_v46  ;;  %v7759_v31 = vshrl.u32 %v2498_v6, 7 }
 0x346   : > { %v3746_v19 = vmax.f32 %v3738_v45, %v3745_v4  ;;  %v3741_v57 = vsel %vm8874_vm1, %v7749_v43, -inf  ;;  %vm8878_vm8 = vmmov %vm8870_vm0 }
 0x347   : > { %v3742_v29 = vmax.f32 %v3734_v11, %v3741_v57  ;;  %2563 = vadd.xlane.f32.xlu1 %v7733_v37  ;;  %8876 = vst [vmem:[#allocation72_spill] sm:$0xff] %v7759_v31  ;;  %v8758_v41 = vsub.s32 0, %v7759_v31  ;;  %vm8879_vm12 = vmmov %vm8870_vm0 }
 0x348   : > { %v3748_v44 = vmax.f32 %v3744_v51, %v3746_v19  ;;  %vm8880_vm5 = vmmov %vm8870_vm0 }
 0x349   : > { %v3747_v54 = vmax.f32 %v3740_v1, %v3742_v29  ;;  %vm8881_vm11 = vmmov %vm8870_vm0 }
 0x34a   : > { %vm8882_vm13 = vmmov %vm8870_vm0 }
 0x34b   : > { %v3749_v48 = vmax.f32 %v3747_v54, %v3748_v44  ;;  %vm8883_vm6 = vmmov %vm8870_vm0 }
 0x34c   : > { %vm8884_vm7 = vmmov %vm8870_vm0 }
 0x34d   : > { %v3750_v18 = vrot.slane %v3749_v48, 4  ;;  %vm8885_vm2 = vmmov %vm8870_vm0 }
 0x34e   : > { %vm8886_vm10 = vmmov %vm8870_vm0 }
 0x34f   : > { %v3751_v38 = vmax.f32 %v3749_v48, %v3750_v18  ;;  %vm8887_vm3 = vmmov %vm8870_vm0 }
 0x350   : > { %vm8888_vm4 = vmmov %vm8870_vm0 }
 0x351   : > { %v3752_v33 = vrot.slane %v3751_v38, 2  ;;  %vm8889_vm14 = vmmov %vm8870_vm0 }
 0x352   : > { %vm8891_vm15 = vmmov %vm8870_vm0 }
 0x353   : > { %v3753_v45 = vmax.f32 %v3751_v38, %v3752_v33  ;;  %vm8892_vm1 = vmmov %vm8870_vm0 }
 0x355   : > { %v3754_v4 = vrot.slane %v3753_v45, 1 }
 0x357   : > { %v3755_v20 = vmax.f32 %v3753_v45, %v3754_v4 }
 0x359   : > { %v7762_v12 = vmax.f32 %v7756_v27, %v3755_v20 }
 0x35b   : > { %8877 = vst [vmem:[#allocation73_spill] sm:$0xff] %v7762_v12  ;;  %3762 = vst.msk [vmem:[#allocation4] sm:$0x1] %vm3761_vm9, %v7762_v12  ;;  %v7771_v24 = vrot.slane %v7762_v12, %v8758_v41 }
 0x35d   : > { %v3769_v11 = vsub.f32 %v7487_v36, %v7771_v24  ;;  %v3770_v19 = vsub.f32 %v7518_v61, %v7771_v24  ;;  %v3771_v20 = vsub.f32 %v7482_v35, %v7771_v24  ;;  %v3772_v57 = vsub.f32 %v7499_v23, %v7771_v24 }
 0x35e   : > { %v3773_v51 = vsub.f32 %v7509_v21, %v7771_v24  ;;  %v3774_v54 = vsub.f32 %v7528_v34, %v7771_v24  ;;  %v3775_v61 = vsub.f32 %v7504_v42, %v7771_v24  ;;  %v3776_v35 = vsub.f32 %v7523_v56, %v7771_v24 }
 0x35f   : > { %v3801_v1 = vmul.f32 1.442695, %v3769_v11  ;;  %v3803_v29 = vmul.f32 1.442695, %v3770_v19  ;;  %v3805_v44 = vmul.f32 1.442695, %v3771_v20  ;;  %v3777_v21 = vsub.f32 %v7565_v63, %v7771_v24 }
 0x360   : > { %v3807_v36 = vmul.f32 1.442695, %v3772_v57  ;;  %v3809_v48 = vmul.f32 1.442695, %v3773_v51  ;;  %v3811_v23 = vmul.f32 1.442695, %v3774_v54  ;;  %v3778_v34 = vsub.f32 %v7580_v5, %v7771_v24 }
 0x361   : > { %6215 = vpow2.f32 %v3801_v1  ;;  %v3813_v18 = vmul.f32 1.442695, %v3775_v61  ;;  %v3815_v38 = vmul.f32 1.442695, %v3776_v35  ;;  %v3779_v42 = vsub.f32 %v7550_v13, %v7771_v24 }
 0x362   : > { %6217 = vpow2.f32 %v3803_v29  ;;  %v3817_v33 = vmul.f32 1.442695, %v3777_v21  ;;  %v3780_v56 = vsub.f32 %v7575_v2, %v7771_v24  ;;  %v3819_v4 = vmul.f32 1.442695, %v3778_v34 }
 0x363   : > { %6219 = vpow2.f32 %v3805_v44  ;;  %v3781_v63 = vsub.f32 %v7596_v30, %v7771_v24  ;;  %v3821_v19 = vmul.f32 1.442695, %v3779_v42  ;;  %v3782_v13 = vsub.f32 %v7621_v26, %v7771_v24 }
 0x364   : > { %6221 = vpow2.f32 %v3807_v36  ;;  %v3823_v20 = vmul.f32 1.442695, %v3780_v56  ;;  %v3783_v57 = vsub.f32 %v7585_v47, %v7771_v24  ;;  %v3784_v1 = vsub.f32 %v7605_v58, %v7771_v24 }
 0x365   : > { %6223 = vpow2.f32 %v3809_v48  ;;  %v3825_v51 = vmul.f32 1.442695, %v3781_v63  ;;  %v3827_v29 = vmul.f32 1.442695, %v3782_v13  ;;  %v3785_v26 = vsub.f32 %v7635_v28, %v7771_v24 }
 0x366   : > { %6225 = vpow2.f32 %v3811_v23  ;;  %v3829_v54 = vmul.f32 1.442695, %v3783_v57  ;;  %v3786_v47 = vsub.f32 %v7650_v7, %v7771_v24  ;;  %v3831_v61 = vmul.f32 1.442695, %v3784_v1 }
 0x367   : > { %6227 = vpow2.f32 %v3813_v18  ;;  %v3787_v58 = vsub.f32 %v7630_v17, %v7771_v24  ;;  %v3833_v35 = vmul.f32 1.442695, %v3785_v26  ;;  %v3788_v28 = vsub.f32 %v7645_v15, %v7771_v24 }
 0x368   : > { %6229 = vpow2.f32 %v3815_v38  ;;  %v3835_v21 = vmul.f32 1.442695, %v3786_v47  ;;  %v3789_v7 = vsub.f32 %v7680_v53, %v7771_v24  ;;  %v3790_v17 = vsub.f32 %v7684_v59, %v7771_v24 }
 0x369   : > { %6231 = vpow2.f32 %v3817_v33  ;;  %v3837_v34 = vmul.f32 1.442695, %v3787_v58  ;;  %v3839_v42 = vmul.f32 1.442695, %v3788_v28  ;;  %v3791_v15 = vsub.f32 %v7673_v22, %v7771_v24 }
 0x36a   : > { %6233 = vpow2.f32 %v3819_v4  ;;  %v3792_v53 = vsub.f32 %v7662_v3, %v7771_v24  ;;  %v3843_v4 = vmul.f32 1.442695, %v3790_v17  ;;  %v3793_v59 = vsub.f32 %v7702_v62, %v7771_v24 }
 0x36b   : > { %6235 = vpow2.f32 %v3821_v19  ;;  %v3845_v63 = vmul.f32 1.442695, %v3791_v15  ;;  %v7837_v22 = vand.u32 127, %v2498_v6  ;;  %v3795_v62 = vsub.f32 %v7694_v49, %v7771_v24 }
 0x36c   : > { %6237 = vpow2.f32 %v3823_v20  ;;  %v3847_v13 = vmul.f32 1.442695, %v3792_v53  ;;  %v3849_v57 = vmul.f32 1.442695, %v3793_v59  ;;  %v3798_v58 = vsub.f32 %v7749_v43, %v7771_v24 }
 0x36d   : > { %6239 = vpow2.f32 %v3825_v51  ;;  %8890 = vst [vmem:[#allocation74_spill] sm:$0xff] %v7837_v22  ;;  %vm2500_vm9 = vcmp.lt.s32.totalorder %v7837_v22, 32  ;;  %v3800_v15 = vsub.f32 %v7737_v50, %v7771_v24 }
 0x36e   : > { %v6216_v45 = vpop.eup %6215  ;;  %6241 = vpow2.f32 %v3827_v29 }
 0x36f   : > { %v6218_v11 = vpop.eup %6217  ;;  %5928 = vmatprep.mubr.msk.f32.mxu0 %vm8878_vm8, %v6216_v45  ;;  %6243 = vpow2.f32 %v3829_v54  ;;  %v3841_v45 = vmul.f32 1.442695, %v3789_v7  ;;  %vm8893_vm8 = vmmov %vm8870_vm0 }
 0x370   : > { %v6220_v5 = vpop.eup %6219  ;;  %5929 = vmatmul.mubr.msk.f32.vlgmr.msra.gmra.mxu0 %vm8879_vm12, %v6218_v11  ;;  %6245 = vpow2.f32 %v3831_v61  ;;  %vm8894_vm12 = vmmov %vm8870_vm0 }
 0x371   : > { %5931 = vmatprep.mubr.msk.f32.mxu0 %vm8880_vm5, %v6220_v5  ;;  %v6222_v2 = vpop.eup %6221  ;;  %6247 = vpow2.f32 %v3833_v35  ;;  %v3794_v5 = vsub.f32 %v7706_v10, %v7771_v24  ;;  %v3796_v10 = vsub.f32 %v7688_v55, %v7771_v24  ;;  %vm8895_vm5 = vmmov %vm8870_vm0  ;;  %v3799_v35 = vsub.f32 %v7721_v60, %v7771_v24 }
 0x372   : > { %v6224_v30 = vpop.eup %6223  ;;  %6249 = vpow2.f32 %v3835_v21 }
 0x373   : > { %v6226_v44 = vpop.eup %6225  ;;  %6251 = vpow2.f32 %v3837_v34  ;;  %v3861_v59 = vmul.f32 1.442695, %v3799_v35 }
 0x374   : > { %5932 = vmatmul.mubr.msk.f32.gmra.mxu0 %vm8881_vm11, %v6222_v2  ;;  %v6228_v36 = vpop.eup %6227  ;;  %6253 = vpow2.f32 %v3839_v42  ;;  %vm8896_vm11 = vmmov %vm8870_vm0 }
 0x375   : > { %5934 = vmatprep.mubr.msk.f32.mxu0 %vm8882_vm13, %v6224_v30  ;;  %v6230_v48 = vpop.eup %6229  ;;  %6255 = vpow2.f32 %v3841_v45  ;;  %v3851_v30 = vmul.f32 1.442695, %v3794_v5  ;;  %vm8897_vm13 = vmmov %vm8870_vm0 }
 0x376   : > { %v6232_v23 = vpop.eup %6231  ;;  %6257 = vpow2.f32 %v3843_v4 }
 0x377   : > { %v6234_v18 = vpop.eup %6233  ;;  %6259 = vpow2.f32 %v3845_v63 }
 0x378   : > { %5935 = vmatmul.mubr.msk.f32.gmra.mxu0 %vm8883_vm6, %v6226_v44  ;;  %v6236_v38 = vpop.eup %6235  ;;  %6261 = vpow2.f32 %v3847_v13  ;;  %vm8898_vm6 = vmmov %vm8870_vm0 }
 0x379   : > { %5937 = vmatprep.mubr.msk.f32.mxu0 %vm8884_vm7, %v6228_v36  ;;  %v6238_v33 = vpop.eup %6237  ;;  %v3797_v36 = vsub.f32 %v7725_v40, %v7771_v24  ;;  %6263 = vpow2.f32 %v3849_v57  ;;  %vm8899_vm7 = vmmov %vm8870_vm0 }
 0x37a   : > { %v6240_v56 = vpop.eup %6239  ;;  %6265 = vpow2.f32 %v3851_v30 }
 0x37b   : > { %v6242_v11 = vpop.eup %6241  ;;  %v3857_v7 = vmul.f32 1.442695, %v3797_v36  ;;  %v8905_v36 = vld [vmem:[#allocation52_spill] sm:$0xff] }
 0x37c   : > { %5938 = vmatmul.mubr.msk.f32.gmra.mxu0 %vm8885_vm2, %v6230_v48  ;;  %v6244_v19 = vpop.eup %6243  ;;  %vm8902_vm2 = vmmov %vm8870_vm0 }
 0x37d   : > { %5940 = vmatprep.mubr.msk.f32.mxu0 %vm8886_vm10, %v6232_v23  ;;  %v6246_v2 = vpop.eup %6245  ;;  %v3855_v23 = vmul.f32 1.442695, %v3796_v10  ;;  %vm8903_vm10 = vmmov %vm8870_vm0 }
 0x37e   : > { %v6248_v6 = vpop.eup %6247 }
 0x37f   : > { %v6250_v54 = vpop.eup %6249 }
 0x380   : > { %5941 = vmatmul.mubr.msk.f32.gmra.mxu0 %vm8887_vm3, %v6234_v18  ;;  %v6252_v47 = vpop.eup %6251  ;;  %vm8906_vm3 = vmmov %vm8870_vm0 }
 0x381   : > { %5943 = vmatprep.mubr.msk.f32.mxu0 %vm8888_vm4, %v6236_v38  ;;  %v6254_v43 = vpop.eup %6253  ;;  %vm8907_vm4 = vmmov %vm8870_vm0 }
 0x382   : > { %v6256_v38 = vpop.eup %6255 }
 0x384   : > { %5944 = vmatmul.mubr.msk.f32.gmra.mxu0 %vm8870_vm0, %v6238_v33  ;;  %v3859_v33 = vmul.f32 1.442695, %v3798_v58 }
 0x385   : > { %5946 = vmatprep.mubr.msk.f32.mxu0 %vm8889_vm14, %v6240_v56  ;;  %vm8910_vm14 = vmmov %vm8870_vm0 }
 0x388   : > { %5947 = vmatmul.mubr.msk.f32.gmra.mxu0 %vm8891_vm15, %v6242_v11  ;;  %vm8913_vm15 = vmmov %vm8870_vm0 }
 0x389   : > { %5949 = vmatprep.mubr.msk.f32.mxu0 %vm8892_vm1, %v6244_v19  ;;  %v8900_v19 = vld [vmem:[#allocation49_spill] sm:$0xff]  ;;  %vm8914_vm1 = vmmov %vm8870_vm0 }
 0x38c   : > { %5950 = vmatmul.mubr.msk.f32.gmra.mxu0 %vm8893_vm8, %v6246_v2  ;;  %vm8917_vm8 = vmmov %vm8870_vm0 }
 0x38d   : > { %5952 = vmatprep.mubr.msk.f32.mxu0 %vm8894_vm12, %v6248_v6  ;;  %vm8918_vm12 = vmmov %vm8870_vm0 }
 0x38e   : > { %v2506_v3 = vpop.xlane.xlu0 %2505 }
 0x38f   : > { %v2567_v20 = vmul.f32 0.03125, %v2506_v3  ;;  %v8901_v3 = vld [vmem:[#allocation50_spill] sm:$0xff] }
 0x390   : > { %5953 = vmatmul.mubr.msk.f32.gmra.mxu0 %vm8895_vm5, %v6250_v54 }
 0x391   : > { %v2599_v51 = vsub.f32 %v7338_v25, %v2567_v20  ;;  %v3853_v25 = vmul.f32 1.442695, %v3795_v62  ;;  %5955 = vmatprep.mubr.msk.f32.mxu0 %vm8896_vm11, %v6252_v47  ;;  %v3863_v20 = vmul.f32 1.442695, %v3800_v15 }
 0x392   : > { %v2502_v1 = vpop.xlane.xlu0 %2501  ;;  %v2508_v29 = vpop.xlane.xlu1 %2507 }
 0x393   : > { %v2565_v44 = vmul.f32 0.03125, %v2502_v1  ;;  %v2568_v49 = vmul.f32 0.03125, %v2508_v29  ;;  %v7853_v26 = vsel %vm2500_vm9, %v2599_v51, 0.0  ;;  %6267 = vpow2.f32 %v3853_v25 }
 0x394   : > { %v2663_v55 = vmul.f32 %v7853_v26, %v7853_v26  ;;  %5956 = vmatmul.mubr.msk.f32.gmra.mxu0 %vm8897_vm13, %v6254_v43  ;;  %6269 = vpow2.f32 %v3855_v23 }
 0x395   : > { %v2597_v61 = vsub.f32 %v7343_v32, %v2565_v44  ;;  %v2600_v48 = vsub.f32 %v7349_v39, %v2568_v49  ;;  %5958 = vmatprep.mubr.msk.f32.mxu0 %vm8898_vm6, %v6256_v38  ;;  %6271 = vpow2.f32 %v3857_v7  ;;  %v8904_v49 = vld [vmem:[#allocation51_spill] sm:$0xff]  ;;  %v8909_v7 = vld [vmem:[#allocation54_spill] sm:$0xff] }
 0x396   : > { %v2504_v40 = vpop.xlane.xlu1 %2503  ;;  %v2514_v28 = vpop.xlane.xlu0 %2513  ;;  %2697 = vadd.xlane.f32.xlu0 %v2663_v55  ;;  %6273 = vpow2.f32 %v3859_v33 }
 0x397   : > { %v2566_v21 = vmul.f32 0.03125, %v2504_v40  ;;  %v2571_v18 = vmul.f32 0.03125, %v2514_v28  ;;  %v7869_v32 = vsel %vm2500_vm9, %v2597_v61, 0.0  ;;  %v7873_v39 = vsel %vm2500_vm9, %v2600_v48, 0.0 }
 0x398   : > { %v2661_v60 = vmul.f32 %v7869_v32, %v7869_v32  ;;  %v2664_v34 = vmul.f32 %v7873_v39, %v7873_v39  ;;  %6275 = vpow2.f32 %v3861_v59 }
 0x399   : > { %v2598_v17 = vsub.f32 %v7357_v8, %v2566_v21  ;;  %v2603_v42 = vsub.f32 %v7361_v52, %v2571_v18  ;;  %v6258_v52 = vpop.eup %6257  ;;  %6277 = vpow2.f32 %v3863_v20  ;;  %v8908_v18 = vld [vmem:[#allocation53_spill] sm:$0xff] }
 0x39a   : > { %v2510_v45 = vpop.xlane.xlu0 %2509  ;;  %v2516_v56 = vpop.xlane.xlu1 %2515  ;;  %2693 = vadd.xlane.f32.xlu0 %v2661_v60  ;;  %2699 = vadd.xlane.f32.xlu1 %v2664_v34 }
 0x39b   : > { %v2569_v53 = vmul.f32 0.03125, %v2510_v45  ;;  %v2572_v4 = vmul.f32 0.03125, %v2516_v56  ;;  %v7887_v11 = vsel %vm2500_vm9, %v2603_v42, 0.0  ;;  %v7891_v8 = vsel %vm2500_vm9, %v2598_v17, 0.0  ;;  %v6260_v63 = vpop.eup %6259  ;;  %5959 = vmatmul.mubr.msk.f32.gmra.mxu0 %vm8899_vm7, %v6258_v52  ;;  %v8911_v52 = vld [vmem:[#allocation55_spill] sm:$0xff] }
 0x39c   : > { %v2667_v50 = vmul.f32 %v7887_v11, %v7887_v11  ;;  %v2662_v24 = vmul.f32 %v7891_v8, %v7891_v8  ;;  %5961 = vmatprep.mubr.msk.f32.mxu0 %vm8902_vm2, %v6260_v63  ;;  %v6262_v30 = vpop.eup %6261 }
 0x39d   : > { %v2601_v5 = vsub.f32 %v8900_v19, %v2569_v53  ;;  %v2604_v13 = vsub.f32 %v8901_v3, %v2572_v4  ;;  %v6264_v44 = vpop.eup %6263 }
 0x39e   : > { %v2512_v2 = vpop.xlane.xlu1 %2511  ;;  %v2522_v62 = vpop.xlane.xlu0 %2521  ;;  %2705 = vadd.xlane.f32.xlu0 %v2667_v50  ;;  %2695 = vadd.xlane.f32.xlu1 %v2662_v24  ;;  %v8912_v50 = vld [vmem:[#allocation56_spill] sm:$0xff] }
 0x39f   : > { %v2570_v57 = vmul.f32 0.03125, %v2512_v2  ;;  %v2575_v6 = vmul.f32 0.03125, %v2522_v62  ;;  %v7903_v51 = vsel %vm2500_vm9, %v2601_v5, 0.0  ;;  %v7907_v10 = vsel %vm2500_vm9, %v2604_v13, 0.0  ;;  %5962 = vmatmul.mubr.msk.f32.gmra.mxu0 %vm8903_vm10, %v6262_v30  ;;  %v6266_v61 = vpop.eup %6265  ;;  %v8915_v30 = vld [vmem:[#allocation57_spill] sm:$0xff] }
 0x3a0   : > { %v2665_v1 = vmul.f32 %v7903_v51, %v7903_v51  ;;  %v2668_v29 = vmul.f32 %v7907_v10, %v7907_v10  ;;  %5964 = vmatprep.mubr.msk.f32.mxu0 %vm8906_vm3, %v6264_v44  ;;  %v6268_v21 = vpop.eup %6267 }
 0x3a1   : > { %v2602_v54 = vsub.f32 %v8904_v49, %v2570_v57  ;;  %v2607_v25 = vsub.f32 %v8905_v36, %v2575_v6  ;;  %v6270_v17 = vpop.eup %6269 }
 0x3a2   : > { %v2518_v55 = vpop.xlane.xlu0 %2517  ;;  %v2524_v47 = vpop.xlane.xlu1 %2523  ;;  %2701 = vadd.xlane.f32.xlu0 %v2665_v1  ;;  %2707 = vadd.xlane.f32.xlu1 %v2668_v29  ;;  %v8916_v29 = vld [vmem:[#allocation58_spill] sm:$0xff] }
 0x3a3   : > { %v2573_v48 = vmul.f32 0.03125, %v2518_v55  ;;  %v2576_v58 = vmul.f32 0.03125, %v2524_v47  ;;  %v7919_v35 = vsel %vm2500_vm9, %v2607_v25, 0.0  ;;  %v7923_v23 = vsel %vm2500_vm9, %v2602_v54, 0.0  ;;  %5965 = vmatmul.mubr.msk.f32.gmra.mxu0 %vm8907_vm4, %v6266_v61  ;;  %v6272_v4 = vpop.eup %6271 }
 0x3a4   : > { %v2671_v40 = vmul.f32 %v7919_v35, %v7919_v35  ;;  %v2666_v28 = vmul.f32 %v7923_v23, %v7923_v23  ;;  %5967 = vmatprep.mubr.msk.f32.mxu0 %vm8870_vm0, %v6268_v21  ;;  %v6274_v5 = vpop.eup %6273  ;;  %v8920_v21 = vld [vmem:[#allocation60_spill] sm:$0xff] }
 0x3a5   : > { %v2605_v43 = vsub.f32 %v8908_v18, %v2573_v48  ;;  %v2608_v60 = vsub.f32 %v8909_v7, %v2576_v58  ;;  %v6276_v6 = vpop.eup %6275 }
 0x3a6   : > { %v2520_v34 = vpop.xlane.xlu1 %2519  ;;  %v2530_v38 = vpop.xlane.xlu0 %2529  ;;  %2713 = vadd.xlane.f32.xlu0 %v2671_v40  ;;  %2703 = vadd.xlane.f32.xlu1 %v2666_v28  ;;  %v8919_v40 = vld [vmem:[#allocation59_spill] sm:$0xff] }
 0x3a7   : > { %v2574_v42 = vmul.f32 0.03125, %v2520_v34  ;;  %v2579_v33 = vmul.f32 0.03125, %v2530_v38  ;;  %v7935_v15 = vsel %vm2500_vm9, %v2605_v43, 0.0  ;;  %v7939_v45 = vsel %vm2500_vm9, %v2608_v60, 0.0  ;;  %5968 = vmatmul.mubr.msk.f32.gmra.mxu0 %vm8910_vm14, %v6270_v17  ;;  %v6278_v36 = vpop.eup %6277 }
 0x3a8   : > { %v2669_v56 = vmul.f32 %v7935_v15, %v7935_v15  ;;  %v2672_v53 = vmul.f32 %v7939_v45, %v7939_v45  ;;  %5970 = vmatprep.mubr.msk.f32.mxu0 %vm8913_vm15, %v6272_v4  ;;  %v8922_v4 = vld [vmem:[#allocation62_spill] sm:$0xff] }
 0x3a9   : > { %v2606_v59 = vsub.f32 %v8911_v52, %v2574_v42  ;;  %v2611_v24 = vsub.f32 %v8912_v50, %v2579_v33 }
 0x3aa   : > { %v2526_v63 = vpop.xlane.xlu0 %2525  ;;  %v2532_v19 = vpop.xlane.xlu1 %2531  ;;  %2709 = vadd.xlane.f32.xlu0 %v2669_v56  ;;  %2715 = vadd.xlane.f32.xlu1 %v2672_v53  ;;  %v8921_v56 = vld [vmem:[#allocation61_spill] sm:$0xff] }
 0x3ab   : > { %v2577_v3 = vmul.f32 0.03125, %v2526_v63  ;;  %v2580_v13 = vmul.f32 0.03125, %v2532_v19  ;;  %v7951_v20 = vsel %vm2500_vm9, %v2611_v24, 0.0  ;;  %v7955_v2 = vsel %vm2500_vm9, %v2606_v59, 0.0  ;;  %5971 = vmatmul.mubr.msk.f32.gmra.mxu0 %vm8914_vm1, %v6274_v5 }
 0x3ac   : > { %v2675_v62 = vmul.f32 %v7951_v20, %v7951_v20  ;;  %v2670_v57 = vmul.f32 %v7955_v2, %v7955_v2  ;;  %5973 = vmatprep.mubr.msk.f32.mxu0 %vm8917_vm8, %v6276_v6  ;;  %v8924_v6 = vld [vmem:[#allocation64_spill] sm:$0xff] }
 0x3ad   : > { %v2609_v1 = vsub.f32 %v8915_v30, %v2577_v3  ;;  %v2612_v44 = vsub.f32 %v8916_v29, %v2580_v13 }
 0x3ae   : > { %v2528_v49 = vpop.xlane.xlu1 %2527  ;;  %v2538_v54 = vpop.xlane.xlu0 %2537  ;;  %2721 = vadd.xlane.f32.xlu0 %v2675_v62  ;;  %2711 = vadd.xlane.f32.xlu1 %v2670_v57  ;;  %v8923_v62 = vld [vmem:[#allocation63_spill] sm:$0xff] }
 0x3af   : > { %v2578_v25 = vmul.f32 0.03125, %v2528_v49  ;;  %v2583_v55 = vmul.f32 0.03125, %v2538_v54  ;;  %v7967_v47 = vsel %vm2500_vm9, %v2609_v1, 0.0  ;;  %v7971_v61 = vsel %vm2500_vm9, %v2612_v44, 0.0  ;;  %5974 = vmatmul.mubr.msk.f32.gmra.mxu0 %vm8918_vm12, %v6278_v36 }
 0x3b0   : > { %v2673_v48 = vmul.f32 %v7967_v47, %v7967_v47  ;;  %v2676_v58 = vmul.f32 %v7971_v61, %v7971_v61 }
 0x3b1   : > { %v2610_v28 = vsub.f32 %v8919_v40, %v2578_v25  ;;  %v2615_v18 = vsub.f32 %v8920_v21, %v2583_v55  ;;  %v8926_v40 = vld [vmem:[#allocation66_spill] sm:$0xff] }
 0x3b2   : > { %v2534_v43 = vpop.xlane.xlu0 %2533  ;;  %v2540_v7 = vpop.xlane.xlu1 %2539  ;;  %2717 = vadd.xlane.f32.xlu0 %v2673_v48  ;;  %2723 = vadd.xlane.f32.xlu1 %v2676_v58  ;;  %v8925_v48 = vld [vmem:[#allocation65_spill] sm:$0xff] }
 0x3b3   : > { %v2581_v60 = vmul.f32 0.03125, %v2534_v43  ;;  %v2584_v34 = vmul.f32 0.03125, %v2540_v7  ;;  %v7982_v38 = vsel %vm2500_vm9, %v2615_v18, 0.0  ;;  %v7986_v17 = vsel %vm2500_vm9, %v2610_v28, 0.0 }
 0x3b4   : > { %v2679_v42 = vmul.f32 %v7982_v38, %v7982_v38  ;;  %v2674_v33 = vmul.f32 %v7986_v17, %v7986_v17 }
 0x3b5   : > { %v2613_v53 = vsub.f32 %v8921_v56, %v2581_v60  ;;  %v2616_v52 = vsub.f32 %v8922_v4, %v2584_v34  ;;  %v8927_v56 = vld [vmem:[#allocation67_spill] sm:$0xff]  ;;  %v8928_v4 = vld [vmem:[#allocation68_spill] sm:$0xff] }
 0x3b6   : > { %v2536_v59 = vpop.xlane.xlu1 %2535  ;;  %v2546_v50 = vpop.xlane.xlu0 %2545  ;;  %2729 = vadd.xlane.f32.xlu0 %v2679_v42  ;;  %2719 = vadd.xlane.f32.xlu1 %v2674_v33 }
 0x3b7   : > { %v2582_v24 = vmul.f32 0.03125, %v2536_v59  ;;  %v2587_v63 = vmul.f32 0.03125, %v2546_v50  ;;  %v7996_v19 = vsel %vm2500_vm9, %v2613_v53, 0.0  ;;  %v8000_v5 = vsel %vm2500_vm9, %v2616_v52, 0.0 }
 0x3b8   : > { %v2677_v3 = vmul.f32 %v7996_v19, %v7996_v19  ;;  %v2680_v13 = vmul.f32 %v8000_v5, %v8000_v5 }
 0x3b9   : > { %v2614_v57 = vsub.f32 %v8923_v62, %v2582_v24  ;;  %v2619_v30 = vsub.f32 %v8924_v6, %v2587_v63 }
 0x3ba   : > { %v2542_v1 = vpop.xlane.xlu0 %2541  ;;  %v2548_v29 = vpop.xlane.xlu1 %2547  ;;  %2725 = vadd.xlane.f32.xlu0 %v2677_v3  ;;  %2731 = vadd.xlane.f32.xlu1 %v2680_v13 }
 0x3bb   : > { %v2585_v44 = vmul.f32 0.03125, %v2542_v1  ;;  %v2588_v49 = vmul.f32 0.03125, %v2548_v29  ;;  %v8010_v54 = vsel %vm2500_vm9, %v2619_v30, 0.0  ;;  %v8014_v36 = vsel %vm2500_vm9, %v2614_v57, 0.0 }
 0x3bc   : > { %v2683_v25 = vmul.f32 %v8010_v54, %v8010_v54  ;;  %v2678_v55 = vmul.f32 %v8014_v36, %v8014_v36 }
 0x3bd   : > { %v2617_v58 = vsub.f32 %v8925_v48, %v2585_v44  ;;  %v2620_v28 = vsub.f32 %v8926_v40, %v2588_v49 }
 0x3be   : > { %v2544_v21 = vpop.xlane.xlu1 %2543  ;;  %v2554_v18 = vpop.xlane.xlu0 %2553  ;;  %2737 = vadd.xlane.f32.xlu0 %v2683_v25  ;;  %2727 = vadd.xlane.f32.xlu1 %v2678_v55 }
 0x3bf   : > { %v2586_v43 = vmul.f32 0.03125, %v2544_v21  ;;  %v2591_v7 = vmul.f32 0.03125, %v2554_v18  ;;  %v8024_v60 = vsel %vm2500_vm9, %v2617_v58, 0.0  ;;  %v8028_v34 = vsel %vm2500_vm9, %v2620_v28, 0.0 }
 0x3c0   : > { %v2681_v42 = vmul.f32 %v8024_v60, %v8024_v60  ;;  %v2684_v33 = vmul.f32 %v8028_v34, %v8028_v34 }
 0x3c1   : > { %v2618_v53 = vsub.f32 %v8927_v56, %v2586_v43  ;;  %v2623_v52 = vsub.f32 %v8928_v4, %v2591_v7  ;;  %v8930_v56 = vld [vmem:[#allocation70_spill] sm:$0xff] }
 0x3c2   : > { %v2550_v59 = vpop.xlane.xlu0 %2549  ;;  %v2556_v50 = vpop.xlane.xlu1 %2555  ;;  %2733 = vadd.xlane.f32.xlu0 %v2681_v42  ;;  %2739 = vadd.xlane.f32.xlu1 %v2684_v33 }
 0x3c3   : > { %v2589_v24 = vmul.f32 0.03125, %v2550_v59  ;;  %v2592_v63 = vmul.f32 0.03125, %v2556_v50  ;;  %v8038_v3 = vsel %vm2500_vm9, %v2623_v52, 0.0  ;;  %v8042_v13 = vsel %vm2500_vm9, %v2618_v53, 0.0 }
 0x3c4   : > { %v2687_v62 = vmul.f32 %v8038_v3, %v8038_v3  ;;  %v2682_v57 = vmul.f32 %v8042_v13, %v8042_v13 }
 0x3c5   : > { %v2621_v6 = vsub.f32 %v7637_v16, %v2589_v24  ;;  %v2624_v30 = vsub.f32 %v7654_v9, %v2592_v63 }
 0x3c6   : > { %v2552_v1 = vpop.xlane.xlu1 %2551  ;;  %2745 = vadd.xlane.f32.xlu0 %v2687_v62  ;;  %2735 = vadd.xlane.f32.xlu1 %v2682_v57 }
 0x3c7   : > { %v2590_v29 = vmul.f32 0.03125, %v2552_v1  ;;  %v8052_v44 = vsel %vm2500_vm9, %v2621_v6, 0.0  ;;  %v8056_v49 = vsel %vm2500_vm9, %v2624_v30, 0.0  ;;  %v6189_v30 = vld [vmem:[%s6689_s29 + $0x4] ss:$8 sps:$4 sm:$0xff]  }
 0x3c8   : > { %v2558_v25 = vpop.xlane.xlu0 %2557  ;;  %v2685_v55 = vmul.f32 %v8052_v44, %v8052_v44  ;;  %v2688_v16 = vmul.f32 %v8056_v49, %v8056_v49  ;;  %4335 = vmatprep.mubr.bf16.mxu1 %v6189_v30 }
 0x3c9   : > { %v2622_v9 = vsub.f32 %v7675_v14, %v2590_v29  ;;  %v2593_v48 = vmul.f32 0.03125, %v2558_v25 }
 0x3ca   : > { %2741 = vadd.xlane.f32.xlu0 %v2685_v55  ;;  %2747 = vadd.xlane.f32.xlu1 %v2688_v16 }
 0x3cb   : > { %v2625_v58 = vsub.f32 %v7715_v0, %v2593_v48  ;;  %v8066_v40 = vsel %vm2500_vm9, %v2622_v9, 0.0  ;;  %v8929_v0 = vld [vmem:[#allocation69_spill] sm:$0xff] }
 0x3cc   : > { %v2562_v28 = vpop.xlane.xlu0 %2561  ;;  %v2560_v21 = vpop.xlane.xlu1 %2559  ;;  %v2686_v18 = vmul.f32 %v8066_v40, %v8066_v40 }
 0x3cd   : > { %v2595_v43 = vmul.f32 0.03125, %v2562_v28  ;;  %v2594_v7 = vmul.f32 0.03125, %v2560_v21  ;;  %v8072_v42 = vsel %vm2500_vm9, %v2625_v58, 0.0 }
 0x3ce   : > { %v2689_v14 = vmul.f32 %v8072_v42, %v8072_v42  ;;  %2743 = vadd.xlane.f32.xlu1 %v2686_v18 }
 0x3cf   : > { %v2627_v33 = vsub.f32 %v8929_v0, %v2595_v43  ;;  %v2626_v53 = vsub.f32 %v8930_v56, %v2594_v7 }
 0x3d0   : > { %2749 = vadd.xlane.f32.xlu0 %v2689_v14  ;;  %v2564_v4 = vpop.xlane.xlu1 %2563 }
 0x3d1   : > { %v2596_v52 = vmul.f32 0.03125, %v2564_v4  ;;  %v8080_v59 = vsel %vm2500_vm9, %v2627_v33, 0.0  ;;  %v8084_v50 = vsel %vm2500_vm9, %v2626_v53, 0.0 }
 0x3d2   : > { %8931 = vst [vmem:[#allocation49_spill] sm:$0xff] %v8080_v59  ;;  %8932 = vst [vmem:[#allocation50_spill] sm:$0xff] %v8084_v50  ;;  %v2691_v24 = vmul.f32 %v8080_v59, %v8080_v59  ;;  %v2690_v63 = vmul.f32 %v8084_v50, %v8084_v50 }
 0x3d3   : > { %v2628_v62 = vsub.f32 %v7733_v37, %v2596_v52 }
 0x3d4   : > { %2753 = vadd.xlane.f32.xlu0 %v2691_v24  ;;  %2751 = vadd.xlane.f32.xlu1 %v2690_v63 }
 0x3d5   : > { %v8093_v57 = vsel %vm2500_vm9, %v2628_v62, 0.0 }
 0x3d6   : > { %8933 = vst [vmem:[#allocation51_spill] sm:$0xff] %v8093_v57  ;;  %v2692_v6 = vmul.f32 %v8093_v57, %v8093_v57 }
 0x3d8   : > { %2755 = vadd.xlane.f32.xlu1 %v2692_v6 }
 0x41f   : > { %v2698_v1 = vpop.xlane.xlu0 %2697 }
 0x420   : > { %v2759_v29 = vmul.f32 0.03125, %v2698_v1 }
 0x422   : > { %v2791_v25 = vadd.f32 1e-05, %v2759_v29 }
 0x423   : > { %v2694_v55 = vpop.xlane.xlu0 %2693  ;;  %v2700_v9 = vpop.xlane.xlu1 %2699 }
 0x424   : > { %6279 = vrsqrt.f32 %v2791_v25  ;;  %v2757_v16 = vmul.f32 0.03125, %v2694_v55  ;;  %v2760_v37 = vmul.f32 0.03125, %v2700_v9 }
 0x426   : > { %v2789_v48 = vadd.f32 1e-05, %v2757_v16  ;;  %v2792_v58 = vadd.f32 1e-05, %v2760_v37 }
 0x427   : > { %v2706_v28 = vpop.xlane.xlu0 %2705  ;;  %v2696_v18 = vpop.xlane.xlu1 %2695 }
 0x428   : > { %6281 = vrsqrt.f32 %v2789_v48  ;;  %v2763_v21 = vmul.f32 0.03125, %v2706_v28  ;;  %v2758_v43 = vmul.f32 0.03125, %v2696_v18 }
 0x429   : > { %6283 = vrsqrt.f32 %v2792_v58 }
 0x42a   : > { %v2795_v7 = vadd.f32 1e-05, %v2763_v21  ;;  %v2790_v14 = vadd.f32 1e-05, %v2758_v43 }
 0x42b   : > { %v2702_v0 = vpop.xlane.xlu0 %2701  ;;  %v2708_v56 = vpop.xlane.xlu1 %2707 }
 0x42c   : > { %6285 = vrsqrt.f32 %v2795_v7  ;;  %v2761_v33 = vmul.f32 0.03125, %v2702_v0  ;;  %v2764_v53 = vmul.f32 0.03125, %v2708_v56 }
 0x42d   : > { %6287 = vrsqrt.f32 %v2790_v14 }
 0x42e   : > { %v2793_v4 = vadd.f32 1e-05, %v2761_v33  ;;  %v2796_v52 = vadd.f32 1e-05, %v2764_v53 }
 0x42f   : > { %v2714_v24 = vpop.xlane.xlu0 %2713  ;;  %v2704_v62 = vpop.xlane.xlu1 %2703 }
 0x430   : > { %6289 = vrsqrt.f32 %v2793_v4  ;;  %v2767_v63 = vmul.f32 0.03125, %v2714_v24  ;;  %v2762_v30 = vmul.f32 0.03125, %v2704_v62  ;;  %v8102_v58 = vpop.f32.mrf.mxu0 }
 0x431   : > { %v6280_v6 = vpop.eup %6279  ;;  %6291 = vrsqrt.f32 %v2796_v52 }
 0x432   : > { %v8099_v1 = vmul.f32 %v6280_v6, %v7853_v26  ;;  %v2799_v29 = vadd.f32 1e-05, %v2767_v63  ;;  %v2794_v25 = vadd.f32 1e-05, %v2762_v30  ;;  %v8110_v7 = vpop.f32.mrf.mxu0 }
 0x433   : > { %v2710_v55 = vpop.xlane.xlu0 %2709  ;;  %v2716_v37 = vpop.xlane.xlu1 %2715 }
 0x434   : > { %v2921_v16 = vmul.f32 1.442695, %v8099_v1  ;;  %6293 = vrsqrt.f32 %v2799_v29  ;;  %v2765_v9 = vmul.f32 0.03125, %v2710_v55  ;;  %v2768_v28 = vmul.f32 0.03125, %v2716_v37  ;;  %v8114_v52 = vpop.f32.mrf.mxu0 }
 0x435   : > { %v6282_v48 = vpop.eup %6281  ;;  %6295 = vrsqrt.f32 %v2794_v25  ;;  %vm2887_vm5 = vcmp.gt.f32.partialorder %v8099_v1, 0.0 }
 0x436   : > { %v6284_v21 = vpop.eup %6283  ;;  %v8105_v18 = vmul.f32 %v6282_v48, %v7869_v32  ;;  %v2797_v43 = vadd.f32 1e-05, %v2765_v9  ;;  %6297 = vpow2.f32 %v2921_v16  ;;  %v2800_v33 = vadd.f32 1e-05, %v2768_v28  ;;  %v8122_v62 = vpop.f32.mrf.mxu0 }
 0x437   : > { %v8108_v26 = vmul.f32 %v6284_v21, %v7873_v39  ;;  %v2722_v14 = vpop.xlane.xlu0 %2721  ;;  %v2712_v56 = vpop.xlane.xlu1 %2711 }
 0x438   : > { %v2917_v0 = vmul.f32 1.442695, %v8105_v18  ;;  %6299 = vrsqrt.f32 %v2797_v43  ;;  %v2771_v32 = vmul.f32 0.03125, %v2722_v14  ;;  %v2766_v30 = vmul.f32 0.03125, %v2712_v56  ;;  %v8126_v37 = vpop.f32.mrf.mxu0 }
 0x439   : > { %v6286_v53 = vpop.eup %6285  ;;  %v2923_v4 = vmul.f32 1.442695, %v8108_v26  ;;  %vm2888_vm11 = vcmp.gt.f32.partialorder %v8108_v26, 0.0  ;;  %vm2885_vm13 = vcmp.gt.f32.partialorder %v8105_v18, 0.0 }
 0x43a   : > { %v6288_v24 = vpop.eup %6287  ;;  %6301 = vpow2.f32 %v2917_v0  ;;  %v8117_v63 = vmul.f32 %v6286_v53, %v7887_v11  ;;  %v2803_v6 = vadd.f32 1e-05, %v2771_v32  ;;  %v2798_v28 = vadd.f32 1e-05, %v2766_v30  ;;  %v8134_v21 = vpop.f32.mrf.mxu0 }
 0x43b   : > { %6303 = vpow2.f32 %v2923_v4  ;;  %v8120_v39 = vmul.f32 %v6288_v24, %v7891_v8  ;;  %v2718_v29 = vpop.xlane.xlu0 %2717  ;;  %v2724_v55 = vpop.xlane.xlu1 %2723 }
 0x43c   : > { %v2929_v25 = vmul.f32 1.442695, %v8117_v63  ;;  %6305 = vrsqrt.f32 %v2800_v33  ;;  %v2769_v43 = vmul.f32 0.03125, %v2718_v29  ;;  %v8138_v53 = vpop.f32.mrf.mxu0  ;;  %vm2891_vm7 = vcmp.gt.f32.partialorder %v8117_v63, 0.0 }
 0x43d   : > { %v6290_v16 = vpop.eup %6289  ;;  %v2919_v9 = vmul.f32 1.442695, %v8120_v39  ;;  %6307 = vrsqrt.f32 %v2803_v6  ;;  %v2772_v6 = vmul.f32 0.03125, %v2724_v55  ;;  %vm2886_vm6 = vcmp.gt.f32.partialorder %v8120_v39, 0.0 }
 0x43e   : > { %v6292_v11 = vpop.eup %6291  ;;  %6309 = vpow2.f32 %v2929_v25  ;;  %v8129_v8 = vmul.f32 %v6290_v16, %v7903_v51  ;;  %v2801_v4 = vadd.f32 1e-05, %v2769_v43  ;;  %v8146_v30 = vpop.f32.mrf.mxu0 }
 0x43f   : > { %6311 = vpow2.f32 %v2919_v9  ;;  %v8132_v48 = vmul.f32 %v6292_v11, %v7907_v10  ;;  %v2730_v0 = vpop.xlane.xlu0 %2729  ;;  %v2720_v51 = vpop.xlane.xlu1 %2719  ;;  %v2804_v11 = vadd.f32 1e-05, %v2772_v6 }
 0x440   : > { %v2925_v14 = vmul.f32 1.442695, %v8129_v8  ;;  %6313 = vrsqrt.f32 %v2798_v28  ;;  %v2775_v29 = vmul.f32 0.03125, %v2730_v0  ;;  %v8150_v28 = vpop.f32.mrf.mxu0  ;;  %vm2889_vm10 = vcmp.gt.f32.partialorder %v8129_v8, 0.0 }
 0x441   : > { %v6294_v33 = vpop.eup %6293  ;;  %v2931_v56 = vmul.f32 1.442695, %v8132_v48  ;;  %vm2892_vm2 = vcmp.gt.f32.partialorder %v8132_v48, 0.0 }
 0x442   : > { %v6296_v32 = vpop.eup %6295  ;;  %6315 = vpow2.f32 %v2925_v14  ;;  %v8141_v10 = vmul.f32 %v6294_v33, %v7919_v35  ;;  %v2807_v55 = vadd.f32 1e-05, %v2775_v29  ;;  %v8155_v0 = vpop.f32.mrf.mxu0 }
 0x443   : > { %6317 = vpow2.f32 %v2931_v56  ;;  %v8144_v24 = vmul.f32 %v6296_v32, %v7923_v23  ;;  %v6298_v25 = vpop.eup %6297  ;;  %v2726_v35 = vpop.xlane.xlu0 %2725 }
 0x444   : > { %v2937_v16 = vmul.f32 1.442695, %v8141_v10  ;;  %6319 = vrsqrt.f32 %v2801_v4  ;;  %v5249_v33 = vadd.f32 -1.0, %v6298_v25  ;;  %v2732_v56 = vpop.xlane.xlu1 %2731  ;;  %v2770_v4 = vmul.f32 0.03125, %v2720_v51  ;;  %v8157_v22 = vpop.f32.mrf.mxu0 }
 0x445   : > { %v2927_v9 = vmul.f32 1.442695, %v8144_v24  ;;  %v6300_v43 = vpop.eup %6299  ;;  %vm2890_vm3 = vcmp.gt.f32.partialorder %v8144_v24, 0.0  ;;  %vm2895_vm4 = vcmp.gt.f32.partialorder %v8141_v10, 0.0 }
 0x446   : > { %6321 = vpow2.f32 %v2937_v16  ;;  %v8153_v23 = vmul.f32 %v6300_v43, %v7935_v15  ;;  %v2802_v29 = vadd.f32 1e-05, %v2770_v4  ;;  %v8167_v43 = vpop.f32.mrf.mxu0 }
 0x447   : > { %v6302_v14 = vpop.eup %6301  ;;  %6323 = vpow2.f32 %v2927_v9  ;;  %v3015_v9 = vsel %vm2887_vm5, %v8099_v1, %v5249_v33  ;;  %v2738_v31 = vpop.xlane.xlu0 %2737 }
 0x448   : > { %v6304_v32 = vpop.eup %6303  ;;  %6325 = vrsqrt.f32 %v2804_v11  ;;  %v5247_v6 = vadd.f32 -1.0, %v6302_v14  ;;  %v2933_v11 = vmul.f32 1.442695, %v8153_v23  ;;  %v8173_v1 = vpop.f32.mrf.mxu0  ;;  %vm2893_vm14 = vcmp.gt.f32.partialorder %v8153_v23, 0.0 }
 0x449   : > { %v6306_v41 = vpop.eup %6305  ;;  %v5250_v46 = vadd.f32 -1.0, %v6304_v32  ;;  %6327 = vrsqrt.f32 %v2807_v55 }
 0x44a   : > { %v6308_v16 = vpop.eup %6307  ;;  %v8162_v15 = vmul.f32 %v6306_v41, %v7939_v45  ;;  %v3013_v41 = vsel %vm2885_vm13, %v8105_v18, %v5247_v6  ;;  %6329 = vrsqrt.f32 %v2802_v29  ;;  %v2776_v6 = vmul.f32 0.03125, %v2732_v56  ;;  %v8183_v29 = vpop.f32.mrf.mxu0 }
 0x44b   : > { %v6310_v25 = vpop.eup %6309  ;;  %v3016_v51 = vsel %vm2888_vm11, %v8108_v26, %v5250_v46  ;;  %v2728_v46 = vpop.xlane.xlu1 %2727  ;;  %v8177_v4 = vmul.f32 %v6308_v16, %v7951_v20 }
 0x44c   : > { %v6312_v14 = vpop.eup %6311  ;;  %v5463_v55 = vpack.c.bf16 %v3016_v51, %v3015_v9  ;;  %v2939_v32 = vmul.f32 1.442695, %v8162_v15  ;;  %v5253_v33 = vadd.f32 -1.0, %v6310_v25  ;;  %v2773_v9 = vmul.f32 0.03125, %v2726_v35  ;;  %v2734_v56 = vpop.xlane.xlu0 %2733 }
 0x44d   : > { %v5248_v45 = vadd.f32 -1.0, %v6312_v14  ;;  %v6314_v26 = vpop.eup %6313  ;;  %vm2896_vm0 = vcmp.gt.f32.partialorder %v8162_v15, 0.0  ;;  %vm2899_vm1 = vcmp.gt.f32.partialorder %v8177_v4, 0.0 }
 0x44e   : > { %5538 = vst [vmem:[%s6691_s14 + $0x8] sm:$0xff] %v5463_v55   ;;  %6331 = vpow2.f32 %v2939_v32  ;;  %v8181_v18 = vmul.f32 %v6314_v26, %v7955_v2  ;;  %v8934_v55 = vld [vmem:[#allocation17_spill] sm:$0xff]  ;;  %v2805_v20 = vadd.f32 1e-05, %v2773_v9  ;;  %v8191_v32 = vpop.f32.mrf.mxu0  ;;  %v3019_v2 = vsel %vm2891_vm7, %v8117_v63, %v5253_v33  ;;  %v8935_v33 = vld [vmem:[#allocation20_spill] sm:$0xff] }
 0x44f   : > { %v6316_v51 = vpop.eup %6315  ;;  %v3014_v12 = vsel %vm2886_vm6, %v8120_v39, %v5248_v45  ;;  %6333 = vpow2.f32 %v2933_v11  ;;  %v8187_v25 = vmul.f32 %v8110_v7, %v8934_v55  ;;  %v2808_v11 = vadd.f32 1e-05, %v2776_v6  ;;  %v2740_v6 = vpop.xlane.xlu1 %2739 }
 0x450   : > { %v6318_v14 = vpop.eup %6317  ;;  %v5458_v27 = vpack.c.bf16 %v3014_v12, %v3013_v41  ;;  %v2935_v39 = vmul.f32 1.442695, %v8181_v18  ;;  %v2945_v12 = vmul.f32 1.442695, %v8177_v4  ;;  %6335 = vrsqrt.f32 %v2805_v20  ;;  %v8936_v20 = vld [vmem:[#allocation19_spill] sm:$0xff] }
 0x451   : > { %v6320_v16 = vpop.eup %6319  ;;  %v5254_v35 = vadd.f32 -1.0, %v6318_v14  ;;  %v5251_v45 = vadd.f32 -1.0, %v6316_v51  ;;  %v8201_v14 = vpop.f32.mrf.mxu0  ;;  %v8206_v55 = vmul.f32 %v8114_v52, %v8935_v33  ;;  %v8210_v51 = vmul.f32 %v8122_v62, %v8936_v20 }
 0x452   : > { %5459 = vst [vmem:[%s6691_s14] sm:$0xff] %v5458_v27   ;;  %6337 = vpow2.f32 %v2935_v39  ;;  %v8199_v9 = vmul.f32 %v6320_v16, %v7967_v47  ;;  %v2779_v47 = vmul.f32 0.03125, %v2738_v31  ;;  %v2774_v16 = vmul.f32 0.03125, %v2728_v46  ;;  %v2746_v20 = vpop.xlane.xlu0 %2745 }
 0x453   : > { %v6322_v41 = vpop.eup %6321  ;;  %v3020_v26 = vsel %vm2892_vm2, %v8132_v48, %v5254_v35  ;;  %6339 = vrsqrt.f32 %v2808_v11  ;;  %v8212_v39 = vpop.f32.mrf.mxu0  ;;  %vm2894_vm15 = vcmp.gt.f32.partialorder %v8181_v18, 0.0 }
 0x454   : > { %v6324_v63 = vpop.eup %6323  ;;  %v5473_v27 = vpack.c.bf16 %v3020_v26, %v3019_v2  ;;  %8937 = vst [vmem:[#allocation52_spill] sm:$0xff] %v8212_v39  ;;  %v5257_v50 = vadd.f32 -1.0, %v6322_v41  ;;  %6341 = vpow2.f32 %v2945_v12  ;;  %v3017_v26 = vsel %vm2889_vm10, %v8129_v8, %v5251_v45  ;;  %v8939_v41 = vld [vmem:[#allocation21_spill] sm:$0xff] }
 0x455   : > { %v6326_v48 = vpop.eup %6325  ;;  %v5252_v35 = vadd.f32 -1.0, %v6324_v63  ;;  %v2941_v31 = vmul.f32 1.442695, %v8199_v9  ;;  %v2811_v46 = vadd.f32 1e-05, %v2779_v47  ;;  %v8224_v11 = vpop.f32.mrf.mxu0  ;;  %v8228_v33 = vmul.f32 %v8134_v21, %v8939_v41  ;;  %v8941_v47 = vld [vmem:[#allocation30_spill] sm:$0xff] }
 0x456   : > { %v6328_v57 = vpop.eup %6327  ;;  %5540 = vst [vmem:[%s6691_s14 + $0x18] sm:$0xff] %v5473_v27   ;;  %v8217_v2 = vmul.f32 %v6326_v48, %v7971_v61  ;;  %8938 = vst [vmem:[#allocation53_spill] sm:$0xff] %v8224_v11  ;;  %v2806_v12 = vadd.f32 1e-05, %v2774_v16  ;;  %v8243_v16 = vmul.f32 %v8173_v1, %v8941_v47  ;;  %v2780_v41 = vmul.f32 0.03125, %v2740_v6  ;;  %v8945_v11 = vld [vmem:[#allocation29_spill] sm:$0xff] }
 0x457   : > { %v3018_v63 = vsel %vm2890_vm3, %v8144_v24, %v5252_v35  ;;  %v8234_v8 = vmul.f32 %v6328_v57, %v7982_v38  ;;  %6343 = vrsqrt.f32 %v2811_v46  ;;  %v2736_v24 = vpop.xlane.xlu1 %2735  ;;  %v8236_v45 = vpop.f32.mrf.mxu0  ;;  %v3023_v35 = vsel %vm2895_vm4, %v8141_v10, %v5257_v50  ;;  %v8942_v57 = vld [vmem:[#allocation32_spill] sm:$0xff] }
 0x458   : > { %v5468_v27 = vpack.c.bf16 %v3018_v63, %v3017_v26  ;;  %v2947_v61 = vmul.f32 1.442695, %v8217_v2  ;;  %8940 = vst [vmem:[#allocation54_spill] sm:$0xff] %v8236_v45  ;;  %v6330_v48 = vpop.eup %6329  ;;  %v2777_v26 = vmul.f32 0.03125, %v2734_v56  ;;  %v4206_v46 = vmul.f32 %v8191_v32, %v8942_v57 }
 0x459   : > { %v8246_v38 = vmul.f32 %v6330_v48, %v7986_v17  ;;  %v8250_v39 = vpop.f32.mrf.mxu0  ;;  %v2953_v56 = vmul.f32 1.442695, %v8234_v8  ;;  %v4203_v17 = vmul.f32 %v8183_v29, %v8945_v11  ;;  %v2812_v48 = vadd.f32 1e-05, %v2780_v41 }
 0x45a   : > { %5539 = vst [vmem:[%s6691_s14 + $0x10] sm:$0xff] %v5468_v27   ;;  %6345 = vpow2.f32 %v2947_v61  ;;  %8943 = vst [vmem:[#allocation55_spill] sm:$0xff] %v8250_v39  ;;  %v2809_v27 = vadd.f32 1e-05, %v2777_v26  ;;  %v8944_v61 = vld [vmem:[#allocation31_spill] sm:$0xff]  ;;  %v4238_v26 = vpack.c.bf16 %v8191_v32, %v8201_v14  ;;  %v4236_v11 = vpack.c.bf16 %v8173_v1, %v8183_v29 }
 0x45b   : > { %v6332_v63 = vpop.eup %6331  ;;  %6347 = vpow2.f32 %v2941_v31  ;;  %v4205_v47 = vmul.f32 %v8201_v14, %v8944_v61  ;;  %v2943_v31 = vmul.f32 1.442695, %v8246_v38  ;;  %v8258_v45 = vpop.f32.mrf.mxu0  ;;  %v8947_v14 = vld [vmem:[#allocation27_spill] sm:$0xff]  ;;  %v4235_v1 = vpack.c.bf16 %v8243_v16, %v4203_v17 }
 0x45c   : > { %v6334_v50 = vpop.eup %6333  ;;  %v5258_v10 = vadd.f32 -1.0, %v6332_v63  ;;  %6349 = vrsqrt.f32 %v2806_v12  ;;  %8946 = vst [vmem:[#allocation56_spill] sm:$0xff] %v8258_v45  ;;  %v2742_v63 = vpop.xlane.xlu0 %2741  ;;  %4303 = vmatprep.subr.bf16.mxu1 %v4238_v26  ;;  %v4234_v17 = vpack.c.bf16 %v8157_v22, %v8167_v43  ;;  %vm2900_vm8 = vcmp.gt.f32.partialorder %v8217_v2, 0.0 }
 0x45d   : > { %6351 = vrsqrt.f32 %v2809_v27  ;;  %v4237_v12 = vpack.c.bf16 %v4206_v46, %v4205_v47  ;;  %v6336_v57 = vpop.eup %6335  ;;  %v5255_v61 = vadd.f32 -1.0, %v6334_v50  ;;  %v2748_v41 = vpop.xlane.xlu1 %2747  ;;  %v2783_v46 = vmul.f32 0.03125, %v2746_v20 }
 0x45e   : > { %v3024_v6 = vsel %vm2896_vm0, %v8162_v15, %v5258_v10  ;;  %6353 = vpow2.f32 %v2943_v31  ;;  %v8267_v45 = vpop.f32.mrf.mxu0  ;;  %v8270_v15 = vmul.f32 %v6336_v57, %v7996_v19  ;;  %v2778_v10 = vmul.f32 0.03125, %v2736_v24 }
 0x45f   : > { %v5483_v39 = vpack.c.bf16 %v3024_v6, %v3023_v35  ;;  %v6338_v59 = vpop.eup %6337  ;;  %6355 = vrsqrt.f32 %v2812_v48  ;;  %v4201_v35 = vmul.f32 %v8167_v43, %v8947_v14  ;;  %4304 = vmatpush1.bf16.msra.mxu1 %v4237_v12  ;;  %v2815_v27 = vadd.f32 1e-05, %v2783_v46  ;;  %v8948_v6 = vld [vmem:[#allocation28_spill] sm:$0xff]  ;;  %v8950_v46 = vld [vmem:[#allocation25_spill] sm:$0xff] }
 0x460   : > { %v5256_v32 = vadd.f32 -1.0, %v6338_v59  ;;  %v8277_v29 = vpop.f32.mrf.mxu0  ;;  %v6340_v50 = vpop.eup %6339  ;;  %6357 = vpow2.f32 %v2953_v56  ;;  %v2949_v19 = vmul.f32 1.442695, %v8270_v15  ;;  %4305 = vmatprep.subr.bf16.mxu1 %v4236_v11  ;;  %v2781_v20 = vmul.f32 0.03125, %v2742_v63 }
 0x461   : > { %5542 = vst [vmem:[%s6691_s14 + $0x28] sm:$0xff] %v5483_v39   ;;  %v6342_v24 = vpop.eup %6341  ;;  %v3021_v59 = vsel %vm2893_vm14, %v8153_v23, %v5255_v61  ;;  %v8285_v47 = vmul.f32 %v6340_v50, %v8000_v5  ;;  %v2810_v16 = vadd.f32 1e-05, %v2778_v10  ;;  %v4202_v12 = vmul.f32 %v8157_v22, %v8948_v6  ;;  %v2744_v5 = vpop.xlane.xlu1 %2743  ;;  %v8949_v61 = vld [vmem:[#allocation26_spill] sm:$0xff] }
 0x462   : > { %v3022_v39 = vsel %vm2894_vm15, %v8181_v18, %v5256_v32  ;;  %v8287_v31 = vpop.f32.mrf.mxu0  ;;  %6359 = vpow2.f32 %v2949_v19  ;;  %v2813_v48 = vadd.f32 1e-05, %v2781_v20  ;;  %v2784_v18 = vmul.f32 0.03125, %v2748_v41  ;;  %v2750_v20 = vpop.xlane.xlu0 %2749 }
 0x463   : > { %v5478_v56 = vpack.c.bf16 %v3022_v39, %v3021_v59  ;;  %v2955_v23 = vmul.f32 1.442695, %v8285_v47  ;;  %6361 = vrsqrt.f32 %v2815_v27  ;;  %4306 = vmatpush1.bf16.msra.mxu1 %v4235_v1  ;;  %v5261_v57 = vadd.f32 -1.0, %v6342_v24 }
 0x464   : > { %v8294_v26 = vpop.f32.mrf.mxu0  ;;  %v6344_v63 = vpop.eup %6343  ;;  %v4200_v11 = vmul.f32 %v8150_v28, %v8949_v61  ;;  %v4199_v43 = vmul.f32 %v8155_v0, %v8950_v46  ;;  %6363 = vrsqrt.f32 %v2810_v16  ;;  %4307 = vmatprep.subr.bf16.mxu1 %v4234_v17  ;;  %v4233_v10 = vpack.c.bf16 %v4202_v12, %v4201_v35 }
 0x465   : > { %5541 = vst [vmem:[%s6691_s14 + $0x20] sm:$0xff] %v5478_v56   ;;  %6365 = vpow2.f32 %v2955_v23  ;;  %v8302_v41 = vmul.f32 %v6344_v63, %v8010_v54  ;;  %v2816_v32 = vadd.f32 1e-05, %v2784_v18  ;;  %v4232_v19 = vpack.c.bf16 %v8150_v28, %v8155_v0  ;;  %v2752_v23 = vpop.xlane.xlu1 %2751 }
 0x466   : > { %v8304_v14 = vpop.f32.mrf.mxu0  ;;  %6367 = vrsqrt.f32 %v2813_v48  ;;  %v2782_v27 = vmul.f32 0.03125, %v2744_v5  ;;  %v3027_v59 = vsel %vm2899_vm1, %v8177_v4, %v5261_v57  ;;  %v8951_v48 = vld [vmem:[#allocation23_spill] sm:$0xff]  ;;  %v4231_v12 = vpack.c.bf16 %v4200_v11, %v4199_v43  ;;  %v8952_v57 = vld [vmem:[#allocation24_spill] sm:$0xff] }
 0x467   : > { %v6346_v22 = vpop.eup %6345  ;;  %v2961_v35 = vmul.f32 1.442695, %v8302_v41  ;;  %6369 = vrsqrt.f32 %v2816_v32  ;;  %4308 = vmatpush1.bf16.msra.mxu1 %v4233_v10  ;;  %v4197_v6 = vmul.f32 %v8146_v30, %v8951_v48  ;;  %v4230_v4 = vpack.c.bf16 %v8138_v53, %v8146_v30 }
 0x468   : > { %v6348_v1 = vpop.eup %6347  ;;  %v5262_v50 = vadd.f32 -1.0, %v6346_v22  ;;  %v8311_v54 = vpop.f32.mrf.mxu0  ;;  %v2814_v0 = vadd.f32 1e-05, %v2782_v27  ;;  %4309 = vmatprep.subr.bf16.mxu1 %v4232_v19  ;;  %v4198_v61 = vmul.f32 %v8138_v53, %v8952_v57  ;;  %v2785_v11 = vmul.f32 0.03125, %v2750_v20 }
 0x469   : > { %v6350_v24 = vpop.eup %6349  ;;  %v5259_v56 = vadd.f32 -1.0, %v6348_v1  ;;  %vm2897_vm12 = vcmp.gt.f32.partialorder %v8199_v9, 0.0  ;;  %vm2898_vm5 = vcmp.gt.f32.partialorder %v8246_v38, 0.0  ;;  %vm2903_vm11 = vcmp.gt.f32.partialorder %v8234_v8, 0.0 }
 0x46a   : > { %v3028_v39 = vsel %vm2900_vm8, %v8217_v2, %v5262_v50  ;;  %v8316_v28 = vmul.f32 %v6350_v24, %v8014_v36  ;;  %v6352_v16 = vpop.eup %6351  ;;  %v8320_v18 = vpop.f32.mrf.mxu0  ;;  %6371 = vrsqrt.f32 %v2814_v0  ;;  %v4229_v10 = vpack.c.bf16 %v4198_v61, %v4197_v6  ;;  %v8953_v24 = vld [vmem:[#allocation22_spill] sm:$0xff] }
 0x46b   : > { %v5493_v17 = vpack.c.bf16 %v3028_v39, %v3027_v59  ;;  %v6354_v5 = vpop.eup %6353  ;;  %v8326_v2 = vmul.f32 %v6352_v16, %v8024_v60  ;;  %6373 = vpow2.f32 %v2961_v35  ;;  %4310 = vmatpush1.bf16.msra.mxu1 %v4231_v12  ;;  %v2754_v60 = vpop.xlane.xlu0 %2753  ;;  %v3025_v53 = vsel %vm2897_vm12, %v8199_v9, %v5259_v56 }
 0x46c   : > { %v2951_v36 = vmul.f32 1.442695, %v8316_v28  ;;  %v6356_v63 = vpop.eup %6355  ;;  %v5260_v46 = vadd.f32 -1.0, %v6354_v5  ;;  %4311 = vmatprep.subr.bf16.mxu1 %v4230_v4  ;;  %v8336_v43 = vpop.f32.mrf.mxu0  ;;  %v2817_v1 = vadd.f32 1e-05, %v2785_v11  ;;  %v4228_v50 = vpack.c.bf16 %v8126_v37, %v8134_v21 }
 0x46d   : > { %5544 = vst [vmem:[%s6691_s14 + $0x38] sm:$0xff] %v5493_v17   ;;  %v8334_v30 = vmul.f32 %v6356_v63, %v8028_v34  ;;  %v6358_v22 = vpop.eup %6357  ;;  %v2957_v27 = vmul.f32 1.442695, %v8326_v2  ;;  %v4196_v35 = vmul.f32 %v8126_v37, %v8953_v24  ;;  %v2787_v59 = vmul.f32 0.03125, %v2754_v60  ;;  %v2756_v39 = vpop.xlane.xlu1 %2755  ;;  %v8954_v60 = vld [vmem:[#allocation18_spill] sm:$0xff] }
 0x46e   : > { %6375 = vpow2.f32 %v2951_v36  ;;  %v3026_v32 = vsel %vm2898_vm5, %v8246_v38, %v5260_v46  ;;  %v2786_v9 = vmul.f32 0.03125, %v2752_v23  ;;  %v4225_v0 = vpack.c.bf16 %v8206_v55, %v8210_v51  ;;  %v8351_v56 = vpop.f32.mrf.mxu0 }
 0x46f   : > { %v5488_v19 = vpack.c.bf16 %v3026_v32, %v3025_v53  ;;  %v2963_v34 = vmul.f32 1.442695, %v8334_v30  ;;  %v6360_v20 = vpop.eup %6359  ;;  %6377 = vrsqrt.f32 %v2817_v1  ;;  %4312 = vmatpush1.bf16.msra.mxu1 %v4229_v10  ;;  %v4226_v21 = vpack.c.bf16 %v8114_v52, %v8122_v62 }
 0x470   : > { %v6362_v38 = vpop.eup %6361  ;;  %v5265_v16 = vadd.f32 -1.0, %v6358_v22  ;;  %4313 = vmatprep.subr.bf16.mxu1 %v4228_v50  ;;  %v4227_v37 = vpack.c.bf16 %v4196_v35, %v8228_v33  ;;  %v2819_v6 = vadd.f32 1e-05, %v2787_v59  ;;  %v2818_v12 = vadd.f32 1e-05, %v2786_v9 }
 0x471   : > { %5543 = vst [vmem:[%s6691_s14 + $0x30] sm:$0xff] %v5488_v19   ;;  %6379 = vpow2.f32 %v2963_v34  ;;  %v6364_v17 = vpop.eup %6363  ;;  %v8355_v48 = vmul.f32 %v6362_v38, %v8038_v3  ;;  %v2788_v62 = vmul.f32 0.03125, %v2756_v39  ;;  %vm2904_vm13 = vcmp.gt.f32.partialorder %v8285_v47, 0.0 }
 0x472   : > { %v6366_v23 = vpop.eup %6365  ;;  %6381 = vpow2.f32 %v2957_v27  ;;  %v8359_v52 = vmul.f32 %v6364_v17, %v8042_v13  ;;  %v3031_v33 = vsel %vm2903_vm11, %v8234_v8, %v5265_v16  ;;  %v5975_v13 = vpop.f32.mrf.mxu0  ;;  %v4224_v46 = vpack.c.bf16 %v8102_v58, %v8110_v7  ;;  %v8955_v27 = vld [vmem:[#allocation48_spill] sm:$0xff] }
 0x473   : > { %v6368_v55 = vpop.eup %6367  ;;  %v5266_v51 = vadd.f32 -1.0, %v6366_v23  ;;  %v2969_v5 = vmul.f32 1.442695, %v8355_v48  ;;  %6383 = vrsqrt.f32 %v2819_v6  ;;  %4314 = vmatpush1.bf16.msra.mxu1 %v4227_v37  ;;  %v2820_v61 = vadd.f32 1e-05, %v2788_v62  ;;  %v8958_v6 = vld [vmem:[#allocation46_spill] sm:$0xff] }
 0x474   : > { %v6370_v3 = vpop.eup %6369  ;;  %v2959_v4 = vmul.f32 1.442695, %v8359_v52  ;;  %v8366_v36 = vmul.f32 %v6368_v55, %v8052_v44  ;;  %6385 = vrsqrt.f32 %v2818_v12  ;;  %4315 = vmatprep.subr.bf16.mxu1 %v4226_v21  ;;  %v4192_v22 = vmul.f32 %v8102_v58, %v8954_v60  ;;  %v4182_v7 = vpop.f32.mrf.mxu0 }
 0x475   : > { %v3032_v63 = vsel %vm2904_vm13, %v8285_v47, %v5266_v51  ;;  %6387 = vpow2.f32 %v2969_v5  ;;  %v8370_v57 = vmul.f32 %v6370_v3, %v8056_v49  ;;  %v5263_v53 = vadd.f32 -1.0, %v6360_v20  ;;  %v8956_v20 = vld [vmem:[#allocation47_spill] sm:$0xff]  ;;  %v8959_v51 = vld [vmem:[#allocation49_spill] sm:$0xff] }
 0x476   : > { %v5503_v8 = vpack.c.bf16 %v3032_v63, %v3031_v33  ;;  %6389 = vpow2.f32 %v2959_v4  ;;  %v2965_v11 = vmul.f32 1.442695, %v8366_v36  ;;  %v4223_v1 = vpack.c.bf16 %v4192_v22, %v8187_v25  ;;  %v8960_v3 = vld [vmem:[#allocation43_spill] sm:$0xff] }
 0x477   : > { %v6372_v44 = vpop.eup %6371  ;;  %v2971_v10 = vmul.f32 1.442695, %v8370_v57  ;;  %6391 = vrsqrt.f32 %v2820_v61  ;;  %4316 = vmatpush1.bf16.msra.mxu1 %v4225_v0  ;;  %vm2901_vm6 = vcmp.gt.f32.partialorder %v8270_v15, 0.0  ;;  %vm2902_vm7 = vcmp.gt.f32.partialorder %v8316_v28, 0.0 }
 0x478   : > { %v6374_v47 = vpop.eup %6373  ;;  %5546 = vst [vmem:[%s6691_s14 + $0x48] sm:$0xff] %v5503_v8   ;;  %6393 = vpow2.f32 %v2965_v11  ;;  %v8380_v49 = vmul.f32 %v6372_v44, %v8066_v40  ;;  %4317 = vmatprep.subr.bf16.mxu1 %v4224_v46  ;;  %v3029_v19 = vsel %vm2901_vm6, %v8270_v15, %v5263_v53  ;;  %v4222_v34 = vmul.f32 %v5975_v13, %v8955_v27  ;;  %v8957_v15 = vld [vmem:[#allocation45_spill] sm:$0xff]  ;;  %v8962_v8 = vld [vmem:[#allocation44_spill] sm:$0xff] }
 0x479   : > { %6395 = vpow2.f32 %v2971_v10  ;;  %v4221_v40 = vmul.f32 %v4182_v7, %v8956_v20  ;;  %v5269_v35 = vadd.f32 -1.0, %v6374_v47  ;;  %v4254_v59 = vpack.c.bf16 %v5975_v13, %v4182_v7  ;;  %v8963_v53 = vld [vmem:[#allocation41_spill] sm:$0xff]  ;;  %v8964_v7 = vld [vmem:[#allocation51_spill] sm:$0xff]  ;;  %v8965_v20 = vld [vmem:[#allocation42_spill] sm:$0xff] }
 0x47a   : > { %v2967_v50 = vmul.f32 1.442695, %v8380_v49  ;;  %v4219_v0 = vmul.f32 %v8351_v56, %v8957_v15  ;;  %v4252_v17 = vpack.c.bf16 %v8336_v43, %v8351_v56  ;;  %vm2907_vm2 = vcmp.gt.f32.partialorder %v8302_v41, 0.0 }
 0x47b   : > { %v6376_v32 = vpop.eup %6375  ;;  %4318 = vmatpush1.bf16.msra.mxu1 %v4223_v1  ;;  %v4253_v21 = vpack.c.bf16 %v4222_v34, %v4221_v40  ;;  %vm2908_vm10 = vcmp.gt.f32.partialorder %v8334_v30, 0.0  ;;  %v3035_v23 = vsel %vm2907_vm2, %v8302_v41, %v5269_v35  ;;  %v4217_v33 = vmul.f32 %v8320_v18, %v8960_v3 }
 0x47c   : > { %v5264_v58 = vadd.f32 -1.0, %v6376_v32  ;;  %v6378_v24 = vpop.eup %6377  ;;  %6397 = vpow2.f32 %v2967_v50  ;;  %4319 = vmatprep.subr.bf16.mxu1 %v4254_v59  ;;  %v4250_v41 = vpack.c.bf16 %v8311_v54, %v8320_v18  ;;  %vm2905_vm3 = vcmp.gt.f32.partialorder %v8326_v2, 0.0 }
 0x47d   : > { %v8391_v38 = vmul.f32 %v6378_v24, %v8072_v42  ;;  %v4220_v42 = vmul.f32 %v8336_v43, %v8958_v6  ;;  %v8961_v43 = vld [vmem:[#allocation50_spill] sm:$0xff]  ;;  %v4218_v11 = vmul.f32 %v8311_v54, %v8962_v8  ;;  %vm2906_vm4 = vcmp.gt.f32.partialorder %v8359_v52, 0.0 }
 0x47e   : > { %v3030_v25 = vsel %vm2902_vm7, %v8316_v28, %v5264_v58  ;;  %v6380_v9 = vpop.eup %6379  ;;  %v4215_v10 = vmul.f32 %v8304_v14, %v8963_v53  ;;  %v4216_v40 = vmul.f32 %v8294_v26, %v8965_v20  ;;  %vm2911_vm0 = vcmp.gt.f32.partialorder %v8355_v48, 0.0  ;;  %v8978_v53 = vld [vmem:[#allocation34_spill] sm:$0xff]  ;;  %v8980_v20 = vld [vmem:[#allocation71_spill] sm:$0xff] }
 0x47f   : > { %v5498_v39 = vpack.c.bf16 %v3030_v25, %v3029_v19  ;;  %v5270_v16 = vadd.f32 -1.0, %v6380_v9  ;;  %v6382_v37 = vpop.eup %6381  ;;  %v2973_v28 = vmul.f32 1.442695, %v8391_v38  ;;  %4320 = vmatpush2.bf16.msra.mxu1 %v4253_v21  ;;  %v4251_v4 = vpack.c.bf16 %v4220_v42, %v4219_v0  ;;  %v8967_v0 = vld [vmem:[#allocation40_spill] sm:$0xff] }
 0x480   : > { %v6384_v12 = vpop.eup %6383  ;;  %4321 = vmatprep.subr.bf16.mxu1 %v4252_v17  ;;  %v5267_v63 = vadd.f32 -1.0, %v6382_v37  ;;  %v4249_v1 = vpack.c.bf16 %v4218_v11, %v4217_v33  ;;  %v4248_v19 = vpack.c.bf16 %v8294_v26, %v8304_v14  ;;  %vm2912_vm14 = vcmp.gt.f32.partialorder %v8370_v57, 0.0  ;;  %v8968_v17 = vld [vmem:[#allocation37_spill] sm:$0xff]  ;;  %v8977_v11 = vld [vmem:[#allocation52_spill] sm:$0xff] }
 0x481   : > { %5545 = vst [vmem:[%s6691_s14 + $0x40] sm:$0xff] %v5498_v39   ;;  %v3036_v62 = vsel %vm2908_vm10, %v8334_v30, %v5270_v16  ;;  %v6386_v56 = vpop.eup %6385  ;;  %v8406_v5 = vmul.f32 %v6384_v12, %v8959_v51  ;;  %6399 = vpow2.f32 %v2973_v28  ;;  %v4247_v26 = vpack.c.bf16 %v4216_v40, %v4215_v10  ;;  %v8970_v12 = vld [vmem:[#allocation38_spill] sm:$0xff]  ;;  %v8981_v40 = vld [vmem:[#allocation73_spill] sm:$0xff] }
 0x482   : > { %v5513_v55 = vpack.c.bf16 %v3036_v62, %v3035_v23  ;;  %v6388_v13 = vpop.eup %6387  ;;  %v8411_v61 = vmul.f32 %v6386_v56, %v8961_v43  ;;  %v3033_v54 = vsel %vm2905_vm3, %v8326_v2, %v5267_v63  ;;  %v8966_v2 = vld [vmem:[#allocation39_spill] sm:$0xff]  ;;  %v4246_v15 = vpack.c.bf16 %v8277_v29, %v8287_v31  ;;  %v8976_v63 = vld [vmem:[#allocation53_spill] sm:$0xff] }
 0x483   : > { %v6390_v30 = vpop.eup %6389  ;;  %v2977_v46 = vmul.f32 1.442695, %v8406_v5  ;;  %4322 = vmatpush2.bf16.msra.mxu1 %v4251_v4  ;;  %v5273_v47 = vadd.f32 -1.0, %v6388_v13  ;;  %vm2909_vm15 = vcmp.gt.f32.partialorder %v8366_v36, 0.0  ;;  %vm2910_vm1 = vcmp.gt.f32.partialorder %v8380_v49, 0.0  ;;  %v8974_v4 = vld [vmem:[#allocation36_spill] sm:$0xff] }
 0x484   : > { %5548 = vst [vmem:[%s6691_s14 + $0x58] sm:$0xff] %v5513_v55   ;;  %v6392_v44 = vpop.eup %6391  ;;  %v5268_v60 = vadd.f32 -1.0, %v6390_v30  ;;  %v2975_v22 = vmul.f32 1.442695, %v8411_v61  ;;  %4323 = vmatprep.subr.bf16.mxu1 %v4250_v41  ;;  %v4214_v21 = vmul.f32 %v8277_v29, %v8967_v0  ;;  %v4211_v37 = vmul.f32 %v8267_v45, %v8968_v17  ;;  %v8971_v29 = vld [vmem:[#allocation35_spill] sm:$0xff]  ;;  %v8973_v55 = vld [vmem:[#allocation54_spill] sm:$0xff] }
 0x485   : > { %v6394_v18 = vpop.eup %6393  ;;  %6401 = vpow2.f32 %v2977_v46  ;;  %v8425_v32 = vmul.f32 %v6392_v44, %v8964_v7  ;;  %v3039_v14 = vsel %vm2911_vm0, %v8355_v48, %v5273_v47  ;;  %v8975_v13 = vld [vmem:[#allocation33_spill] sm:$0xff]  ;;  %vm2913_vm8 = vcmp.gt.f32.partialorder %v8391_v38, 0.0 }
 0x486   : > { %v6396_v58 = vpop.eup %6395  ;;  %v3034_v50 = vsel %vm2906_vm4, %v8359_v52, %v5268_v60  ;;  %6403 = vpow2.f32 %v2975_v22  ;;  %v5271_v35 = vadd.f32 -1.0, %v6394_v18  ;;  %v4213_v52 = vmul.f32 %v8287_v31, %v8966_v2  ;;  %v8969_v31 = vld [vmem:[#allocation56_spill] sm:$0xff] }
 0x487   : > { %v5508_v27 = vpack.c.bf16 %v3034_v50, %v3033_v54  ;;  %v5274_v34 = vadd.f32 -1.0, %v6396_v58  ;;  %v2979_v24 = vmul.f32 1.442695, %v8425_v32  ;;  %4324 = vmatpush2.bf16.msra.mxu1 %v4249_v1  ;;  %v4244_v6 = vpack.c.bf16 %v8969_v31, %v8267_v45  ;;  %v6187_v58 = vld [vmem:[%s6689_s29] ss:$8 sps:$4 sm:$0xff]  }
 0x488   : > { %4325 = vmatprep.subr.bf16.mxu1 %v4248_v19  ;;  %v3037_v48 = vsel %vm2909_vm15, %v8366_v36, %v5271_v35  ;;  %v4245_v28 = vpack.c.bf16 %v4214_v21, %v4213_v52  ;;  %v4212_v23 = vmul.f32 %v8969_v31, %v8970_v12  ;;  %v8972_v36 = vld [vmem:[#allocation55_spill] sm:$0xff]  ;;  %v4210_v45 = vmul.f32 %v8973_v55, %v8974_v4  ;;  %v6409_v19 = vld [vmem:[%s8721_s9] sm:$0xf] }
 0x489   : > { %v6398_v25 = vpop.eup %6397  ;;  %5547 = vst [vmem:[%s6691_s14 + $0x50] sm:$0xff] %v5508_v27   ;;  %v3040_v59 = vsel %vm2912_vm14, %v8370_v57, %v5274_v34  ;;  %6405 = vpow2.f32 %v2979_v24  ;;  %v4209_v62 = vmul.f32 %v8972_v36, %v8971_v29  ;;  %v4242_v51 = vpack.c.bf16 %v8973_v55, %v8972_v36  ;;  %v6190_v54 = vld [vmem:[%s6689_s29 + $0x14] ss:$8 sps:$4 sm:$0xff]   ;;  %v6195_v27 = vld [vmem:[%s6689_s29 + $0x20] ss:$8 sps:$4 sm:$0xff]  }
 0x48a   : > { %v5523_v9 = vpack.c.bf16 %v3040_v59, %v3039_v14  ;;  %v5272_v39 = vadd.f32 -1.0, %v6398_v25  ;;  %v4207_v43 = vmul.f32 %v8976_v63, %v8975_v13  ;;  %vm2914_vm12 = vcmp.gt.f32.partialorder %v8411_v61, 0.0  ;;  %v6196_v34 = vld [vmem:[%s6689_s29 + $0x34] ss:$8 sps:$4 sm:$0xff]   ;;  %v6198_v2 = vld [vmem:[%s6689_s29 + $0x30] ss:$8 sps:$4 sm:$0xff]  }
 0x48b   : > { %4326 = vmatpush2.bf16.msra.mxu1 %v4247_v26  ;;  %v4241_v30 = vpack.c.bf16 %v4210_v45, %v4209_v62  ;;  %v4240_v44 = vpack.c.bf16 %v8977_v11, %v8976_v63  ;;  %v4208_v10 = vmul.f32 %v8977_v11, %v8978_v53  ;;  %vm2915_vm5 = vcmp.gt.f32.partialorder %v8406_v5, 0.0  ;;  %v4451_v12 = vld [vmem:[#allocation5 + $0x50] sm:$0xff]  ;;  %v4453_v36 = vld [vmem:[#allocation5 + $0x68] sm:$0xff]  ;;  %v4454_v62 = vld [vmem:[#allocation5 + $0x20] sm:$0xff] }
 0x48c   : > { %5550 = vst [vmem:[%s6691_s14 + $0x68] sm:$0xff] %v5523_v9   ;;  %v3038_v57 = vsel %vm2910_vm1, %v8380_v49, %v5272_v39  ;;  %4327 = vmatprep.subr.bf16.mxu1 %v4246_v15  ;;  %v4243_v49 = vpack.c.bf16 %v4212_v23, %v4211_v37  ;;  %vm2916_vm11 = vcmp.gt.f32.partialorder %v8425_v32, 0.0  ;;  %v6531_v50 = vmov 0.0   ;;  %v4452_v23 = vld [vmem:[#allocation5 + $0x60] sm:$0xff]  ;;  %v4457_v55 = vld [vmem:[#allocation5 + $0x28] sm:$0xff]  ;;  %v4459_v45 = vld [vmem:[#allocation5 + $0x38] sm:$0xff] }
 0x48d   : > { %v5518_v16 = vpack.c.bf16 %v3038_v57, %v3037_v48  ;;  %v4239_v7 = vpack.c.bf16 %v4208_v10, %v4207_v43  ;;  %vm8979_vm13 = vcmask 1043456   ;;  %v8982_v24 = vsub.f32 %v8980_v20, %v8981_v40  ;;  %v4460_v13 = vld [vmem:[#allocation5 + $0x8] sm:$0xff]  ;;  %v4461_v63 = vld [vmem:[#allocation5 + $0x58] sm:$0xff] }
 0x48e   : > { %v6400_v42 = vpop.eup %6399  ;;  %vm6532_vm6 = vmmov 0   ;;  %vm8983_vm7 = vcmask 31744  }
 0x48f   : > { %5549 = vst [vmem:[%s6691_s14 + $0x60] sm:$0xff] %v5518_v16   ;;  %4328 = vmatpush2.bf16.msra.mxu1 %v4245_v28  ;;  %v5275_v3 = vadd.f32 -1.0, %v6400_v42  ;;  %v3759_v35 = vmul.f32 1.442695, %v8982_v24  ;;  %v4450_v42 = vld [vmem:[#allocation5 + $0x18] sm:$0xff] }
 0x490   : > { %4329 = vmatprep.subr.bf16.mxu1 %v4244_v6  ;;  %v4449_v6 = vld [vmem:[#allocation5] sm:$0xff] }
 0x491   : > { %v3041_v60 = vsel %vm2913_vm8, %v8391_v38, %v5275_v3  ;;  %6407 = vpow2.f32 %v3759_v35  ;;  %v8984_v3 = vld [vmem:[#allocation72_spill] sm:$0xff] }
 0x492   : > { %v6402_v56 = vpop.eup %6401 }
 0x493   : > { %v6404_v33 = vpop.eup %6403  ;;  %4330 = vmatpush2.bf16.msra.mxu1 %v4243_v49  ;;  %v5277_v46 = vadd.f32 -1.0, %v6402_v56  ;;  %v4455_v49 = vld [vmem:[#allocation5 + $0x70] sm:$0xff] }
 0x494   : > { %v5276_v41 = vadd.f32 -1.0, %v6404_v33  ;;  %4331 = vmatprep.subr.bf16.mxu1 %v4242_v51  ;;  %v4456_v56 = vld [vmem:[#allocation5 + $0x10] sm:$0xff]  ;;  %v4458_v51 = vld [vmem:[#allocation5 + $0x40] sm:$0xff]  ;;  %v8985_v33 = vsub.s32 0, %v8984_v3 }
 0x495   : > { %v3043_v38 = vsel %vm2915_vm5, %v8406_v5, %v5277_v46  ;;  %v6192_v5 = vld [vmem:[%s6689_s29 + $0x10] ss:$8 sps:$4 sm:$0xff]  }
 0x496   : > { %v6406_v8 = vpop.eup %6405  ;;  %v3042_v22 = vsel %vm2914_vm12, %v8411_v61, %v5276_v41  ;;  %v4462_v41 = vld [vmem:[#allocation5 + $0x48] sm:$0xff]  ;;  %v4464_v46 = vld [vmem:[#allocation5 + $0x30] sm:$0xff] }
 0x497   : > { %v5528_v18 = vpack.c.bf16 %v3042_v22, %v3041_v60  ;;  %v5278_v47 = vadd.f32 -1.0, %v6406_v8  ;;  %4332 = vmatpush2.bf16.msra.mxu1 %v4241_v30  ;;  %v4463_v30 = vld [vmem:[#allocation5 + $0x78] sm:$0xff] }
 0x498   : > { %4333 = vmatprep.subr.bf16.mxu1 %v4240_v44 }
 0x499   : > { %5551 = vst [vmem:[%s6691_s14 + $0x70] sm:$0xff] %v5528_v18   ;;  %v3044_v61 = vsel %vm2916_vm11, %v8425_v32, %v5278_v47  ;;  %v6193_v32 = vld [vmem:[%s6689_s29 + $0x24] ss:$8 sps:$4 sm:$0xff]  }
 0x49a   : > { %v5533_v1 = vpack.c.bf16 %v3044_v61, %v3043_v38 }
 0x49b   : > { %4334 = vmatpush2.bf16.msra.mxu1 %v4239_v7 }
 0x49c   : > { %5552 = vst [vmem:[%s6691_s14 + $0x78] sm:$0xff] %v5533_v1   ;;  %5976 = vmatprep.subr.mxu1 %v6531_v50 }
 0x49e   : > { %4336 = vmatmul.mubr.bf16.vlgmr.msra.gmra.mxu1 %v6187_v58  ;;  %v6408_v52 = vpop.eup %6407 }
 0x49f   : > { %5977 = vmatpush3.msk.msra.mxu1 %vm8979_vm13, %v6409_v19  ;;  %4345 = vmatprep.mubr.bf16.mxu1 %v6190_v54 }
 0x4a6   : > { %4346 = vmatmul.mubr.bf16.gmra.mxu1 %v6192_v5 }
 0x4a7   : > { %4355 = vmatprep.mubr.bf16.mxu1 %v6193_v32 }
 0x4ae   : > { %4356 = vmatmul.mubr.bf16.gmra.mxu1 %v6195_v27 }
 0x4af   : > { %4365 = vmatprep.mubr.bf16.mxu1 %v6196_v34 }
 0x4b6   : > { %4366 = vmatmul.mubr.bf16.gmra.mxu1 %v6198_v2 }
 0x4b7   : > { %5978 = vmatprep.mubr.msk.f32.mxu1 %vm6532_vm6, %v6531_v50 }
 0x4be   : > { %5979 = vmatmul.mubr.msk.f32.vlgmr.msra.gmra.mxu1 %vm8983_vm7, %v6408_v52 }
 0x55e   : > { %v4337_v25 = vpop.f32.mrf.mxu1 }
 0x560   : > { %v4339_v14 = vpop.f32.mrf.mxu1 }
 0x562   : > { %v4341_v59 = vpop.f32.mrf.mxu1 }
 0x564   : > { %v4343_v26 = vpop.f32.mrf.mxu1 }
 0x566   : > { %v4347_v9 = vpop.f32.mrf.mxu1 }
 0x568   : > { %v4349_v39 = vpop.f32.mrf.mxu1 }
 0x56a   : > { %v4351_v15 = vpop.f32.mrf.mxu1 }
 0x56c   : > { %v4353_v0 = vpop.f32.mrf.mxu1 }
 0x56e   : > { %v4357_v21 = vpop.f32.mrf.mxu1 }
 0x570   : > { %v4359_v48 = vpop.f32.mrf.mxu1 }
 0x572   : > { %v4361_v57 = vpop.f32.mrf.mxu1 }
 0x574   : > { %v4363_v16 = vpop.f32.mrf.mxu1 }
 0x576   : > { %v4367_v17 = vpop.f32.mrf.mxu1 }
 0x578   : > { %v4369_v37 = vpop.f32.mrf.mxu1 }
 0x57a   : > { %v4371_v28 = vpop.f32.mrf.mxu1 }
 0x57c   : > { %v4373_v31 = vpop.f32.mrf.mxu1 }
 0x57e   : > { %v4445_v29 = vpop.f32.mrf.mxu1 }
 0x57f   : > { %v4468_v4 = vrot.slane %v4445_v29, %v8985_v33 }
 0x580   : > { %v5980_v43 = vpop.f32.mrf.mxu1 }
 0x581   : > { %v4469_v8 = vmul.f32 %v4468_v4, %v4449_v6  ;;  %v4470_v11 = vmul.f32 %v4468_v4, %v4450_v42  ;;  %v4471_v44 = vmul.f32 %v4468_v4, %v4451_v12  ;;  %v4472_v60 = vmul.f32 %v4468_v4, %v4452_v23 }
 0x582   : > { %v4473_v22 = vmul.f32 %v4468_v4, %v4453_v36  ;;  %v4474_v53 = vmul.f32 %v4468_v4, %v4454_v62  ;;  %v4475_v10 = vmul.f32 %v4468_v4, %v4455_v49  ;;  %v4476_v18 = vmul.f32 %v4468_v4, %v4456_v56 }
 0x583   : > { %v4477_v47 = vmul.f32 %v4468_v4, %v4457_v55  ;;  %v4478_v7 = vmul.f32 %v4468_v4, %v4458_v51  ;;  %v4479_v38 = vmul.f32 %v4468_v4, %v4459_v45  ;;  %v4480_v61 = vmul.f32 %v4468_v4, %v4460_v13 }
 0x584   : > { %v4481_v1 = vmul.f32 %v4468_v4, %v4461_v63  ;;  %v4482_v58 = vmul.f32 %v4468_v4, %v4462_v41  ;;  %v4483_v54 = vmul.f32 %v4468_v4, %v4463_v30  ;;  %v4484_v50 = vmul.f32 %v4468_v4, %v4464_v46 }
 0x585   : > { %v4485_v19 = vadd.f32 %v4469_v8, %v4337_v25  ;;  %v4486_v5 = vadd.f32 %v4470_v11, %v4339_v14  ;;  %v4487_v32 = vadd.f32 %v4471_v44, %v4341_v59  ;;  %v4488_v27 = vadd.f32 %v4472_v60, %v4343_v26 }
 0x586   : > { %v4489_v34 = vadd.f32 %v4473_v22, %v4347_v9  ;;  %v4490_v20 = vadd.f32 %v4474_v53, %v4349_v39  ;;  %v4491_v40 = vadd.f32 %v4475_v10, %v4351_v15  ;;  %v4492_v24 = vadd.f32 %v4476_v18, %v4353_v0 }
 0x587   : > { %v4493_v35 = vadd.f32 %v4477_v47, %v4357_v21  ;;  %v4494_v2 = vadd.f32 %v4478_v7, %v4359_v48  ;;  %v4495_v52 = vadd.f32 %v4479_v38, %v4361_v57  ;;  %v4496_v6 = vadd.f32 %v4480_v61, %v4363_v16  ;;  %4501 = vst [vmem:[#allocation5] sm:$0xff] %v4485_v19 }
 0x588   : > { %4502 = vst [vmem:[#allocation5 + $0x18] sm:$0xff] %v4486_v5  ;;  %4503 = vst [vmem:[#allocation5 + $0x50] sm:$0xff] %v4487_v32  ;;  %v4497_v42 = vadd.f32 %v4481_v1, %v4367_v17  ;;  %v4498_v12 = vadd.f32 %v4482_v58, %v4369_v37  ;;  %v4499_v23 = vadd.f32 %v4483_v54, %v4371_v28 }
 0x589   : > { %4504 = vst [vmem:[#allocation5 + $0x60] sm:$0xff] %v4488_v27  ;;  %v4500_v29 = vadd.f32 %v4484_v50, %v4373_v31  ;;  %4505 = vst [vmem:[#allocation5 + $0x68] sm:$0xff] %v4489_v34 }
 0x58a   : > { %4506 = vst [vmem:[#allocation5 + $0x20] sm:$0xff] %v4490_v20  ;;  %4507 = vst [vmem:[#allocation5 + $0x70] sm:$0xff] %v4491_v40 }
 0x58b   : > { %4508 = vst [vmem:[#allocation5 + $0x10] sm:$0xff] %v4492_v24  ;;  %4509 = vst [vmem:[#allocation5 + $0x28] sm:$0xff] %v4493_v35  ;;  %4520 = sbr.rel (%p5362_p1) target bundleno = 2189 (0x88d), region = 118 }
 0x58c   : > { %4510 = vst [vmem:[#allocation5 + $0x40] sm:$0xff] %v4494_v2  ;;  %4511 = vst [vmem:[#allocation5 + $0x38] sm:$0xff] %v4495_v52 }
 0x58d   : > { %4512 = vst [vmem:[#allocation5 + $0x8] sm:$0xff] %v4496_v6  ;;  %4513 = vst [vmem:[#allocation5 + $0x58] sm:$0xff] %v4497_v42 }
 0x58e   : > { %4514 = vst [vmem:[#allocation5 + $0x48] sm:$0xff] %v4498_v12  ;;  %4515 = vst [vmem:[#allocation5 + $0x78] sm:$0xff] %v4499_v23 }
 0x58f   : > { %4516 = vst [vmem:[#allocation5 + $0x30] sm:$0xff] %v4500_v29 }
 0x590   : > { %v6410_v25 = vld [vmem:[%s8722_s10 + $0x38] sm:$0xff]   ;;  %v6411_v14 = vld [vmem:[%s8722_s10 + $0x30] sm:$0xff]   ;;  %v6412_v59 = vld [vmem:[%s8722_s10 + $0x28] sm:$0xff]   ;;  %vm4958_vm1 = vcmask 261120  }
 0x591   : > { %5981 = vmatprep.subr.bf16.mxu0 %v6410_v25  ;;  %v6413_v26 = vld [vmem:[%s8722_s10 + $0x20] sm:$0xff]   ;;  %v6414_v37 = vld [vmem:[%s8722_s10 + $0x18] sm:$0xff]   ;;  %v6415_v51 = vld [vmem:[%s8722_s10 + $0x10] sm:$0xff]  }
 0x592   : > { %5982 = vmatpush3.bf16.msra.mxu0 %v6410_v25  ;;  %v4522_v9 = vld [vmem:[#allocation5 + $0x18] sm:$0xff]  ;;  %v4524_v39 = vld [vmem:[#allocation5 + $0x60] sm:$0xff]  ;;  %v4528_v48 = vld [vmem:[#allocation5 + $0x10] sm:$0xff] }
 0x593   : > { %5983 = vmatprep.subr.bf16.mxu0 %v6411_v14  ;;  %v4537_v15 = vmax.f32 %v4522_v9, 1e-30  ;;  %v4526_v0 = vld [vmem:[#allocation5 + $0x20] sm:$0xff]  ;;  %v4538_v21 = vmax.f32 %v4524_v39, 1e-30  ;;  %v4523_v4 = vld [vmem:[#allocation5 + $0x50] sm:$0xff] }
 0x594   : > { %v4539_v57 = vmax.f32 %v4526_v0, 1e-30  ;;  %v4540_v16 = vmax.f32 %v4528_v48, 1e-30  ;;  %v4530_v17 = vld [vmem:[#allocation5 + $0x40] sm:$0xff]  ;;  %v4532_v28 = vld [vmem:[#allocation5 + $0x8] sm:$0xff] }
 0x595   : > { %6418 = vrcp.f32 %v4537_v15  ;;  %v4541_v31 = vmax.f32 %v4530_v17, 1e-30  ;;  %v4534_v36 = vld [vmem:[#allocation5 + $0x48] sm:$0xff]  ;;  %v4542_v62 = vmax.f32 %v4532_v28, 1e-30  ;;  %v4521_v33 = vld [vmem:[#allocation5] sm:$0xff] }
 0x596   : > { %5984 = vmatpush3.bf16.msra.mxu0 %v6411_v14  ;;  %6420 = vrcp.f32 %v4538_v21  ;;  %v4536_v49 = vld [vmem:[#allocation5 + $0x30] sm:$0xff]  ;;  %v4543_v56 = vmax.f32 %v4534_v36, 1e-30  ;;  %v6416_v3 = vld [vmem:[%s8722_s10 + $0x8] sm:$0xff]   ;;  %v6417_v13 = vld [vmem:[%s8722_s10] sm:$0xff]  }
 0x597   : > { %5985 = vmatprep.subr.bf16.mxu0 %v6412_v59  ;;  %6422 = vrcp.f32 %v4539_v57  ;;  %v4544_v55 = vmax.f32 %v4536_v49, 1e-30  ;;  %v4525_v63 = vld [vmem:[#allocation5 + $0x68] sm:$0xff]  ;;  %v4527_v30 = vld [vmem:[#allocation5 + $0x70] sm:$0xff]  ;;  %v4531_v22 = vld [vmem:[#allocation5 + $0x38] sm:$0xff] }
 0x598   : > { %6424 = vrcp.f32 %v4540_v16  ;;  %v4529_v11 = vld [vmem:[#allocation5 + $0x28] sm:$0xff]  ;;  %v4533_v54 = vld [vmem:[#allocation5 + $0x58] sm:$0xff] }
 0x599   : > { %6426 = vrcp.f32 %v4541_v31  ;;  %v4535_v50 = vld [vmem:[#allocation5 + $0x78] sm:$0xff] }
 0x59a   : > { %5986 = vmatpush3.bf16.msra.mxu0 %v6412_v59  ;;  %6428 = vrcp.f32 %v4542_v62 }
 0x59b   : > { %5987 = vmatprep.subr.bf16.mxu0 %v6413_v26  ;;  %6430 = vrcp.f32 %v4543_v56 }
 0x59c   : > { %6432 = vrcp.f32 %v4544_v55 }
 0x59e   : > { %5988 = vmatpush3.bf16.msra.mxu0 %v6413_v26 }
 0x59f   : > { %5989 = vmatprep.subr.bf16.mxu0 %v6414_v37 }
 0x5a2   : > { %5990 = vmatpush3.bf16.msra.mxu0 %v6414_v37  ;;  %v6419_v45 = vpop.eup %6418 }
 0x5a3   : > { %5991 = vmatprep.subr.bf16.mxu0 %v6415_v51  ;;  %v6421_v43 = vpop.eup %6420  ;;  %v4546_v41 = vmul.f32 %v6419_v45, %v4521_v33 }
 0x5a4   : > { %v6423_v46 = vpop.eup %6422  ;;  %v4548_v8 = vmul.f32 %v6421_v43, %v4523_v4 }
 0x5a5   : > { %v6425_v44 = vpop.eup %6424  ;;  %v4550_v60 = vmul.f32 %v6423_v46, %v4525_v63 }
 0x5a6   : > { %5992 = vmatpush3.bf16.msra.mxu0 %v6415_v51  ;;  %v6427_v53 = vpop.eup %6426  ;;  %v4561_v10 = vpack.c.bf16 %v4548_v8, %v4546_v41  ;;  %v4552_v18 = vmul.f32 %v6425_v44, %v4527_v30 }
 0x5a7   : > { %5993 = vmatprep.subr.bf16.mxu0 %v6416_v3  ;;  %v6429_v47 = vpop.eup %6428  ;;  %v4554_v7 = vmul.f32 %v6427_v53, %v4529_v11  ;;  %v4845_v53 = vld [vmem:[%s8723_s11 + $0x78] sm:$0xff] }
 0x5a8   : > { %v6431_v38 = vpop.eup %6430  ;;  %5997 = vmatprep.mubr.bf16.mxu0 %v4561_v10  ;;  %v4562_v61 = vpack.c.bf16 %v4552_v18, %v4550_v60  ;;  %v4556_v1 = vmul.f32 %v6429_v47, %v4531_v22  ;;  %6005 = vmatprep.subr.mxu1 %v4845_v53  ;;  %v4844_v10 = vld [vmem:[%s8723_s11 + $0x70] sm:$0xff]  ;;  %v4843_v18 = vld [vmem:[%s8723_s11 + $0x68] sm:$0xff]  ;;  %v4842_v47 = vld [vmem:[%s8723_s11 + $0x60] sm:$0xff] }
 0x5a9   : > { %v6433_v58 = vpop.eup %6432  ;;  %v4558_v5 = vmul.f32 %v6431_v38, %v4533_v54  ;;  %6006 = vmatpush3.msra.mxu1 %v4845_v53  ;;  %v4840_v38 = vld [vmem:[%s8723_s11 + $0x50] sm:$0xff] }
 0x5aa   : > { %5994 = vmatpush3.bf16.msra.mxu0 %v6416_v3  ;;  %v4563_v19 = vpack.c.bf16 %v4556_v1, %v4554_v7  ;;  %v4560_v32 = vmul.f32 %v6433_v58, %v4535_v50  ;;  %6007 = vmatprep.subr.mxu1 %v4844_v10  ;;  %v4841_v7 = vld [vmem:[%s8723_s11 + $0x58] sm:$0xff]  ;;  %v4838_v1 = vld [vmem:[%s8723_s11 + $0x40] sm:$0xff]  ;;  %v4836_v54 = vld [vmem:[%s8723_s11 + $0x30] sm:$0xff] }
 0x5ab   : > { %5995 = vmatprep.subr.bf16.mxu0 %v6417_v13  ;;  %6008 = vmatpush3.msra.mxu1 %v4844_v10  ;;  %v4837_v58 = vld [vmem:[%s8723_s11 + $0x38] sm:$0xff]  ;;  %v4835_v50 = vld [vmem:[%s8723_s11 + $0x28] sm:$0xff] }
 0x5ac   : > { %v4564_v27 = vpack.c.bf16 %v4560_v32, %v4558_v5  ;;  %6009 = vmatprep.subr.mxu1 %v4843_v18  ;;  %v4833_v5 = vld [vmem:[%s8723_s11 + $0x18] sm:$0xff]  ;;  %v4832_v32 = vld [vmem:[%s8723_s11 + $0x10] sm:$0xff] }
 0x5ad   : > { %6010 = vmatpush3.msra.mxu1 %v4843_v18 }
 0x5ae   : > { %5996 = vmatpush3.bf16.msra.mxu0 %v6417_v13  ;;  %6011 = vmatprep.subr.mxu1 %v4842_v47 }
 0x5af   : > { %6012 = vmatpush3.msra.mxu1 %v4842_v47 }
 0x5b0   : > { %6013 = vmatprep.subr.mxu1 %v4841_v7 }
 0x5b1   : > { %5998 = vmatmul.mubr.bf16.vlgmr.msra.gmra.mxu0 %v4562_v61  ;;  %6014 = vmatpush3.msra.mxu1 %v4841_v7  ;;  %v4839_v61 = vld [vmem:[%s8723_s11 + $0x48] sm:$0xff] }
 0x5b2   : > { %6001 = vmatprep.mubr.bf16.mxu0 %v4563_v19  ;;  %6015 = vmatprep.subr.mxu1 %v4840_v38  ;;  %v4834_v19 = vld [vmem:[%s8723_s11 + $0x20] sm:$0xff] }
 0x5b3   : > { %6016 = vmatpush3.msra.mxu1 %v4840_v38 }
 0x5b4   : > { %6017 = vmatprep.subr.mxu1 %v4839_v61 }
 0x5b5   : > { %6018 = vmatpush3.msra.mxu1 %v4839_v61 }
 0x5b6   : > { %6019 = vmatprep.subr.mxu1 %v4838_v1 }
 0x5b7   : > { %6020 = vmatpush3.msra.mxu1 %v4838_v1 }
 0x5b8   : > { %6021 = vmatprep.subr.mxu1 %v4837_v58 }
 0x5b9   : > { %6002 = vmatmul.mubr.bf16.gmra.mxu0 %v4564_v27  ;;  %6022 = vmatpush3.msra.mxu1 %v4837_v58  ;;  %v4831_v27 = vld [vmem:[%s8723_s11 + $0x8] sm:$0xff] }
 0x5ba   : > { %6023 = vmatprep.subr.mxu1 %v4836_v54 }
 0x5bb   : > { %6024 = vmatpush3.msra.mxu1 %v4836_v54 }
 0x5bc   : > { %6025 = vmatprep.subr.mxu1 %v4835_v50 }
 0x5bd   : > { %6026 = vmatpush3.msra.mxu1 %v4835_v50 }
 0x5be   : > { %6027 = vmatprep.subr.mxu1 %v4834_v19 }
 0x5bf   : > { %6028 = vmatpush3.msra.mxu1 %v4834_v19 }
 0x5c0   : > { %6029 = vmatprep.subr.mxu1 %v4833_v5 }
 0x5c1   : > { %6030 = vmatpush3.msra.mxu1 %v4833_v5 }
 0x5c2   : > { %6031 = vmatprep.subr.mxu1 %v4832_v32 }
 0x5c3   : > { %6032 = vmatpush3.msra.mxu1 %v4832_v32 }
 0x5c4   : > { %6033 = vmatprep.subr.mxu1 %v4831_v27 }
 0x5c5   : > { %6034 = vmatpush3.msra.mxu1 %v4831_v27 }
 0x671   : > { %v5999_v34 = vpop.f32.mrf.mxu0 }
 0x672   : > { %4698 = vadd.xlane.f32.xlu1 %v5999_v34 }
 0x673   : > { %v4663_v20 = vpop.f32.mrf.mxu0 }
 0x674   : > { %4694 = vadd.xlane.f32.xlu0 %v4663_v20 }
 0x675   : > { %v6000_v40 = vpop.f32.mrf.mxu0 }
 0x676   : > { %4700 = vadd.xlane.f32.xlu1 %v6000_v40 }
 0x677   : > { %v4666_v24 = vpop.f32.mrf.mxu0 }
 0x678   : > { %4696 = vadd.xlane.f32.xlu0 %v4666_v24 }
 0x679   : > { %v6003_v35 = vpop.f32.mrf.mxu0 }
 0x67b   : > { %v4679_v2 = vpop.f32.mrf.mxu0 }
 0x67c   : > { %4702 = vadd.xlane.f32.xlu0 %v4679_v2 }
 0x67d   : > { %v6004_v52 = vpop.f32.mrf.mxu0 }
 0x67f   : > { %v4682_v6 = vpop.f32.mrf.mxu0 }
 0x680   : > { %4706 = vadd.xlane.f32.xlu0 %v6003_v35  ;;  %4704 = vadd.xlane.f32.xlu1 %v4682_v6 }
 0x684   : > { %4708 = vadd.xlane.f32.xlu1 %v6004_v52 }
 0x6fb   : > { %v4699_v42 = vpop.xlane.xlu1 %4698 }
 0x6fc   : > { %v4712_v12 = vmul.f32 0.03125, %v4699_v42 }
 0x6fd   : > { %v4695_v23 = vpop.xlane.xlu0 %4694 }
 0x6fe   : > { %v4710_v29 = vmul.f32 0.03125, %v4695_v23  ;;  %v4720_v14 = vsub.f32 %v5999_v34, %v4712_v12  ;;  %v4830_v34 = vld [vmem:[%s8723_s11] sm:$0xff] }
 0x6ff   : > { %v4701_v25 = vpop.xlane.xlu1 %4700  ;;  %6035 = vmatprep.subr.mxu1 %v4830_v34 }
 0x700   : > { %v4718_v59 = vsub.f32 %v4663_v20, %v4710_v29  ;;  %v4713_v26 = vmul.f32 0.03125, %v4701_v25  ;;  %v8531_v16 = vsel %vm2500_vm9, %v4720_v14, 0.0  ;;  %6036 = vmatpush3.msra.mxu1 %v4830_v34 }
 0x701   : > { %v4697_v9 = vpop.xlane.xlu0 %4696  ;;  %v4736_v31 = vmul.f32 %v8531_v16, %v8531_v16 }
 0x702   : > { %v4711_v39 = vmul.f32 0.03125, %v4697_v9  ;;  %v8525_v0 = vsel %vm2500_vm9, %v4718_v59, 0.0  ;;  %v4721_v48 = vsub.f32 %v6000_v40, %v4713_v26 }
 0x703   : > { %v4734_v21 = vmul.f32 %v8525_v0, %v8525_v0 }
 0x704   : > { %v4719_v57 = vsub.f32 %v4666_v24, %v4711_v39  ;;  %v8543_v49 = vsel %vm2500_vm9, %v4721_v48, 0.0 }
 0x705   : > { %4742 = vadd.xlane.f32.xlu0 %v4734_v21  ;;  %v4703_v17 = vpop.xlane.xlu0 %4702  ;;  %v4737_v45 = vmul.f32 %v8543_v49, %v8543_v49 }
 0x706   : > { %v4714_v37 = vmul.f32 0.03125, %v4703_v17  ;;  %v8535_v28 = vsel %vm2500_vm9, %v4719_v57, 0.0 }
 0x707   : > { %v4735_v36 = vmul.f32 %v8535_v28, %v8535_v28 }
 0x708   : > { %v4722_v62 = vsub.f32 %v4679_v2, %v4714_v37 }
 0x709   : > { %4746 = vadd.xlane.f32.xlu0 %v4736_v31  ;;  %v4707_v56 = vpop.xlane.xlu0 %4706  ;;  %4744 = vadd.xlane.f32.xlu1 %v4735_v36  ;;  %v4705_v55 = vpop.xlane.xlu1 %4704 }
 0x70a   : > { %v4716_v51 = vmul.f32 0.03125, %v4707_v56  ;;  %v4715_v3 = vmul.f32 0.03125, %v4705_v55  ;;  %v8547_v33 = vsel %vm2500_vm9, %v4722_v62, 0.0 }
 0x70b   : > { %v4738_v4 = vmul.f32 %v8547_v33, %v8547_v33 }
 0x70c   : > { %v4724_v13 = vsub.f32 %v6003_v35, %v4716_v51  ;;  %v4723_v63 = vsub.f32 %v4682_v6, %v4715_v3 }
 0x70d   : > { %4750 = vadd.xlane.f32.xlu0 %v4738_v4  ;;  %4748 = vadd.xlane.f32.xlu1 %v4737_v45  ;;  %v4709_v43 = vpop.xlane.xlu1 %4708 }
 0x70e   : > { %v4717_v41 = vmul.f32 0.03125, %v4709_v43  ;;  %v8555_v30 = vsel %vm2500_vm9, %v4724_v13, 0.0  ;;  %v8559_v46 = vsel %vm2500_vm9, %v4723_v63, 0.0 }
 0x70f   : > { %v4740_v8 = vmul.f32 %v8555_v30, %v8555_v30  ;;  %v4739_v11 = vmul.f32 %v8559_v46, %v8559_v46 }
 0x710   : > { %v4725_v44 = vsub.f32 %v6004_v52, %v4717_v41 }
 0x711   : > { %4754 = vadd.xlane.f32.xlu0 %v4740_v8  ;;  %4752 = vadd.xlane.f32.xlu1 %v4739_v11 }
 0x712   : > { %v8567_v60 = vsel %vm2500_vm9, %v4725_v44, 0.0 }
 0x713   : > { %v4741_v22 = vmul.f32 %v8567_v60, %v8567_v60 }
 0x715   : > { %4756 = vadd.xlane.f32.xlu1 %v4741_v22 }
 0x78e   : > { %v4743_v20 = vpop.xlane.xlu0 %4742 }
 0x78f   : > { %v4758_v40 = vmul.f32 0.03125, %v4743_v20 }
 0x791   : > { %v4766_v24 = vadd.f32 1e-05, %v4758_v40 }
 0x792   : > { %v4747_v35 = vpop.xlane.xlu0 %4746  ;;  %v4745_v2 = vpop.xlane.xlu1 %4744 }
 0x793   : > { %6434 = vrsqrt.f32 %v4766_v24  ;;  %v4760_v52 = vmul.f32 0.03125, %v4747_v35  ;;  %v4759_v6 = vmul.f32 0.03125, %v4745_v2 }
 0x795   : > { %v4768_v42 = vadd.f32 1e-05, %v4760_v52  ;;  %v4767_v12 = vadd.f32 1e-05, %v4759_v6 }
 0x796   : > { %v4751_v23 = vpop.xlane.xlu0 %4750  ;;  %v4749_v29 = vpop.xlane.xlu1 %4748 }
 0x797   : > { %6436 = vrsqrt.f32 %v4768_v42  ;;  %v4762_v25 = vmul.f32 0.03125, %v4751_v23  ;;  %v4761_v14 = vmul.f32 0.03125, %v4749_v29 }
 0x798   : > { %6438 = vrsqrt.f32 %v4767_v12  ;;  %v5379_v12 = vld [vmem:[%s8724_s12] ss:$0 sm:$0xff] }
 0x799   : > { %v4770_v59 = vadd.f32 1e-05, %v4762_v25  ;;  %v4769_v26 = vadd.f32 1e-05, %v4761_v14 }
 0x79a   : > { %v4755_v9 = vpop.xlane.xlu0 %4754  ;;  %v4753_v39 = vpop.xlane.xlu1 %4752 }
 0x79b   : > { %6440 = vrsqrt.f32 %v4770_v59  ;;  %v4764_v15 = vmul.f32 0.03125, %v4755_v9  ;;  %v4763_v21 = vmul.f32 0.03125, %v4753_v39 }
 0x79c   : > { %6442 = vrsqrt.f32 %v4769_v26 }
 0x79d   : > { %v4772_v48 = vadd.f32 1e-05, %v4764_v15  ;;  %v4771_v57 = vadd.f32 1e-05, %v4763_v21 }
 0x79e   : > { %v4757_v17 = vpop.xlane.xlu1 %4756 }
 0x79f   : > { %6444 = vrsqrt.f32 %v4772_v48  ;;  %v4765_v37 = vmul.f32 0.03125, %v4757_v17 }
 0x7a0   : > { %v6435_v31 = vpop.eup %6434  ;;  %6446 = vrsqrt.f32 %v4771_v57 }
 0x7a1   : > { %v4773_v36 = vadd.f32 1e-05, %v4765_v37  ;;  %v4782_v62 = vmul.f32 %v6435_v31, %v8525_v0 }
 0x7a3   : > { %6448 = vrsqrt.f32 %v4773_v36  ;;  %v4798_v56 = vmul.f32 1.442695, %v4782_v62  ;;  %vm4790_vm9 = vcmp.gt.f32.partialorder %v4782_v62, 0.0 }
 0x7a4   : > { %v6437_v55 = vpop.eup %6436 }
 0x7a5   : > { %v6439_v51 = vpop.eup %6438  ;;  %6450 = vpow2.f32 %v4798_v56  ;;  %v4784_v3 = vmul.f32 %v6437_v55, %v8531_v16 }
 0x7a6   : > { %v4783_v4 = vmul.f32 %v6439_v51, %v8535_v28 }
 0x7a7   : > { %v4802_v45 = vmul.f32 1.442695, %v4784_v3  ;;  %vm4792_vm2 = vcmp.gt.f32.partialorder %v4784_v3, 0.0 }
 0x7a8   : > { %v6441_v13 = vpop.eup %6440  ;;  %v4800_v63 = vmul.f32 1.442695, %v4783_v4  ;;  %vm4791_vm10 = vcmp.gt.f32.partialorder %v4783_v4, 0.0 }
 0x7a9   : > { %v6443_v43 = vpop.eup %6442  ;;  %6452 = vpow2.f32 %v4802_v45  ;;  %v4786_v41 = vmul.f32 %v6441_v13, %v8547_v33 }
 0x7aa   : > { %6454 = vpow2.f32 %v4800_v63  ;;  %v4785_v8 = vmul.f32 %v6443_v43, %v8543_v49 }
 0x7ab   : > { %v4806_v0 = vmul.f32 1.442695, %v4786_v41  ;;  %vm4794_vm3 = vcmp.gt.f32.partialorder %v4786_v41, 0.0 }
 0x7ac   : > { %v6445_v11 = vpop.eup %6444  ;;  %v4804_v44 = vmul.f32 1.442695, %v4785_v8  ;;  %vm4793_vm4 = vcmp.gt.f32.partialorder %v4785_v8, 0.0 }
 0x7ad   : > { %v6447_v22 = vpop.eup %6446  ;;  %6456 = vpow2.f32 %v4806_v0  ;;  %v4788_v53 = vmul.f32 %v6445_v11, %v8555_v30 }
 0x7ae   : > { %6458 = vpow2.f32 %v4804_v44  ;;  %v4787_v16 = vmul.f32 %v6447_v22, %v8559_v46 }
 0x7af   : > { %v4810_v28 = vmul.f32 1.442695, %v4788_v53  ;;  %vm4796_vm0 = vcmp.gt.f32.partialorder %v4788_v53, 0.0 }
 0x7b0   : > { %v6449_v10 = vpop.eup %6448  ;;  %v4808_v18 = vmul.f32 1.442695, %v4787_v16  ;;  %vm4795_vm14 = vcmp.gt.f32.partialorder %v4787_v16, 0.0 }
 0x7b1   : > { %6460 = vpow2.f32 %v4810_v28  ;;  %v4789_v47 = vmul.f32 %v6449_v10, %v8567_v60 }
 0x7b2   : > { %v6451_v33 = vpop.eup %6450  ;;  %6462 = vpow2.f32 %v4808_v18 }
 0x7b3   : > { %v5371_v7 = vadd.f32 -1.0, %v6451_v33  ;;  %v4812_v49 = vmul.f32 1.442695, %v4789_v47  ;;  %vm4797_vm15 = vcmp.gt.f32.partialorder %v4789_v47, 0.0 }
 0x7b5   : > { %v4822_v38 = vsel %vm4790_vm9, %v4782_v62, %v5371_v7  ;;  %6464 = vpow2.f32 %v4812_v49 }
 0x7b6   : > { %v6453_v61 = vpop.eup %6452  ;;  %6037 = vmatprep.mubr.f32.mxu1 %v4822_v38 }
 0x7b7   : > { %v6455_v1 = vpop.eup %6454  ;;  %v5373_v30 = vadd.f32 -1.0, %v6453_v61 }
 0x7b8   : > { %v5372_v58 = vadd.f32 -1.0, %v6455_v1 }
 0x7b9   : > { %v4824_v46 = vsel %vm4792_vm2, %v4784_v3, %v5373_v30 }
 0x7ba   : > { %v6457_v54 = vpop.eup %6456  ;;  %v4823_v50 = vsel %vm4791_vm10, %v4783_v4, %v5372_v58 }
 0x7bb   : > { %v6459_v19 = vpop.eup %6458  ;;  %6038 = vmatmul.mubr.f32.vlgmr.msra.gmra.mxu1 %v4823_v50  ;;  %v5375_v60 = vadd.f32 -1.0, %v6457_v54 }
 0x7bc   : > { %6040 = vmatprep.mubr.f32.mxu1 %v4824_v46  ;;  %v5374_v5 = vadd.f32 -1.0, %v6459_v19 }
 0x7bd   : > { %v4826_v32 = vsel %vm4794_vm3, %v4786_v41, %v5375_v60 }
 0x7be   : > { %v6461_v27 = vpop.eup %6460  ;;  %v4825_v34 = vsel %vm4793_vm4, %v4785_v8, %v5374_v5 }
 0x7bf   : > { %v6463_v20 = vpop.eup %6462  ;;  %6041 = vmatmul.mubr.f32.gmra.mxu1 %v4825_v34  ;;  %v5377_v40 = vadd.f32 -1.0, %v6461_v27 }
 0x7c0   : > { %6043 = vmatprep.mubr.f32.mxu1 %v4826_v32  ;;  %v5376_v24 = vadd.f32 -1.0, %v6463_v20 }
 0x7c1   : > { %v4828_v35 = vsel %vm4796_vm0, %v4788_v53, %v5377_v40 }
 0x7c2   : > { %v6465_v2 = vpop.eup %6464  ;;  %v4827_v52 = vsel %vm4795_vm14, %v4787_v16, %v5376_v24 }
 0x7c3   : > { %6044 = vmatmul.mubr.f32.gmra.mxu1 %v4827_v52  ;;  %v5378_v6 = vadd.f32 -1.0, %v6465_v2 }
 0x7c4   : > { %6046 = vmatprep.mubr.f32.mxu1 %v4828_v35 }
 0x7c5   : > { %v4829_v42 = vsel %vm4797_vm15, %v4789_v47, %v5378_v6 }
 0x7c7   : > { %6047 = vmatmul.mubr.f32.gmra.mxu1 %v4829_v42 }
 0x87b   : > { %v6039_v23 = vpop.f32.mrf.mxu1 }
 0x87c   : > { %v4925_v29 = vadd.f32 %v6039_v23, %v5379_v12 }
 0x87d   : > { %v4919_v25 = vpop.f32.mrf.mxu1 }
 0x87e   : > { %4960 = vst.msk [vmem:[%s8725_s13 + $0x8] sm:$0xff] %vm4958_vm1, %v4925_v29  ;;  %v4920_v14 = vadd.f32 %v5379_v12, %v4919_v25 }
 0x87f   : > { %v6042_v59 = vpop.f32.mrf.mxu1 }
 0x880   : > { %4959 = vst.msk [vmem:[%s8725_s13] sm:$0xff] %vm4958_vm1, %v4920_v14  ;;  %v4935_v26 = vadd.f32 %v6042_v59, %v5379_v12 }
 0x881   : > { %v4929_v9 = vpop.f32.mrf.mxu1 }
 0x882   : > { %4962 = vst.msk [vmem:[%s8725_s13 + $0x18] sm:$0xff] %vm4958_vm1, %v4935_v26  ;;  %v4930_v39 = vadd.f32 %v5379_v12, %v4929_v9 }
 0x883   : > { %v6045_v15 = vpop.f32.mrf.mxu1 }
 0x884   : > { %4961 = vst.msk [vmem:[%s8725_s13 + $0x10] sm:$0xff] %vm4958_vm1, %v4930_v39  ;;  %v4945_v21 = vadd.f32 %v6045_v15, %v5379_v12 }
 0x885   : > { %v4939_v48 = vpop.f32.mrf.mxu1 }
 0x886   : > { %4964 = vst.msk [vmem:[%s8725_s13 + $0x28] sm:$0xff] %vm4958_vm1, %v4945_v21  ;;  %v4940_v57 = vadd.f32 %v5379_v12, %v4939_v48 }
 0x887   : > { %v6048_v17 = vpop.f32.mrf.mxu1 }
 0x888   : > { %4963 = vst.msk [vmem:[%s8725_s13 + $0x20] sm:$0xff] %vm4958_vm1, %v4940_v57  ;;  %v4955_v37 = vadd.f32 %v6048_v17, %v5379_v12 }
 0x889   : > { %v4949_v31 = vpop.f32.mrf.mxu1 }
 0x88a   : > { %4966 = vst.msk [vmem:[%s8725_s13 + $0x38] sm:$0xff] %vm4958_vm1, %v4955_v37  ;;  %v4950_v36 = vadd.f32 %v5379_v12, %v4949_v31 }
 0x88c   : > { %4965 = vst.msk [vmem:[%s8725_s13 + $0x30] sm:$0xff] %vm4958_vm1, %v4950_v36 }
 0x88d PF: > { %s5434_s21 = sshll.u32 %s6632_s17, 11  ;;  %s8987_s22 = sld [smem:[#allocation77_spill]] }
 0x88e   : > { %s4984_s16 = sshll.u32 %s6691_s14, 4  ;;  %s4968_s1 = scalar_lea.sflag [#allocation8], %s6669_s25  ;;  %s8669_s16 = int_to_ptr.vmem [resolvable:$true] %s4984_s16 }
 0x88f   : > { %s6466_s4 = scalar_lea.vmem %s8669_s16, 2048  ;;  %s6533_s19 = smov [#allocation7]  }
 0x890   : > { %p6467_p2 = scmp.ne.s32.totalorder %s8669_s16, %s6466_s4  ;;  %s6470_s29 = sshll.u32 %s6533_s19, 4  ;;  %s6471_s29 = int_to_ptr.vmem [resolvable:$false] %s6470_s29 }
 0x891   : > { %s6472_s17 = scalar_lea.vmem %s6471_s29, 4096  ;;  %p6473_p5 = scmp.lt.s32.totalorder %s8669_s16, %s6471_s29 }
 0x892   : > { %p6468_p3 = pnand %p6467_p2, %p6650_p6  ;;  %p6474_p7 = scmp.lt.s32.totalorder %s6472_s17, %s6466_s4 }
 0x893   : > { %s8666_s30 = scalar_lea.hbm %s8987_s22, %s5434_s21 }
 0x894   : > { %p6469_p4 = pneg %p6468_p3  ;;  %p6475_p10 = por %p6474_p7, %p6473_p5 }
 0x896   : > { %p6476_p11 = pnand %p6475_p10, %p6469_p4 }
 0x898   : > { %6479 = shalt.err (!%p6476_p11)
}
 0x899   : > { %s6480_s14 = scalar_lea.hbm %s8666_s30, 2048  ;;  %s6484_s20 = scalar_lea.hbm %s8987_s22, 4096 }
 0x89a   : > { %p6481_p12 = scmp.ne.s32.totalorder %s8666_s30, %s6480_s14  ;;  %p6485_p1 = scmp.lt.s32.totalorder %s8666_s30, %s8987_s22 }
 0x89b   : > { %p6486_p2 = scmp.lt.s32.totalorder %s6484_s20, %s6480_s14 }
 0x89c   : > { %p6482_p13 = pnand %p6481_p12, %p6650_p6 }
 0x89d   : > { %p6487_p3 = por %p6486_p2, %p6485_p1 }
 0x89e   : > { %p6483_p0 = pneg %p6482_p13 }
 0x8a0   : > { %p6488_p4 = pnand %p6487_p3, %p6483_p0 }
 0x8a2   : > { %6491 = shalt.err (!%p6488_p4)
}
 0x8a3   : > { %s6534_s21 = smov 64   ;;  %s6535_s18 = smov 4  }
 0x8a4   : > { %6053 = dma.vmem_to_hbm [thread:$0]  (%p6650_p6), %s8669_s16, 2048, %s8666_s30, %s4968_s1, %s6534_s21, %s6534_s21, %s6535_s18  }
 0x8a5 PF: > { %s8988_s15 = sld [smem:[#allocation10_spill]]  ;;  %p6056_p5 = pnand %p5093_p9, %p6654_p8 }
 0x8a7   : > { %p6057_p7 = pneg %p6056_p5 }
 0x8ab   : > { %s5002_s29 = sand.u32 1, %s8988_s15  }
 0x8ac   : > { %s5003_s17 = scalar_lea.sflag [#allocation8], %s5002_s29 }
 0x8ad   : > { %6509 = dma.done.wait (%p6057_p7), %s5003_s17, 2048  }
 0x8ae   : > { %6511 = vsyncadd (%p6057_p7), %s5003_s17, 4294965248  ;;  %s8991_s16 = sld [smem:[#allocation14_spill]] }
 0x8af   : > { %s8992_s29 = sld [smem:[#allocation11_spill]] }
 0x8b0   : > { %s8993_s30 = sld [smem:[#allocation12_spill]] }
 0x8b1   : > { %s8994_s15 = sld [smem:[#allocation15_spill]] }
 0x8b4   : > { %p25_p10 = scmp.ge.s32.totalorder %s8991_s16, 4  }
 0x8b6   :  { %27 = sbr.rel (!%p25_p10) target bundleno = 7 (0x7), region = 175 }
 0x8bb   :  { %5008 = vsyncpa [#allocation8], 1 }
 0x8bc   :  { %5010 = vsyncpa [#allocation8 + $0x1], 1 }

</bundles_post_ra>
